<compile_context>
chip_gen: v7x
topology: tpu7x:2x2x1
jax: 0.10.0
libtpu: 0.0.40
codegen_flags: <defaults>
</compile_context>

<pallas_src>
import functools

import jax
import jax.numpy as jnp
from jax import lax
from jax.experimental import pallas as pl
from jax.experimental.pallas import tpu as pltpu  # noqa: F401

# ----------------------------- model config ---------------------------------
B = 2            # batch
D = 8            # input_dim == hidden_dim
H = 8            # input_H
W = 15           # input_W  (after maxpool: W+1 = 16)
NUM_BLOCKS = 1
KERNEL_SIZES = [(4, 1), (4, 2), (4, 4)]   # iterable == 1
LN_EPS = 1e-5
LANES = 128

WP = W + 1                                           # pooled width
S_LIST = [WP // kw for _, kw in KERNEL_SIZES]        # [16, 8, 4]
K_LIST = [D * kh * kw for kh, kw in KERNEL_SIZES]    # [32, 64, 128]
NBR = len(KERNEL_SIZES)

# static row layout of the single packed *input* slab ([IN_ROWS, 128])
_PATCH_OFF = []
_r = 0
for _S in S_LIST:
    _PATCH_OFF.append(_r)
    _r += B * _S
GCAT_OFF = _r                # rows holding cat([Feature1D, Contextual])
_r += B
IN_ROWS = -(-_r // 8) * 8    # 64


# --------------------------- in-kernel helpers -------------------------------
def _erf(x):
    # Abramowitz & Stegun 7.1.26; the rational term uses the EUP approximate
    # reciprocal instead of a VALU divide.
    a1, a2, a3, a4, a5 = 0.254829592, -0.284496736, 1.421413741, -1.453152027, 1.061405429
    p = 0.3275911
    sgn = jnp.where(x >= 0.0, 1.0, -1.0)
    z = jnp.abs(x)
    t = pl.reciprocal(1.0 + p * z, approx=True)
    poly = ((((a5 * t + a4) * t + a3) * t + a2) * t + a1) * t
    return sgn * (1.0 - poly * jnp.exp(-z * z))


def _gelu(x):
    # erf-based GELU, matching nn.GELU() default
    return 0.5 * x * (1.0 + _erf(x * 0.7071067811865476))


def _ln_last(x, w, b):
    # LayerNorm over the last dim (biased variance), eps=1e-5
    mu = jnp.mean(x, axis=-1, keepdims=True)
    var = jnp.mean((x - mu) ** 2, axis=-1, keepdims=True)
    return (x - mu) * lax.rsqrt(var + LN_EPS) * w + b


# ------------------------------ fused kernel ---------------------------------
def fused_kernel(offs, in_ref, w_ref, out_ref):
    f32 = jnp.float32

    def read(name):
        off, r, c = offs[name]
        rp = -(-r // 8) * 8
        return w_ref[off:off + rp, :][:r, :c]

    def dot(a, b):
        return jnp.dot(a, b, preferred_element_type=f32)

    # shared Multi_MLP params (hoisted: read once)
    ln3_w = read("ln3_w")
    ln3_b = read("ln3_b")
    wscore = read("wscore")

    results = [[None] * B for _ in range(NBR)]       # results[branch][batch]: [1, D]

    for i in range(NBR):
        S = S_LIST[i]
        M = B * S

        # Conv2d(stride == kernel, bias=False): one matmul for the whole batch
        # against the zero-padded [128, D] im2col weight.
        pat = in_ref[_PATCH_OFF[i]:_PATCH_OFF[i] + M, :]                    # [M, 128]
        x = dot(pat, read(f"wconv{i}"))                                     # [M, D]

        for blk in range(NUM_BLOCKS):                                       # MixerBlocks
            lnw = read(f"lnm_w{i}_{blk}")
            lnb = read(f"lnm_b{i}_{blk}")

            # --- token-mixing MLP (over the patch axis) ---
            # batch folded via block-diagonal, pre-transposed weights; no
            # transpose / restacking of the activations is needed.
            t = _ln_last(x, lnw, lnb)                                       # [M, D]
            h = _gelu(dot(read(f"wp0bd{i}_{blk}"), t) + read(f"bp0bd{i}_{blk}"))  # [B*2S, D]
            x = x + dot(read(f"wp1bd{i}_{blk}"), h) + read(f"bp1bd{i}_{blk}")     # [M, D]

            # --- channel-mixing MLP (batch folded into the row dim) ---
            t = _ln_last(x, lnw, lnb)
            h = _gelu(dot(t, read(f"wc0{i}_{blk}")) + read(f"bc0{i}_{blk}"))      # [M, 2D]
            x = x + dot(h, read(f"wc1{i}_{blk}")) + read(f"bc1{i}_{blk}")         # [M, D]

        ln2w = read(f"ln2_w{i}")
        ln2b = read(f"ln2_b{i}")
        inv_n = 1.0 / float(S * D)
        for b in range(B):
            xb = x[b * S:(b + 1) * S, :]                                    # [S, D]
            # trailing nn.LayerNorm([Patch_size, Channel_size]): joint over [S, D]
            mu = jnp.sum(jnp.sum(xb, axis=1, keepdims=True),
                         axis=0, keepdims=True) * inv_n
            dxb = xb - mu
            var = jnp.sum(jnp.sum(dxb * dxb, axis=1, keepdims=True),
                          axis=0, keepdims=True) * inv_n
            xb = dxb * lax.rsqrt(var + LN_EPS) * ln2w + ln2b
            # Multi_MLP.LN (per-channel) + tanh-score softmax attention pooling
            xb = _ln_last(xb, ln3_w, ln3_b)
            e = dot(jnp.tanh(xb), wscore)                                   # [S, 1]
            e = e - jnp.max(e, axis=0, keepdims=True)
            a = jnp.exp(e)
            a = a * pl.reciprocal(jnp.sum(a, axis=0, keepdims=True), approx=True)
            results[i][b] = jnp.sum(a * xb, axis=0, keepdims=True)          # [1, D]

    # ------------------------------- heads -----------------------------------
    gcat = in_ref[GCAT_OFF:GCAT_OFF + 8, :][:B, :2 * D]          # cat([Feature1D, Contextual])
    glob = dot(gcat, read("wg")) + read("bg")                    # Gate_Head            [B, D]
    ws = read("ws")
    bs = read("bs")
    wc = read("wc")
    bc = read("bc")
    out_rows = []
    for b in range(B):
        dense_b = (dot(results[0][b], ws[0:D]) + dot(results[1][b], ws[D:2 * D])
                   + dot(results[2][b], ws[2 * D:3 * D]) + bs)   # SelectAttention      [1, D]
        out_rows.append(dot(glob[b:b + 1, :], wc[0:D])
                        + dot(dense_b, wc[D:2 * D]) + bc)        # Cat_Head             [1, D]
    out_ref[...] = jnp.concatenate(out_rows, axis=0)             # [B, D]


# --------------------------- parameter packing --------------------------------
def pack_params(params):
    """Pack every weight/bias into one [R, 128] f32 slab (8-aligned row blocks)."""
    offsets, blocks = {}, []
    row = 0

    def add(name, a, pad_rows=None):
        nonlocal row
        a = jnp.asarray(a, jnp.float32)
        if pad_rows is not None and pad_rows > a.shape[0]:
            a = jnp.pad(a, ((0, pad_rows - a.shape[0]), (0, 0)))
        r, c = a.shape
        rp = -(-r // 8) * 8
        blocks.append(jnp.pad(a, ((0, rp - r), (0, LANES - c))))
        offsets[name] = (row, r, c)
        row += rp

    eye = jnp.eye(B, dtype=jnp.float32)
    for i, bp in enumerate(params["branches"]):
        add(f"wconv{i}", bp["wconv"], pad_rows=LANES)                    # [K,D] -> [128,D]
        for blk in range(NUM_BLOCKS):
            add(f"lnm_w{i}_{blk}", bp["lnm_w"][blk])                     # [1, D]
            add(f"lnm_b{i}_{blk}", bp["lnm_b"][blk])
            # pre-transposed + block-diagonal token-mixing weights (batch-folded)
            add(f"wp0bd{i}_{blk}", jnp.kron(eye, bp["wp0"][blk].T))      # [B*2S, B*S]
            add(f"bp0bd{i}_{blk}", jnp.tile(bp["bp0"][blk], (B, 1)))     # [B*2S, 1]
            add(f"wp1bd{i}_{blk}", jnp.kron(eye, bp["wp1"][blk].T))      # [B*S, B*2S]
            add(f"bp1bd{i}_{blk}", jnp.tile(bp["bp1"][blk], (B, 1)))     # [B*S, 1]
            add(f"wc0{i}_{blk}", bp["wc0"][blk])                         # [D, 2D]
            add(f"bc0{i}_{blk}", bp["bc0"][blk])                         # [1, 2D]
            add(f"wc1{i}_{blk}", bp["wc1"][blk])                         # [2D, D]
            add(f"bc1{i}_{blk}", bp["bc1"][blk])                         # [1, D]
        add(f"ln2_w{i}", bp["ln2_w"])                                    # [S, D]
        add(f"ln2_b{i}", bp["ln2_b"])
    add("ln3_w", params["shared"]["ln3_w"])
    add("ln3_b", params["shared"]["ln3_b"])
    add("wscore", params["shared"]["wscore"])
    hp = params["head"]
    add("wg", hp["wg"]); add("bg", hp["bg"])
    add("ws", hp["ws"]); add("bs", hp["bs"])
    add("wc", hp["wc"]); add("bc", hp["bc"])
    return jnp.concatenate(blocks, axis=0), offsets


# ------------------------------- JAX glue ------------------------------------
def maxpool(x):
    # nn.MaxPool2d(kernel_size=2, stride=(2, 1), padding=(0, 1)) (implicit -inf pad)
    return lax.reduce_window(x, -jnp.inf, lax.max,
                             window_dimensions=(1, 1, 2, 2),
                             window_strides=(1, 1, 2, 1),
                             padding=((0, 0), (0, 0), (0, 0), (1, 1)))


def extract_patches(xp, kh, kw):
    # im2col for a Conv2d whose stride equals its kernel (non-overlapping patches)
    Bn, C, Hp, Wp = xp.shape
    Ho, Wo = Hp // kh, Wp // kw
    x = xp[:, :, :Ho * kh, :Wo * kw].reshape(Bn, C, Ho, kh, Wo, kw)
    x = x.transpose(0, 2, 4, 1, 3, 5)                 # [B, Ho, Wo, C, kh, kw]
    return x.reshape(Bn, Ho * Wo, C * kh * kw)


def build_input_slab(ctx, feat2d, feat1d):
    # TODO(synk): maxpool / im2col stay as XLA glue fused under the same jit;
    # they have no clean tiny-window Pallas equivalent at this size.
    dense_feat = feat2d + feat1d[:, :, None, None]     # Dense_Fusion broadcast add
    xp = maxpool(dense_feat)
    rows = []
    for kh, kw in KERNEL_SIZES:
        p = extract_patches(xp, kh, kw)                # [B, S, K]
        Bn, S, K = p.shape
        rows.append(jnp.pad(p.reshape(Bn * S, K), ((0, 0), (0, LANES - K))))
    gcat = jnp.concatenate([feat1d, ctx], axis=-1)     # [B, 2D]
    rows.append(jnp.pad(gcat, ((0, 0), (0, LANES - 2 * D))))
    slab = jnp.concatenate(rows, axis=0)
    return jnp.pad(slab, ((0, IN_ROWS - slab.shape[0]), (0, 0)))


def make_forward(offsets):
    fused = pl.pallas_call(
        functools.partial(fused_kernel, offsets),
        out_shape=jax.ShapeDtypeStruct((B, D), jnp.float32),
    )

    @jax.jit
    def forward(ctx, feat2d, feat1d, param_slab):
        return fused(build_input_slab(ctx, feat2d, feat1d), param_slab)

    return forward


# ------------------------- deterministic parameters ---------------------------
def init_params(key):
    kit = iter(jax.random.split(key, 512))

    def nrm(shape, fan_in):
        return jax.random.normal(next(kit), shape, jnp.float32) / jnp.sqrt(float(fan_in))

    def ln_pair(shape):
        w = 1.0 + 0.1 * jax.random.normal(next(kit), shape, jnp.float32)
        b = 0.1 * jax.random.normal(next(kit), shape, jnp.float32)
        return w, b

    branches = []
    for kh, kw in KERNEL_SIZES:
        S = WP // kw
        K = D * kh * kw
        wconv = nrm((D, D, kh, kw), K).reshape(D, K).T            # [K, D]
        p = {k: [] for k in ["lnm_w", "lnm_b", "wp0", "bp0", "wp1", "bp1",
                             "wc0", "bc0", "wc1", "bc1"]}
        for _ in range(NUM_BLOCKS):
            lw, lb = ln_pair((1, D))
            p["lnm_w"].append(lw); p["lnm_b"].append(lb)
            p["wp0"].append(nrm((S, 2 * S), S));      p["bp0"].append(nrm((2 * S, 1), S))
            p["wp1"].append(nrm((2 * S, S), 2 * S));  p["bp1"].append(nrm((S, 1), 2 * S))
            p["wc0"].append(nrm((D, 2 * D), D));      p["bc0"].append(nrm((1, 2 * D), D))
            p["wc1"].append(nrm((2 * D, D), 2 * D));  p["bc1"].append(nrm((1, D), 2 * D))
        bp = {k: jnp.stack(v) for k, v in p.items()}
        bp["wconv"] = wconv
        bp["ln2_w"], bp["ln2_b"] = ln_pair((S, D))
        branches.append(bp)

    ln3_w, ln3_b = ln_pair((1, D))
    shared = dict(ln3_w=ln3_w, ln3_b=ln3_b, wscore=nrm((D, 1), D))
    head = dict(
        wg=nrm((2 * D, D), 2 * D), bg=nrm((1, D), 2 * D),
        ws=nrm((3 * D, D), 3 * D), bs=nrm((1, D), 3 * D),
        wc=nrm((2 * D, D), 2 * D), bc=nrm((1, D), 2 * D),
    )
    return dict(branches=branches, shared=shared, head=head)


# ----------------------------- pure-JAX reference -----------------------------
def _ref_ln(x, w, b, axes):
    mu = jnp.mean(x, axis=axes, keepdims=True)
    var = jnp.mean((x - mu) ** 2, axis=axes, keepdims=True)
    return (x - mu) / jnp.sqrt(var + LN_EPS) * w + b


def reference_forward(ctx, feat2d, feat1d, params):
    hp, sh = params["head"], params["shared"]
    glob = jnp.concatenate([feat1d, ctx], axis=-1) @ hp["wg"] + hp["bg"][0]
    dense_feat = feat2d + feat1d[:, :, None, None]
    xp = maxpool(dense_feat)
    results = []
    for i, (kh, kw) in enumerate(KERNEL_SIZES):
        bp = params["branches"][i]
        patches = extract_patches(xp, kh, kw)
        x = patches @ bp["wconv"]                                     # [B, S, D]
        for blk in range(NUM_BLOCKS):
            lnw, lnb = bp["lnm_w"][blk, 0], bp["lnm_b"][blk, 0]
            t = _ref_ln(x, lnw, lnb, axes=(-1,))
            tT = jnp.swapaxes(t, 1, 2)                                # [B, D, S]
            h = jax.nn.gelu(tT @ bp["wp0"][blk] + bp["bp0"][blk][:, 0], approximate=False)
            h = h @ bp["wp1"][blk] + bp["bp1"][blk][:, 0]
            x = x + jnp.swapaxes(h, 1, 2)
            t = _ref_ln(x, lnw, lnb, axes=(-1,))
            h = jax.nn.gelu(t @ bp["wc0"][blk] + bp["bc0"][blk][0], approximate=False)
            h = h @ bp["wc1"][blk] + bp["bc1"][blk][0]
            x = x + h
        x = _ref_ln(x, bp["ln2_w"], bp["ln2_b"], axes=(-2, -1))
        x = _ref_ln(x, sh["ln3_w"][0], sh["ln3_b"][0], axes=(-1,))
        e = jnp.tanh(x) @ sh["wscore"]
        a = jax.nn.softmax(e, axis=1)
        results.append(jnp.einsum("bso,bsd->bd", a, x))
    dense = jnp.concatenate(results, axis=-1) @ hp["ws"] + hp["bs"][0]
    return jnp.concatenate([glob, dense], axis=-1) @ hp["wc"] + hp["bc"][0]


# ----------------------------------- main -------------------------------------
if __name__ == "__main__":
    key = jax.random.PRNGKey(0)
    kp, k1, k2, k3 = jax.random.split(key, 4)
    params = init_params(kp)
    param_slab, offsets = pack_params(params)
    forward = make_forward(offsets)

    contextual = jax.random.normal(k1, (B, D), jnp.float32)
    feature2d = jax.random.normal(k2, (B, D, H, W), jnp.float32)
    feature1d = jax.random.normal(k3, (B, D), jnp.float32)

    out = forward(contextual, feature2d, feature1d, param_slab)
    out = jax.block_until_ready(out)
    assert out.shape == (B, D)

    ref = reference_forward(contextual, feature2d, feature1d, params)
    max_diff = float(jnp.max(jnp.abs(out - ref)))
    assert max_diff < 5e-2, f"mismatch vs reference: max abs diff = {max_diff}"

    print("KERNEL_OK")
</pallas_src>

<mosaic_0001>
module attributes {stable_mosaic.version = 11 : i64} {
  func.func @fused_kernel(%arg0: memref<64x128xf32, #tpu.memory_space<vmem>>, %arg1: memref<1056x128xf32, #tpu.memory_space<vmem>>, %arg2: memref<2x8xf32, #tpu.memory_space<vmem>>) attributes {dimension_semantics = [], scalar_prefetch = 0 : i64, scratch_operands = 0 : i64, tpu.core_type = #tpu.core_type<tc>} {
    %c952 = arith.constant 952 : index
    %c0 = arith.constant 0 : index
    %0 = vector.load %arg1[%c952, %c0] : memref<1056x128xf32, #tpu.memory_space<vmem>>, vector<8x128xf32>
    %1 = vector.extract_strided_slice %0 {offsets = [0, 0], sizes = [1, 8], strides = [1, 1]} : vector<8x128xf32> to vector<1x8xf32>
    %c960 = arith.constant 960 : index
    %c0_0 = arith.constant 0 : index
    %2 = vector.load %arg1[%c960, %c0_0] : memref<1056x128xf32, #tpu.memory_space<vmem>>, vector<8x128xf32>
    %3 = vector.extract_strided_slice %2 {offsets = [0, 0], sizes = [1, 8], strides = [1, 1]} : vector<8x128xf32> to vector<1x8xf32>
    %c968 = arith.constant 968 : index
    %c0_1 = arith.constant 0 : index
    %4 = vector.load %arg1[%c968, %c0_1] : memref<1056x128xf32, #tpu.memory_space<vmem>>, vector<8x128xf32>
    %5 = vector.extract_strided_slice %4 {offsets = [0, 0], sizes = [8, 1], strides = [1, 1]} : vector<8x128xf32> to vector<8x1xf32>
    %c0_2 = arith.constant 0 : index
    %c0_3 = arith.constant 0 : index
    %6 = vector.load %arg0[%c0_2, %c0_3] : memref<64x128xf32, #tpu.memory_space<vmem>>, vector<32x128xf32>
    %c0_4 = arith.constant 0 : index
    %c0_5 = arith.constant 0 : index
    %7 = vector.load %arg1[%c0_4, %c0_5] : memref<1056x128xf32, #tpu.memory_space<vmem>>, vector<128x128xf32>
    %8 = vector.extract_strided_slice %7 {offsets = [0, 0], sizes = [128, 8], strides = [1, 1]} : vector<128x128xf32> to vector<128x8xf32>
    %cst = arith.constant dense<0.000000e+00> : vector<32x8xf32>
    %9 = tpu.matmul %6, %8, %cst {dimension_numbers = #tpu.dot_dimension_numbers<[1], [0], [0], [1], [0, 0, 1, 1], [], []>} : vector<32x128xf32>, vector<128x8xf32>, vector<32x8xf32> -> vector<32x8xf32>
    %c128 = arith.constant 128 : index
    %c0_6 = arith.constant 0 : index
    %10 = vector.load %arg1[%c128, %c0_6] : memref<1056x128xf32, #tpu.memory_space<vmem>>, vector<8x128xf32>
    %11 = vector.extract_strided_slice %10 {offsets = [0, 0], sizes = [1, 8], strides = [1, 1]} : vector<8x128xf32> to vector<1x8xf32>
    %c136 = arith.constant 136 : index
    %c0_7 = arith.constant 0 : index
    %12 = vector.load %arg1[%c136, %c0_7] : memref<1056x128xf32, #tpu.memory_space<vmem>>, vector<8x128xf32>
    %13 = vector.extract_strided_slice %12 {offsets = [0, 0], sizes = [1, 8], strides = [1, 1]} : vector<8x128xf32> to vector<1x8xf32>
    %cst_8 = arith.constant dense<0.000000e+00> : vector<32xf32>
    %14 = vector.multi_reduction <add>, %9, %cst_8 [1] : vector<32x8xf32> to vector<32xf32>
    %15 = vector.shape_cast %14 : vector<32xf32> to vector<32x1xf32>
    %cst_9 = arith.constant 8.000000e+00 : f32
    %16 = vector.broadcast %cst_9 : f32 to vector<32x1xf32>
    %17 = arith.divf %15, %16 : vector<32x1xf32>
    %18 = vector.broadcast %17 : vector<32x1xf32> to vector<32x8xf32>
    %19 = arith.subf %9, %18 : vector<32x8xf32>
    %20 = arith.mulf %19, %19 : vector<32x8xf32>
    %cst_10 = arith.constant dense<0.000000e+00> : vector<32xf32>
    %21 = vector.multi_reduction <add>, %20, %cst_10 [1] : vector<32x8xf32> to vector<32xf32>
    %22 = vector.shape_cast %21 : vector<32xf32> to vector<32x1xf32>
    %cst_11 = arith.constant 8.000000e+00 : f32
    %23 = vector.broadcast %cst_11 : f32 to vector<32x1xf32>
    %24 = arith.divf %22, %23 : vector<32x1xf32>
    %25 = vector.broadcast %17 : vector<32x1xf32> to vector<32x8xf32>
    %26 = arith.subf %9, %25 : vector<32x8xf32>
    %cst_12 = arith.constant 9.99999974E-6 : f32
    %27 = vector.broadcast %cst_12 : f32 to vector<32x1xf32>
    %28 = arith.addf %24, %27 : vector<32x1xf32>
    %29 = math.rsqrt %28 : vector<32x1xf32>
    %30 = vector.broadcast %29 : vector<32x1xf32> to vector<32x8xf32>
    %31 = arith.mulf %26, %30 : vector<32x8xf32>
    %32 = vector.broadcast %11 : vector<1x8xf32> to vector<32x8xf32>
    %33 = arith.mulf %31, %32 : vector<32x8xf32>
    %34 = vector.broadcast %13 : vector<1x8xf32> to vector<32x8xf32>
    %35 = arith.addf %33, %34 : vector<32x8xf32>
    %c144 = arith.constant 144 : index
    %c0_13 = arith.constant 0 : index
    %36 = vector.load %arg1[%c144, %c0_13] : memref<1056x128xf32, #tpu.memory_space<vmem>>, vector<64x128xf32>
    %37 = vector.extract_strided_slice %36 {offsets = [0, 0], sizes = [64, 32], strides = [1, 1]} : vector<64x128xf32> to vector<64x32xf32>
    %cst_14 = arith.constant dense<0.000000e+00> : vector<64x8xf32>
    %38 = tpu.matmul %37, %35, %cst_14 {dimension_numbers = #tpu.dot_dimension_numbers<[1], [0], [0], [1], [0, 0, 1, 1], [], []>} : vector<64x32xf32>, vector<32x8xf32>, vector<64x8xf32> -> vector<64x8xf32>
    %c208 = arith.constant 208 : index
    %c0_15 = arith.constant 0 : index
    %39 = vector.load %arg1[%c208, %c0_15] : memref<1056x128xf32, #tpu.memory_space<vmem>>, vector<64x128xf32>
    %40 = vector.extract_strided_slice %39 {offsets = [0, 0], sizes = [64, 1], strides = [1, 1]} : vector<64x128xf32> to vector<64x1xf32>
    %41 = vector.broadcast %40 : vector<64x1xf32> to vector<64x8xf32>
    %42 = arith.addf %38, %41 : vector<64x8xf32>
    %cst_16 = arith.constant 5.000000e-01 : f32
    %43 = vector.broadcast %cst_16 : f32 to vector<64x8xf32>
    %44 = arith.mulf %43, %42 : vector<64x8xf32>
    %cst_17 = arith.constant 0.707106769 : f32
    %45 = vector.broadcast %cst_17 : f32 to vector<64x8xf32>
    %46 = arith.mulf %42, %45 : vector<64x8xf32>
    %cst_18 = arith.constant 0.000000e+00 : f32
    %47 = vector.broadcast %cst_18 : f32 to vector<64x8xf32>
    %48 = arith.cmpf oge, %46, %47 : vector<64x8xf32>
    %cst_19 = arith.constant 1.000000e+00 : f32
    %cst_20 = arith.constant -1.000000e+00 : f32
    %49 = vector.broadcast %cst_19 : f32 to vector<64x8xf32>
    %50 = vector.broadcast %cst_20 : f32 to vector<64x8xf32>
    %51 = arith.select %48, %49, %50 : vector<64x8xi1>, vector<64x8xf32>
    %52 = math.absf %46 : vector<64x8xf32>
    %cst_21 = arith.constant 0.327591091 : f32
    %53 = vector.broadcast %cst_21 : f32 to vector<64x8xf32>
    %54 = arith.mulf %53, %52 : vector<64x8xf32>
    %cst_22 = arith.constant 1.000000e+00 : f32
    %55 = vector.broadcast %cst_22 : f32 to vector<64x8xf32>
    %56 = arith.addf %55, %54 : vector<64x8xf32>
    %57 = tpu.reciprocal %56 {approx = true} : vector<64x8xf32> -> vector<64x8xf32>
    %cst_23 = arith.constant 1.06140542 : f32
    %58 = vector.broadcast %cst_23 : f32 to vector<64x8xf32>
    %59 = arith.mulf %58, %57 : vector<64x8xf32>
    %cst_24 = arith.constant -1.45315206 : f32
    %60 = vector.broadcast %cst_24 : f32 to vector<64x8xf32>
    %61 = arith.addf %59, %60 : vector<64x8xf32>
    %62 = arith.mulf %61, %57 : vector<64x8xf32>
    %cst_25 = arith.constant 1.42141378 : f32
    %63 = vector.broadcast %cst_25 : f32 to vector<64x8xf32>
    %64 = arith.addf %62, %63 : vector<64x8xf32>
    %65 = arith.mulf %64, %57 : vector<64x8xf32>
    %cst_26 = arith.constant -0.284496725 : f32
    %66 = vector.broadcast %cst_26 : f32 to vector<64x8xf32>
    %67 = arith.addf %65, %66 : vector<64x8xf32>
    %68 = arith.mulf %67, %57 : vector<64x8xf32>
    %cst_27 = arith.constant 0.254829586 : f32
    %69 = vector.broadcast %cst_27 : f32 to vector<64x8xf32>
    %70 = arith.addf %68, %69 : vector<64x8xf32>
    %71 = arith.mulf %70, %57 : vector<64x8xf32>
    %cst_28 = arith.constant 0.000000e+00 : f32
    %72 = vector.broadcast %cst_28 : f32 to vector<64x8xf32>
    %73 = arith.subf %72, %52 : vector<64x8xf32>
    %74 = arith.mulf %73, %52 : vector<64x8xf32>
    %75 = math.exp %74 : vector<64x8xf32>
    %76 = arith.mulf %71, %75 : vector<64x8xf32>
    %cst_29 = arith.constant 1.000000e+00 : f32
    %77 = vector.broadcast %cst_29 : f32 to vector<64x8xf32>
    %78 = arith.subf %77, %76 : vector<64x8xf32>
    %79 = arith.mulf %51, %78 : vector<64x8xf32>
    %cst_30 = arith.constant 1.000000e+00 : f32
    %80 = vector.broadcast %cst_30 : f32 to vector<64x8xf32>
    %81 = arith.addf %80, %79 : vector<64x8xf32>
    %82 = arith.mulf %44, %81 : vector<64x8xf32>
    %c272 = arith.constant 272 : index
    %c0_31 = arith.constant 0 : index
    %83 = vector.load %arg1[%c272, %c0_31] : memref<1056x128xf32, #tpu.memory_space<vmem>>, vector<32x128xf32>
    %84 = vector.extract_strided_slice %83 {offsets = [0, 0], sizes = [32, 64], strides = [1, 1]} : vector<32x128xf32> to vector<32x64xf32>
    %cst_32 = arith.constant dense<0.000000e+00> : vector<32x8xf32>
    %85 = tpu.matmul %84, %82, %cst_32 {dimension_numbers = #tpu.dot_dimension_numbers<[1], [0], [0], [1], [0, 0, 1, 1], [], []>} : vector<32x64xf32>, vector<64x8xf32>, vector<32x8xf32> -> vector<32x8xf32>
    %86 = arith.addf %9, %85 : vector<32x8xf32>
    %c304 = arith.constant 304 : index
    %c0_33 = arith.constant 0 : index
    %87 = vector.load %arg1[%c304, %c0_33] : memref<1056x128xf32, #tpu.memory_space<vmem>>, vector<32x128xf32>
    %88 = vector.extract_strided_slice %87 {offsets = [0, 0], sizes = [32, 1], strides = [1, 1]} : vector<32x128xf32> to vector<32x1xf32>
    %89 = vector.broadcast %88 : vector<32x1xf32> to vector<32x8xf32>
    %90 = arith.addf %86, %89 : vector<32x8xf32>
    %cst_34 = arith.constant dense<0.000000e+00> : vector<32xf32>
    %91 = vector.multi_reduction <add>, %90, %cst_34 [1] : vector<32x8xf32> to vector<32xf32>
    %92 = vector.shape_cast %91 : vector<32xf32> to vector<32x1xf32>
    %cst_35 = arith.constant 8.000000e+00 : f32
    %93 = vector.broadcast %cst_35 : f32 to vector<32x1xf32>
    %94 = arith.divf %92, %93 : vector<32x1xf32>
    %95 = vector.broadcast %94 : vector<32x1xf32> to vector<32x8xf32>
    %96 = arith.subf %90, %95 : vector<32x8xf32>
    %97 = arith.mulf %96, %96 : vector<32x8xf32>
    %cst_36 = arith.constant dense<0.000000e+00> : vector<32xf32>
    %98 = vector.multi_reduction <add>, %97, %cst_36 [1] : vector<32x8xf32> to vector<32xf32>
    %99 = vector.shape_cast %98 : vector<32xf32> to vector<32x1xf32>
    %cst_37 = arith.constant 8.000000e+00 : f32
    %100 = vector.broadcast %cst_37 : f32 to vector<32x1xf32>
    %101 = arith.divf %99, %100 : vector<32x1xf32>
    %102 = vector.broadcast %94 : vector<32x1xf32> to vector<32x8xf32>
    %103 = arith.subf %90, %102 : vector<32x8xf32>
    %cst_38 = arith.constant 9.99999974E-6 : f32
    %104 = vector.broadcast %cst_38 : f32 to vector<32x1xf32>
    %105 = arith.addf %101, %104 : vector<32x1xf32>
    %106 = math.rsqrt %105 : vector<32x1xf32>
    %107 = vector.broadcast %106 : vector<32x1xf32> to vector<32x8xf32>
    %108 = arith.mulf %103, %107 : vector<32x8xf32>
    %109 = vector.broadcast %11 : vector<1x8xf32> to vector<32x8xf32>
    %110 = arith.mulf %108, %109 : vector<32x8xf32>
    %111 = vector.broadcast %13 : vector<1x8xf32> to vector<32x8xf32>
    %112 = arith.addf %110, %111 : vector<32x8xf32>
    %c336 = arith.constant 336 : index
    %c0_39 = arith.constant 0 : index
    %113 = vector.load %arg1[%c336, %c0_39] : memref<1056x128xf32, #tpu.memory_space<vmem>>, vector<8x128xf32>
    %114 = vector.extract_strided_slice %113 {offsets = [0, 0], sizes = [8, 16], strides = [1, 1]} : vector<8x128xf32> to vector<8x16xf32>
    %cst_40 = arith.constant dense<0.000000e+00> : vector<32x16xf32>
    %115 = tpu.matmul %112, %114, %cst_40 {dimension_numbers = #tpu.dot_dimension_numbers<[1], [0], [0], [1], [0, 0, 1, 1], [], []>} : vector<32x8xf32>, vector<8x16xf32>, vector<32x16xf32> -> vector<32x16xf32>
    %c344 = arith.constant 344 : index
    %c0_41 = arith.constant 0 : index
    %116 = vector.load %arg1[%c344, %c0_41] : memref<1056x128xf32, #tpu.memory_space<vmem>>, vector<8x128xf32>
    %117 = vector.extract_strided_slice %116 {offsets = [0, 0], sizes = [1, 16], strides = [1, 1]} : vector<8x128xf32> to vector<1x16xf32>
    %118 = vector.broadcast %117 : vector<1x16xf32> to vector<32x16xf32>
    %119 = arith.addf %115, %118 : vector<32x16xf32>
    %cst_42 = arith.constant 5.000000e-01 : f32
    %120 = vector.broadcast %cst_42 : f32 to vector<32x16xf32>
    %121 = arith.mulf %120, %119 : vector<32x16xf32>
    %cst_43 = arith.constant 0.707106769 : f32
    %122 = vector.broadcast %cst_43 : f32 to vector<32x16xf32>
    %123 = arith.mulf %119, %122 : vector<32x16xf32>
    %cst_44 = arith.constant 0.000000e+00 : f32
    %124 = vector.broadcast %cst_44 : f32 to vector<32x16xf32>
    %125 = arith.cmpf oge, %123, %124 : vector<32x16xf32>
    %cst_45 = arith.constant 1.000000e+00 : f32
    %cst_46 = arith.constant -1.000000e+00 : f32
    %126 = vector.broadcast %cst_45 : f32 to vector<32x16xf32>
    %127 = vector.broadcast %cst_46 : f32 to vector<32x16xf32>
    %128 = arith.select %125, %126, %127 : vector<32x16xi1>, vector<32x16xf32>
    %129 = math.absf %123 : vector<32x16xf32>
    %cst_47 = arith.constant 0.327591091 : f32
    %130 = vector.broadcast %cst_47 : f32 to vector<32x16xf32>
    %131 = arith.mulf %130, %129 : vector<32x16xf32>
    %cst_48 = arith.constant 1.000000e+00 : f32
    %132 = vector.broadcast %cst_48 : f32 to vector<32x16xf32>
    %133 = arith.addf %132, %131 : vector<32x16xf32>
    %134 = tpu.reciprocal %133 {approx = true} : vector<32x16xf32> -> vector<32x16xf32>
    %cst_49 = arith.constant 1.06140542 : f32
    %135 = vector.broadcast %cst_49 : f32 to vector<32x16xf32>
    %136 = arith.mulf %135, %134 : vector<32x16xf32>
    %cst_50 = arith.constant -1.45315206 : f32
    %137 = vector.broadcast %cst_50 : f32 to vector<32x16xf32>
    %138 = arith.addf %136, %137 : vector<32x16xf32>
    %139 = arith.mulf %138, %134 : vector<32x16xf32>
    %cst_51 = arith.constant 1.42141378 : f32
    %140 = vector.broadcast %cst_51 : f32 to vector<32x16xf32>
    %141 = arith.addf %139, %140 : vector<32x16xf32>
    %142 = arith.mulf %141, %134 : vector<32x16xf32>
    %cst_52 = arith.constant -0.284496725 : f32
    %143 = vector.broadcast %cst_52 : f32 to vector<32x16xf32>
    %144 = arith.addf %142, %143 : vector<32x16xf32>
    %145 = arith.mulf %144, %134 : vector<32x16xf32>
    %cst_53 = arith.constant 0.254829586 : f32
    %146 = vector.broadcast %cst_53 : f32 to vector<32x16xf32>
    %147 = arith.addf %145, %146 : vector<32x16xf32>
    %148 = arith.mulf %147, %134 : vector<32x16xf32>
    %cst_54 = arith.constant 0.000000e+00 : f32
    %149 = vector.broadcast %cst_54 : f32 to vector<32x16xf32>
    %150 = arith.subf %149, %129 : vector<32x16xf32>
    %151 = arith.mulf %150, %129 : vector<32x16xf32>
    %152 = math.exp %151 : vector<32x16xf32>
    %153 = arith.mulf %148, %152 : vector<32x16xf32>
    %cst_55 = arith.constant 1.000000e+00 : f32
    %154 = vector.broadcast %cst_55 : f32 to vector<32x16xf32>
    %155 = arith.subf %154, %153 : vector<32x16xf32>
    %156 = arith.mulf %128, %155 : vector<32x16xf32>
    %cst_56 = arith.constant 1.000000e+00 : f32
    %157 = vector.broadcast %cst_56 : f32 to vector<32x16xf32>
    %158 = arith.addf %157, %156 : vector<32x16xf32>
    %159 = arith.mulf %121, %158 : vector<32x16xf32>
    %c352 = arith.constant 352 : index
    %c0_57 = arith.constant 0 : index
    %160 = vector.load %arg1[%c352, %c0_57] : memref<1056x128xf32, #tpu.memory_space<vmem>>, vector<16x128xf32>
    %161 = vector.extract_strided_slice %160 {offsets = [0, 0], sizes = [16, 8], strides = [1, 1]} : vector<16x128xf32> to vector<16x8xf32>
    %cst_58 = arith.constant dense<0.000000e+00> : vector<32x8xf32>
    %162 = tpu.matmul %159, %161, %cst_58 {dimension_numbers = #tpu.dot_dimension_numbers<[1], [0], [0], [1], [0, 0, 1, 1], [], []>} : vector<32x16xf32>, vector<16x8xf32>, vector<32x8xf32> -> vector<32x8xf32>
    %163 = arith.addf %90, %162 : vector<32x8xf32>
    %c368 = arith.constant 368 : index
    %c0_59 = arith.constant 0 : index
    %164 = vector.load %arg1[%c368, %c0_59] : memref<1056x128xf32, #tpu.memory_space<vmem>>, vector<8x128xf32>
    %165 = vector.extract_strided_slice %164 {offsets = [0, 0], sizes = [1, 8], strides = [1, 1]} : vector<8x128xf32> to vector<1x8xf32>
    %166 = vector.broadcast %165 : vector<1x8xf32> to vector<32x8xf32>
    %167 = arith.addf %163, %166 : vector<32x8xf32>
    %c376 = arith.constant 376 : index
    %c0_60 = arith.constant 0 : index
    %168 = vector.load %arg1[%c376, %c0_60] : memref<1056x128xf32, #tpu.memory_space<vmem>>, vector<16x128xf32>
    %169 = vector.extract_strided_slice %168 {offsets = [0, 0], sizes = [16, 8], strides = [1, 1]} : vector<16x128xf32> to vector<16x8xf32>
    %c392 = arith.constant 392 : index
    %c0_61 = arith.constant 0 : index
    %170 = vector.load %arg1[%c392, %c0_61] : memref<1056x128xf32, #tpu.memory_space<vmem>>, vector<16x128xf32>
    %171 = vector.extract_strided_slice %170 {offsets = [0, 0], sizes = [16, 8], strides = [1, 1]} : vector<16x128xf32> to vector<16x8xf32>
    %172 = vector.extract_strided_slice %167 {offsets = [0, 0], sizes = [16, 8], strides = [1, 1]} : vector<32x8xf32> to vector<16x8xf32>
    %cst_62 = arith.constant dense<0.000000e+00> : vector<16xf32>
    %173 = vector.multi_reduction <add>, %172, %cst_62 [1] : vector<16x8xf32> to vector<16xf32>
    %174 = vector.shape_cast %173 : vector<16xf32> to vector<16x1xf32>
    %cst_63 = arith.constant dense<0.000000e+00> : vector<1xf32>
    %175 = vector.multi_reduction <add>, %174, %cst_63 [0] : vector<16x1xf32> to vector<1xf32>
    %176 = vector.shape_cast %175 : vector<1xf32> to vector<1x1xf32>
    %cst_64 = arith.constant 7.812500e-03 : f32
    %177 = vector.broadcast %cst_64 : f32 to vector<1x1xf32>
    %178 = arith.mulf %176, %177 : vector<1x1xf32>
    %179 = vector.broadcast %178 : vector<1x1xf32> to vector<16x8xf32>
    %180 = arith.subf %172, %179 : vector<16x8xf32>
    %181 = arith.mulf %180, %180 : vector<16x8xf32>
    %cst_65 = arith.constant dense<0.000000e+00> : vector<16xf32>
    %182 = vector.multi_reduction <add>, %181, %cst_65 [1] : vector<16x8xf32> to vector<16xf32>
    %183 = vector.shape_cast %182 : vector<16xf32> to vector<16x1xf32>
    %cst_66 = arith.constant dense<0.000000e+00> : vector<1xf32>
    %184 = vector.multi_reduction <add>, %183, %cst_66 [0] : vector<16x1xf32> to vector<1xf32>
    %185 = vector.shape_cast %184 : vector<1xf32> to vector<1x1xf32>
    %cst_67 = arith.constant 7.812500e-03 : f32
    %186 = vector.broadcast %cst_67 : f32 to vector<1x1xf32>
    %187 = arith.mulf %185, %186 : vector<1x1xf32>
    %cst_68 = arith.constant 9.99999974E-6 : f32
    %188 = vector.broadcast %cst_68 : f32 to vector<1x1xf32>
    %189 = arith.addf %187, %188 : vector<1x1xf32>
    %190 = math.rsqrt %189 : vector<1x1xf32>
    %191 = vector.broadcast %190 : vector<1x1xf32> to vector<16x8xf32>
    %192 = arith.mulf %180, %191 : vector<16x8xf32>
    %193 = arith.mulf %192, %169 : vector<16x8xf32>
    %194 = arith.addf %193, %171 : vector<16x8xf32>
    %cst_69 = arith.constant dense<0.000000e+00> : vector<16xf32>
    %195 = vector.multi_reduction <add>, %194, %cst_69 [1] : vector<16x8xf32> to vector<16xf32>
    %196 = vector.shape_cast %195 : vector<16xf32> to vector<16x1xf32>
    %cst_70 = arith.constant 8.000000e+00 : f32
    %197 = vector.broadcast %cst_70 : f32 to vector<16x1xf32>
    %198 = arith.divf %196, %197 : vector<16x1xf32>
    %199 = vector.broadcast %198 : vector<16x1xf32> to vector<16x8xf32>
    %200 = arith.subf %194, %199 : vector<16x8xf32>
    %201 = arith.mulf %200, %200 : vector<16x8xf32>
    %cst_71 = arith.constant dense<0.000000e+00> : vector<16xf32>
    %202 = vector.multi_reduction <add>, %201, %cst_71 [1] : vector<16x8xf32> to vector<16xf32>
    %203 = vector.shape_cast %202 : vector<16xf32> to vector<16x1xf32>
    %cst_72 = arith.constant 8.000000e+00 : f32
    %204 = vector.broadcast %cst_72 : f32 to vector<16x1xf32>
    %205 = arith.divf %203, %204 : vector<16x1xf32>
    %206 = vector.broadcast %198 : vector<16x1xf32> to vector<16x8xf32>
    %207 = arith.subf %194, %206 : vector<16x8xf32>
    %cst_73 = arith.constant 9.99999974E-6 : f32
    %208 = vector.broadcast %cst_73 : f32 to vector<16x1xf32>
    %209 = arith.addf %205, %208 : vector<16x1xf32>
    %210 = math.rsqrt %209 : vector<16x1xf32>
    %211 = vector.broadcast %210 : vector<16x1xf32> to vector<16x8xf32>
    %212 = arith.mulf %207, %211 : vector<16x8xf32>
    %213 = vector.broadcast %1 : vector<1x8xf32> to vector<16x8xf32>
    %214 = arith.mulf %212, %213 : vector<16x8xf32>
    %215 = vector.broadcast %3 : vector<1x8xf32> to vector<16x8xf32>
    %216 = arith.addf %214, %215 : vector<16x8xf32>
    %217 = math.tanh %216 : vector<16x8xf32>
    %cst_74 = arith.constant dense<0.000000e+00> : vector<16x1xf32>
    %218 = tpu.matmul %217, %5, %cst_74 {dimension_numbers = #tpu.dot_dimension_numbers<[1], [0], [0], [1], [0, 0, 1, 1], [], []>} : vector<16x8xf32>, vector<8x1xf32>, vector<16x1xf32> -> vector<16x1xf32>
    %cst_75 = arith.constant dense<0xFF800000> : vector<1xf32>
    %219 = vector.multi_reduction <maximumf>, %218, %cst_75 [0] : vector<16x1xf32> to vector<1xf32>
    %220 = vector.shape_cast %219 : vector<1xf32> to vector<1x1xf32>
    %221 = vector.broadcast %220 : vector<1x1xf32> to vector<16x1xf32>
    %222 = arith.subf %218, %221 : vector<16x1xf32>
    %223 = math.exp %222 : vector<16x1xf32>
    %cst_76 = arith.constant dense<0.000000e+00> : vector<1xf32>
    %224 = vector.multi_reduction <add>, %223, %cst_76 [0] : vector<16x1xf32> to vector<1xf32>
    %225 = vector.shape_cast %224 : vector<1xf32> to vector<1x1xf32>
    %226 = tpu.reciprocal %225 {approx = true} : vector<1x1xf32> -> vector<1x1xf32>
    %227 = vector.broadcast %226 : vector<1x1xf32> to vector<16x1xf32>
    %228 = arith.mulf %223, %227 : vector<16x1xf32>
    %229 = vector.broadcast %228 : vector<16x1xf32> to vector<16x8xf32>
    %230 = arith.mulf %229, %216 : vector<16x8xf32>
    %cst_77 = arith.constant dense<0.000000e+00> : vector<8xf32>
    %231 = vector.multi_reduction <add>, %230, %cst_77 [0] : vector<16x8xf32> to vector<8xf32>
    %232 = vector.shape_cast %231 : vector<8xf32> to vector<1x8xf32>
    %233 = vector.extract_strided_slice %167 {offsets = [16, 0], sizes = [16, 8], strides = [1, 1]} : vector<32x8xf32> to vector<16x8xf32>
    %cst_78 = arith.constant dense<0.000000e+00> : vector<16xf32>
    %234 = vector.multi_reduction <add>, %233, %cst_78 [1] : vector<16x8xf32> to vector<16xf32>
    %235 = vector.shape_cast %234 : vector<16xf32> to vector<16x1xf32>
    %cst_79 = arith.constant dense<0.000000e+00> : vector<1xf32>
    %236 = vector.multi_reduction <add>, %235, %cst_79 [0] : vector<16x1xf32> to vector<1xf32>
    %237 = vector.shape_cast %236 : vector<1xf32> to vector<1x1xf32>
    %cst_80 = arith.constant 7.812500e-03 : f32
    %238 = vector.broadcast %cst_80 : f32 to vector<1x1xf32>
    %239 = arith.mulf %237, %238 : vector<1x1xf32>
    %240 = vector.broadcast %239 : vector<1x1xf32> to vector<16x8xf32>
    %241 = arith.subf %233, %240 : vector<16x8xf32>
    %242 = arith.mulf %241, %241 : vector<16x8xf32>
    %cst_81 = arith.constant dense<0.000000e+00> : vector<16xf32>
    %243 = vector.multi_reduction <add>, %242, %cst_81 [1] : vector<16x8xf32> to vector<16xf32>
    %244 = vector.shape_cast %243 : vector<16xf32> to vector<16x1xf32>
    %cst_82 = arith.constant dense<0.000000e+00> : vector<1xf32>
    %245 = vector.multi_reduction <add>, %244, %cst_82 [0] : vector<16x1xf32> to vector<1xf32>
    %246 = vector.shape_cast %245 : vector<1xf32> to vector<1x1xf32>
    %cst_83 = arith.constant 7.812500e-03 : f32
    %247 = vector.broadcast %cst_83 : f32 to vector<1x1xf32>
    %248 = arith.mulf %246, %247 : vector<1x1xf32>
    %cst_84 = arith.constant 9.99999974E-6 : f32
    %249 = vector.broadcast %cst_84 : f32 to vector<1x1xf32>
    %250 = arith.addf %248, %249 : vector<1x1xf32>
    %251 = math.rsqrt %250 : vector<1x1xf32>
    %252 = vector.broadcast %251 : vector<1x1xf32> to vector<16x8xf32>
    %253 = arith.mulf %241, %252 : vector<16x8xf32>
    %254 = arith.mulf %253, %169 : vector<16x8xf32>
    %255 = arith.addf %254, %171 : vector<16x8xf32>
    %cst_85 = arith.constant dense<0.000000e+00> : vector<16xf32>
    %256 = vector.multi_reduction <add>, %255, %cst_85 [1] : vector<16x8xf32> to vector<16xf32>
    %257 = vector.shape_cast %256 : vector<16xf32> to vector<16x1xf32>
    %cst_86 = arith.constant 8.000000e+00 : f32
    %258 = vector.broadcast %cst_86 : f32 to vector<16x1xf32>
    %259 = arith.divf %257, %258 : vector<16x1xf32>
    %260 = vector.broadcast %259 : vector<16x1xf32> to vector<16x8xf32>
    %261 = arith.subf %255, %260 : vector<16x8xf32>
    %262 = arith.mulf %261, %261 : vector<16x8xf32>
    %cst_87 = arith.constant dense<0.000000e+00> : vector<16xf32>
    %263 = vector.multi_reduction <add>, %262, %cst_87 [1] : vector<16x8xf32> to vector<16xf32>
    %264 = vector.shape_cast %263 : vector<16xf32> to vector<16x1xf32>
    %cst_88 = arith.constant 8.000000e+00 : f32
    %265 = vector.broadcast %cst_88 : f32 to vector<16x1xf32>
    %266 = arith.divf %264, %265 : vector<16x1xf32>
    %267 = vector.broadcast %259 : vector<16x1xf32> to vector<16x8xf32>
    %268 = arith.subf %255, %267 : vector<16x8xf32>
    %cst_89 = arith.constant 9.99999974E-6 : f32
    %269 = vector.broadcast %cst_89 : f32 to vector<16x1xf32>
    %270 = arith.addf %266, %269 : vector<16x1xf32>
    %271 = math.rsqrt %270 : vector<16x1xf32>
    %272 = vector.broadcast %271 : vector<16x1xf32> to vector<16x8xf32>
    %273 = arith.mulf %268, %272 : vector<16x8xf32>
    %274 = vector.broadcast %1 : vector<1x8xf32> to vector<16x8xf32>
    %275 = arith.mulf %273, %274 : vector<16x8xf32>
    %276 = vector.broadcast %3 : vector<1x8xf32> to vector<16x8xf32>
    %277 = arith.addf %275, %276 : vector<16x8xf32>
    %278 = math.tanh %277 : vector<16x8xf32>
    %cst_90 = arith.constant dense<0.000000e+00> : vector<16x1xf32>
    %279 = tpu.matmul %278, %5, %cst_90 {dimension_numbers = #tpu.dot_dimension_numbers<[1], [0], [0], [1], [0, 0, 1, 1], [], []>} : vector<16x8xf32>, vector<8x1xf32>, vector<16x1xf32> -> vector<16x1xf32>
    %cst_91 = arith.constant dense<0xFF800000> : vector<1xf32>
    %280 = vector.multi_reduction <maximumf>, %279, %cst_91 [0] : vector<16x1xf32> to vector<1xf32>
    %281 = vector.shape_cast %280 : vector<1xf32> to vector<1x1xf32>
    %282 = vector.broadcast %281 : vector<1x1xf32> to vector<16x1xf32>
    %283 = arith.subf %279, %282 : vector<16x1xf32>
    %284 = math.exp %283 : vector<16x1xf32>
    %cst_92 = arith.constant dense<0.000000e+00> : vector<1xf32>
    %285 = vector.multi_reduction <add>, %284, %cst_92 [0] : vector<16x1xf32> to vector<1xf32>
    %286 = vector.shape_cast %285 : vector<1xf32> to vector<1x1xf32>
    %287 = tpu.reciprocal %286 {approx = true} : vector<1x1xf32> -> vector<1x1xf32>
    %288 = vector.broadcast %287 : vector<1x1xf32> to vector<16x1xf32>
    %289 = arith.mulf %284, %288 : vector<16x1xf32>
    %290 = vector.broadcast %289 : vector<16x1xf32> to vector<16x8xf32>
    %291 = arith.mulf %290, %277 : vector<16x8xf32>
    %cst_93 = arith.constant dense<0.000000e+00> : vector<8xf32>
    %292 = vector.multi_reduction <add>, %291, %cst_93 [0] : vector<16x8xf32> to vector<8xf32>
    %293 = vector.shape_cast %292 : vector<8xf32> to vector<1x8xf32>
    %c32 = arith.constant 32 : index
    %c0_94 = arith.constant 0 : index
    %294 = vector.load %arg0[%c32, %c0_94] : memref<64x128xf32, #tpu.memory_space<vmem>>, vector<16x128xf32>
    %c408 = arith.constant 408 : index
    %c0_95 = arith.constant 0 : index
    %295 = vector.load %arg1[%c408, %c0_95] : memref<1056x128xf32, #tpu.memory_space<vmem>>, vector<128x128xf32>
    %296 = vector.extract_strided_slice %295 {offsets = [0, 0], sizes = [128, 8], strides = [1, 1]} : vector<128x128xf32> to vector<128x8xf32>
    %cst_96 = arith.constant dense<0.000000e+00> : vector<16x8xf32>
    %297 = tpu.matmul %294, %296, %cst_96 {dimension_numbers = #tpu.dot_dimension_numbers<[1], [0], [0], [1], [0, 0, 1, 1], [], []>} : vector<16x128xf32>, vector<128x8xf32>, vector<16x8xf32> -> vector<16x8xf32>
    %c536 = arith.constant 536 : index
    %c0_97 = arith.constant 0 : index
    %298 = vector.load %arg1[%c536, %c0_97] : memref<1056x128xf32, #tpu.memory_space<vmem>>, vector<8x128xf32>
    %299 = vector.extract_strided_slice %298 {offsets = [0, 0], sizes = [1, 8], strides = [1, 1]} : vector<8x128xf32> to vector<1x8xf32>
    %c544 = arith.constant 544 : index
    %c0_98 = arith.constant 0 : index
    %300 = vector.load %arg1[%c544, %c0_98] : memref<1056x128xf32, #tpu.memory_space<vmem>>, vector<8x128xf32>
    %301 = vector.extract_strided_slice %300 {offsets = [0, 0], sizes = [1, 8], strides = [1, 1]} : vector<8x128xf32> to vector<1x8xf32>
    %cst_99 = arith.constant dense<0.000000e+00> : vector<16xf32>
    %302 = vector.multi_reduction <add>, %297, %cst_99 [1] : vector<16x8xf32> to vector<16xf32>
    %303 = vector.shape_cast %302 : vector<16xf32> to vector<16x1xf32>
    %cst_100 = arith.constant 8.000000e+00 : f32
    %304 = vector.broadcast %cst_100 : f32 to vector<16x1xf32>
    %305 = arith.divf %303, %304 : vector<16x1xf32>
    %306 = vector.broadcast %305 : vector<16x1xf32> to vector<16x8xf32>
    %307 = arith.subf %297, %306 : vector<16x8xf32>
    %308 = arith.mulf %307, %307 : vector<16x8xf32>
    %cst_101 = arith.constant dense<0.000000e+00> : vector<16xf32>
    %309 = vector.multi_reduction <add>, %308, %cst_101 [1] : vector<16x8xf32> to vector<16xf32>
    %310 = vector.shape_cast %309 : vector<16xf32> to vector<16x1xf32>
    %cst_102 = arith.constant 8.000000e+00 : f32
    %311 = vector.broadcast %cst_102 : f32 to vector<16x1xf32>
    %312 = arith.divf %310, %311 : vector<16x1xf32>
    %313 = vector.broadcast %305 : vector<16x1xf32> to vector<16x8xf32>
    %314 = arith.subf %297, %313 : vector<16x8xf32>
    %cst_103 = arith.constant 9.99999974E-6 : f32
    %315 = vector.broadcast %cst_103 : f32 to vector<16x1xf32>
    %316 = arith.addf %312, %315 : vector<16x1xf32>
    %317 = math.rsqrt %316 : vector<16x1xf32>
    %318 = vector.broadcast %317 : vector<16x1xf32> to vector<16x8xf32>
    %319 = arith.mulf %314, %318 : vector<16x8xf32>
    %320 = vector.broadcast %299 : vector<1x8xf32> to vector<16x8xf32>
    %321 = arith.mulf %319, %320 : vector<16x8xf32>
    %322 = vector.broadcast %301 : vector<1x8xf32> to vector<16x8xf32>
    %323 = arith.addf %321, %322 : vector<16x8xf32>
    %c552 = arith.constant 552 : index
    %c0_104 = arith.constant 0 : index
    %324 = vector.load %arg1[%c552, %c0_104] : memref<1056x128xf32, #tpu.memory_space<vmem>>, vector<32x128xf32>
    %325 = vector.extract_strided_slice %324 {offsets = [0, 0], sizes = [32, 16], strides = [1, 1]} : vector<32x128xf32> to vector<32x16xf32>
    %cst_105 = arith.constant dense<0.000000e+00> : vector<32x8xf32>
    %326 = tpu.matmul %325, %323, %cst_105 {dimension_numbers = #tpu.dot_dimension_numbers<[1], [0], [0], [1], [0, 0, 1, 1], [], []>} : vector<32x16xf32>, vector<16x8xf32>, vector<32x8xf32> -> vector<32x8xf32>
    %c584 = arith.constant 584 : index
    %c0_106 = arith.constant 0 : index
    %327 = vector.load %arg1[%c584, %c0_106] : memref<1056x128xf32, #tpu.memory_space<vmem>>, vector<32x128xf32>
    %328 = vector.extract_strided_slice %327 {offsets = [0, 0], sizes = [32, 1], strides = [1, 1]} : vector<32x128xf32> to vector<32x1xf32>
    %329 = vector.broadcast %328 : vector<32x1xf32> to vector<32x8xf32>
    %330 = arith.addf %326, %329 : vector<32x8xf32>
    %cst_107 = arith.constant 5.000000e-01 : f32
    %331 = vector.broadcast %cst_107 : f32 to vector<32x8xf32>
    %332 = arith.mulf %331, %330 : vector<32x8xf32>
    %cst_108 = arith.constant 0.707106769 : f32
    %333 = vector.broadcast %cst_108 : f32 to vector<32x8xf32>
    %334 = arith.mulf %330, %333 : vector<32x8xf32>
    %cst_109 = arith.constant 0.000000e+00 : f32
    %335 = vector.broadcast %cst_109 : f32 to vector<32x8xf32>
    %336 = arith.cmpf oge, %334, %335 : vector<32x8xf32>
    %cst_110 = arith.constant 1.000000e+00 : f32
    %cst_111 = arith.constant -1.000000e+00 : f32
    %337 = vector.broadcast %cst_110 : f32 to vector<32x8xf32>
    %338 = vector.broadcast %cst_111 : f32 to vector<32x8xf32>
    %339 = arith.select %336, %337, %338 : vector<32x8xi1>, vector<32x8xf32>
    %340 = math.absf %334 : vector<32x8xf32>
    %cst_112 = arith.constant 0.327591091 : f32
    %341 = vector.broadcast %cst_112 : f32 to vector<32x8xf32>
    %342 = arith.mulf %341, %340 : vector<32x8xf32>
    %cst_113 = arith.constant 1.000000e+00 : f32
    %343 = vector.broadcast %cst_113 : f32 to vector<32x8xf32>
    %344 = arith.addf %343, %342 : vector<32x8xf32>
    %345 = tpu.reciprocal %344 {approx = true} : vector<32x8xf32> -> vector<32x8xf32>
    %cst_114 = arith.constant 1.06140542 : f32
    %346 = vector.broadcast %cst_114 : f32 to vector<32x8xf32>
    %347 = arith.mulf %346, %345 : vector<32x8xf32>
    %cst_115 = arith.constant -1.45315206 : f32
    %348 = vector.broadcast %cst_115 : f32 to vector<32x8xf32>
    %349 = arith.addf %347, %348 : vector<32x8xf32>
    %350 = arith.mulf %349, %345 : vector<32x8xf32>
    %cst_116 = arith.constant 1.42141378 : f32
    %351 = vector.broadcast %cst_116 : f32 to vector<32x8xf32>
    %352 = arith.addf %350, %351 : vector<32x8xf32>
    %353 = arith.mulf %352, %345 : vector<32x8xf32>
    %cst_117 = arith.constant -0.284496725 : f32
    %354 = vector.broadcast %cst_117 : f32 to vector<32x8xf32>
    %355 = arith.addf %353, %354 : vector<32x8xf32>
    %356 = arith.mulf %355, %345 : vector<32x8xf32>
    %cst_118 = arith.constant 0.254829586 : f32
    %357 = vector.broadcast %cst_118 : f32 to vector<32x8xf32>
    %358 = arith.addf %356, %357 : vector<32x8xf32>
    %359 = arith.mulf %358, %345 : vector<32x8xf32>
    %cst_119 = arith.constant 0.000000e+00 : f32
    %360 = vector.broadcast %cst_119 : f32 to vector<32x8xf32>
    %361 = arith.subf %360, %340 : vector<32x8xf32>
    %362 = arith.mulf %361, %340 : vector<32x8xf32>
    %363 = math.exp %362 : vector<32x8xf32>
    %364 = arith.mulf %359, %363 : vector<32x8xf32>
    %cst_120 = arith.constant 1.000000e+00 : f32
    %365 = vector.broadcast %cst_120 : f32 to vector<32x8xf32>
    %366 = arith.subf %365, %364 : vector<32x8xf32>
    %367 = arith.mulf %339, %366 : vector<32x8xf32>
    %cst_121 = arith.constant 1.000000e+00 : f32
    %368 = vector.broadcast %cst_121 : f32 to vector<32x8xf32>
    %369 = arith.addf %368, %367 : vector<32x8xf32>
    %370 = arith.mulf %332, %369 : vector<32x8xf32>
    %c616 = arith.constant 616 : index
    %c0_122 = arith.constant 0 : index
    %371 = vector.load %arg1[%c616, %c0_122] : memref<1056x128xf32, #tpu.memory_space<vmem>>, vector<16x128xf32>
    %372 = vector.extract_strided_slice %371 {offsets = [0, 0], sizes = [16, 32], strides = [1, 1]} : vector<16x128xf32> to vector<16x32xf32>
    %cst_123 = arith.constant dense<0.000000e+00> : vector<16x8xf32>
    %373 = tpu.matmul %372, %370, %cst_123 {dimension_numbers = #tpu.dot_dimension_numbers<[1], [0], [0], [1], [0, 0, 1, 1], [], []>} : vector<16x32xf32>, vector<32x8xf32>, vector<16x8xf32> -> vector<16x8xf32>
    %374 = arith.addf %297, %373 : vector<16x8xf32>
    %c632 = arith.constant 632 : index
    %c0_124 = arith.constant 0 : index
    %375 = vector.load %arg1[%c632, %c0_124] : memref<1056x128xf32, #tpu.memory_space<vmem>>, vector<16x128xf32>
    %376 = vector.extract_strided_slice %375 {offsets = [0, 0], sizes = [16, 1], strides = [1, 1]} : vector<16x128xf32> to vector<16x1xf32>
    %377 = vector.broadcast %376 : vector<16x1xf32> to vector<16x8xf32>
    %378 = arith.addf %374, %377 : vector<16x8xf32>
    %cst_125 = arith.constant dense<0.000000e+00> : vector<16xf32>
    %379 = vector.multi_reduction <add>, %378, %cst_125 [1] : vector<16x8xf32> to vector<16xf32>
    %380 = vector.shape_cast %379 : vector<16xf32> to vector<16x1xf32>
    %cst_126 = arith.constant 8.000000e+00 : f32
    %381 = vector.broadcast %cst_126 : f32 to vector<16x1xf32>
    %382 = arith.divf %380, %381 : vector<16x1xf32>
    %383 = vector.broadcast %382 : vector<16x1xf32> to vector<16x8xf32>
    %384 = arith.subf %378, %383 : vector<16x8xf32>
    %385 = arith.mulf %384, %384 : vector<16x8xf32>
    %cst_127 = arith.constant dense<0.000000e+00> : vector<16xf32>
    %386 = vector.multi_reduction <add>, %385, %cst_127 [1] : vector<16x8xf32> to vector<16xf32>
    %387 = vector.shape_cast %386 : vector<16xf32> to vector<16x1xf32>
    %cst_128 = arith.constant 8.000000e+00 : f32
    %388 = vector.broadcast %cst_128 : f32 to vector<16x1xf32>
    %389 = arith.divf %387, %388 : vector<16x1xf32>
    %390 = vector.broadcast %382 : vector<16x1xf32> to vector<16x8xf32>
    %391 = arith.subf %378, %390 : vector<16x8xf32>
    %cst_129 = arith.constant 9.99999974E-6 : f32
    %392 = vector.broadcast %cst_129 : f32 to vector<16x1xf32>
    %393 = arith.addf %389, %392 : vector<16x1xf32>
    %394 = math.rsqrt %393 : vector<16x1xf32>
    %395 = vector.broadcast %394 : vector<16x1xf32> to vector<16x8xf32>
    %396 = arith.mulf %391, %395 : vector<16x8xf32>
    %397 = vector.broadcast %299 : vector<1x8xf32> to vector<16x8xf32>
    %398 = arith.mulf %396, %397 : vector<16x8xf32>
    %399 = vector.broadcast %301 : vector<1x8xf32> to vector<16x8xf32>
    %400 = arith.addf %398, %399 : vector<16x8xf32>
    %c648 = arith.constant 648 : index
    %c0_130 = arith.constant 0 : index
    %401 = vector.load %arg1[%c648, %c0_130] : memref<1056x128xf32, #tpu.memory_space<vmem>>, vector<8x128xf32>
    %402 = vector.extract_strided_slice %401 {offsets = [0, 0], sizes = [8, 16], strides = [1, 1]} : vector<8x128xf32> to vector<8x16xf32>
    %cst_131 = arith.constant dense<0.000000e+00> : vector<16x16xf32>
    %403 = tpu.matmul %400, %402, %cst_131 {dimension_numbers = #tpu.dot_dimension_numbers<[1], [0], [0], [1], [0, 0, 1, 1], [], []>} : vector<16x8xf32>, vector<8x16xf32>, vector<16x16xf32> -> vector<16x16xf32>
    %c656 = arith.constant 656 : index
    %c0_132 = arith.constant 0 : index
    %404 = vector.load %arg1[%c656, %c0_132] : memref<1056x128xf32, #tpu.memory_space<vmem>>, vector<8x128xf32>
    %405 = vector.extract_strided_slice %404 {offsets = [0, 0], sizes = [1, 16], strides = [1, 1]} : vector<8x128xf32> to vector<1x16xf32>
    %406 = vector.broadcast %405 : vector<1x16xf32> to vector<16x16xf32>
    %407 = arith.addf %403, %406 : vector<16x16xf32>
    %cst_133 = arith.constant 5.000000e-01 : f32
    %408 = vector.broadcast %cst_133 : f32 to vector<16x16xf32>
    %409 = arith.mulf %408, %407 : vector<16x16xf32>
    %cst_134 = arith.constant 0.707106769 : f32
    %410 = vector.broadcast %cst_134 : f32 to vector<16x16xf32>
    %411 = arith.mulf %407, %410 : vector<16x16xf32>
    %cst_135 = arith.constant 0.000000e+00 : f32
    %412 = vector.broadcast %cst_135 : f32 to vector<16x16xf32>
    %413 = arith.cmpf oge, %411, %412 : vector<16x16xf32>
    %cst_136 = arith.constant 1.000000e+00 : f32
    %cst_137 = arith.constant -1.000000e+00 : f32
    %414 = vector.broadcast %cst_136 : f32 to vector<16x16xf32>
    %415 = vector.broadcast %cst_137 : f32 to vector<16x16xf32>
    %416 = arith.select %413, %414, %415 : vector<16x16xi1>, vector<16x16xf32>
    %417 = math.absf %411 : vector<16x16xf32>
    %cst_138 = arith.constant 0.327591091 : f32
    %418 = vector.broadcast %cst_138 : f32 to vector<16x16xf32>
    %419 = arith.mulf %418, %417 : vector<16x16xf32>
    %cst_139 = arith.constant 1.000000e+00 : f32
    %420 = vector.broadcast %cst_139 : f32 to vector<16x16xf32>
    %421 = arith.addf %420, %419 : vector<16x16xf32>
    %422 = tpu.reciprocal %421 {approx = true} : vector<16x16xf32> -> vector<16x16xf32>
    %cst_140 = arith.constant 1.06140542 : f32
    %423 = vector.broadcast %cst_140 : f32 to vector<16x16xf32>
    %424 = arith.mulf %423, %422 : vector<16x16xf32>
    %cst_141 = arith.constant -1.45315206 : f32
    %425 = vector.broadcast %cst_141 : f32 to vector<16x16xf32>
    %426 = arith.addf %424, %425 : vector<16x16xf32>
    %427 = arith.mulf %426, %422 : vector<16x16xf32>
    %cst_142 = arith.constant 1.42141378 : f32
    %428 = vector.broadcast %cst_142 : f32 to vector<16x16xf32>
    %429 = arith.addf %427, %428 : vector<16x16xf32>
    %430 = arith.mulf %429, %422 : vector<16x16xf32>
    %cst_143 = arith.constant -0.284496725 : f32
    %431 = vector.broadcast %cst_143 : f32 to vector<16x16xf32>
    %432 = arith.addf %430, %431 : vector<16x16xf32>
    %433 = arith.mulf %432, %422 : vector<16x16xf32>
    %cst_144 = arith.constant 0.254829586 : f32
    %434 = vector.broadcast %cst_144 : f32 to vector<16x16xf32>
    %435 = arith.addf %433, %434 : vector<16x16xf32>
    %436 = arith.mulf %435, %422 : vector<16x16xf32>
    %cst_145 = arith.constant 0.000000e+00 : f32
    %437 = vector.broadcast %cst_145 : f32 to vector<16x16xf32>
    %438 = arith.subf %437, %417 : vector<16x16xf32>
    %439 = arith.mulf %438, %417 : vector<16x16xf32>
    %440 = math.exp %439 : vector<16x16xf32>
    %441 = arith.mulf %436, %440 : vector<16x16xf32>
    %cst_146 = arith.constant 1.000000e+00 : f32
    %442 = vector.broadcast %cst_146 : f32 to vector<16x16xf32>
    %443 = arith.subf %442, %441 : vector<16x16xf32>
    %444 = arith.mulf %416, %443 : vector<16x16xf32>
    %cst_147 = arith.constant 1.000000e+00 : f32
    %445 = vector.broadcast %cst_147 : f32 to vector<16x16xf32>
    %446 = arith.addf %445, %444 : vector<16x16xf32>
    %447 = arith.mulf %409, %446 : vector<16x16xf32>
    %c664 = arith.constant 664 : index
    %c0_148 = arith.constant 0 : index
    %448 = vector.load %arg1[%c664, %c0_148] : memref<1056x128xf32, #tpu.memory_space<vmem>>, vector<16x128xf32>
    %449 = vector.extract_strided_slice %448 {offsets = [0, 0], sizes = [16, 8], strides = [1, 1]} : vector<16x128xf32> to vector<16x8xf32>
    %cst_149 = arith.constant dense<0.000000e+00> : vector<16x8xf32>
    %450 = tpu.matmul %447, %449, %cst_149 {dimension_numbers = #tpu.dot_dimension_numbers<[1], [0], [0], [1], [0, 0, 1, 1], [], []>} : vector<16x16xf32>, vector<16x8xf32>, vector<16x8xf32> -> vector<16x8xf32>
    %451 = arith.addf %378, %450 : vector<16x8xf32>
    %c680 = arith.constant 680 : index
    %c0_150 = arith.constant 0 : index
    %452 = vector.load %arg1[%c680, %c0_150] : memref<1056x128xf32, #tpu.memory_space<vmem>>, vector<8x128xf32>
    %453 = vector.extract_strided_slice %452 {offsets = [0, 0], sizes = [1, 8], strides = [1, 1]} : vector<8x128xf32> to vector<1x8xf32>
    %454 = vector.broadcast %453 : vector<1x8xf32> to vector<16x8xf32>
    %455 = arith.addf %451, %454 : vector<16x8xf32>
    %c688 = arith.constant 688 : index
    %c0_151 = arith.constant 0 : index
    %456 = vector.load %arg1[%c688, %c0_151] : memref<1056x128xf32, #tpu.memory_space<vmem>>, vector<8x128xf32>
    %457 = vector.extract_strided_slice %456 {offsets = [0, 0], sizes = [8, 8], strides = [1, 1]} : vector<8x128xf32> to vector<8x8xf32>
    %c696 = arith.constant 696 : index
    %c0_152 = arith.constant 0 : index
    %458 = vector.load %arg1[%c696, %c0_152] : memref<1056x128xf32, #tpu.memory_space<vmem>>, vector<8x128xf32>
    %459 = vector.extract_strided_slice %458 {offsets = [0, 0], sizes = [8, 8], strides = [1, 1]} : vector<8x128xf32> to vector<8x8xf32>
    %460 = vector.extract_strided_slice %455 {offsets = [0, 0], sizes = [8, 8], strides = [1, 1]} : vector<16x8xf32> to vector<8x8xf32>
    %cst_153 = arith.constant dense<0.000000e+00> : vector<8xf32>
    %461 = vector.multi_reduction <add>, %460, %cst_153 [1] : vector<8x8xf32> to vector<8xf32>
    %462 = vector.shape_cast %461 : vector<8xf32> to vector<8x1xf32>
    %cst_154 = arith.constant dense<0.000000e+00> : vector<1xf32>
    %463 = vector.multi_reduction <add>, %462, %cst_154 [0] : vector<8x1xf32> to vector<1xf32>
    %464 = vector.shape_cast %463 : vector<1xf32> to vector<1x1xf32>
    %cst_155 = arith.constant 1.562500e-02 : f32
    %465 = vector.broadcast %cst_155 : f32 to vector<1x1xf32>
    %466 = arith.mulf %464, %465 : vector<1x1xf32>
    %467 = vector.broadcast %466 : vector<1x1xf32> to vector<8x8xf32>
    %468 = arith.subf %460, %467 : vector<8x8xf32>
    %469 = arith.mulf %468, %468 : vector<8x8xf32>
    %cst_156 = arith.constant dense<0.000000e+00> : vector<8xf32>
    %470 = vector.multi_reduction <add>, %469, %cst_156 [1] : vector<8x8xf32> to vector<8xf32>
    %471 = vector.shape_cast %470 : vector<8xf32> to vector<8x1xf32>
    %cst_157 = arith.constant dense<0.000000e+00> : vector<1xf32>
    %472 = vector.multi_reduction <add>, %471, %cst_157 [0] : vector<8x1xf32> to vector<1xf32>
    %473 = vector.shape_cast %472 : vector<1xf32> to vector<1x1xf32>
    %cst_158 = arith.constant 1.562500e-02 : f32
    %474 = vector.broadcast %cst_158 : f32 to vector<1x1xf32>
    %475 = arith.mulf %473, %474 : vector<1x1xf32>
    %cst_159 = arith.constant 9.99999974E-6 : f32
    %476 = vector.broadcast %cst_159 : f32 to vector<1x1xf32>
    %477 = arith.addf %475, %476 : vector<1x1xf32>
    %478 = math.rsqrt %477 : vector<1x1xf32>
    %479 = vector.broadcast %478 : vector<1x1xf32> to vector<8x8xf32>
    %480 = arith.mulf %468, %479 : vector<8x8xf32>
    %481 = arith.mulf %480, %457 : vector<8x8xf32>
    %482 = arith.addf %481, %459 : vector<8x8xf32>
    %cst_160 = arith.constant dense<0.000000e+00> : vector<8xf32>
    %483 = vector.multi_reduction <add>, %482, %cst_160 [1] : vector<8x8xf32> to vector<8xf32>
    %484 = vector.shape_cast %483 : vector<8xf32> to vector<8x1xf32>
    %cst_161 = arith.constant 8.000000e+00 : f32
    %485 = vector.broadcast %cst_161 : f32 to vector<8x1xf32>
    %486 = arith.divf %484, %485 : vector<8x1xf32>
    %487 = vector.broadcast %486 : vector<8x1xf32> to vector<8x8xf32>
    %488 = arith.subf %482, %487 : vector<8x8xf32>
    %489 = arith.mulf %488, %488 : vector<8x8xf32>
    %cst_162 = arith.constant dense<0.000000e+00> : vector<8xf32>
    %490 = vector.multi_reduction <add>, %489, %cst_162 [1] : vector<8x8xf32> to vector<8xf32>
    %491 = vector.shape_cast %490 : vector<8xf32> to vector<8x1xf32>
    %cst_163 = arith.constant 8.000000e+00 : f32
    %492 = vector.broadcast %cst_163 : f32 to vector<8x1xf32>
    %493 = arith.divf %491, %492 : vector<8x1xf32>
    %494 = vector.broadcast %486 : vector<8x1xf32> to vector<8x8xf32>
    %495 = arith.subf %482, %494 : vector<8x8xf32>
    %cst_164 = arith.constant 9.99999974E-6 : f32
    %496 = vector.broadcast %cst_164 : f32 to vector<8x1xf32>
    %497 = arith.addf %493, %496 : vector<8x1xf32>
    %498 = math.rsqrt %497 : vector<8x1xf32>
    %499 = vector.broadcast %498 : vector<8x1xf32> to vector<8x8xf32>
    %500 = arith.mulf %495, %499 : vector<8x8xf32>
    %501 = vector.broadcast %1 : vector<1x8xf32> to vector<8x8xf32>
    %502 = arith.mulf %500, %501 : vector<8x8xf32>
    %503 = vector.broadcast %3 : vector<1x8xf32> to vector<8x8xf32>
    %504 = arith.addf %502, %503 : vector<8x8xf32>
    %505 = math.tanh %504 : vector<8x8xf32>
    %cst_165 = arith.constant dense<0.000000e+00> : vector<8x1xf32>
    %506 = tpu.matmul %505, %5, %cst_165 {dimension_numbers = #tpu.dot_dimension_numbers<[1], [0], [0], [1], [0, 0, 1, 1], [], []>} : vector<8x8xf32>, vector<8x1xf32>, vector<8x1xf32> -> vector<8x1xf32>
    %cst_166 = arith.constant dense<0xFF800000> : vector<1xf32>
    %507 = vector.multi_reduction <maximumf>, %506, %cst_166 [0] : vector<8x1xf32> to vector<1xf32>
    %508 = vector.shape_cast %507 : vector<1xf32> to vector<1x1xf32>
    %509 = vector.broadcast %508 : vector<1x1xf32> to vector<8x1xf32>
    %510 = arith.subf %506, %509 : vector<8x1xf32>
    %511 = math.exp %510 : vector<8x1xf32>
    %cst_167 = arith.constant dense<0.000000e+00> : vector<1xf32>
    %512 = vector.multi_reduction <add>, %511, %cst_167 [0] : vector<8x1xf32> to vector<1xf32>
    %513 = vector.shape_cast %512 : vector<1xf32> to vector<1x1xf32>
    %514 = tpu.reciprocal %513 {approx = true} : vector<1x1xf32> -> vector<1x1xf32>
    %515 = vector.broadcast %514 : vector<1x1xf32> to vector<8x1xf32>
    %516 = arith.mulf %511, %515 : vector<8x1xf32>
    %517 = vector.broadcast %516 : vector<8x1xf32> to vector<8x8xf32>
    %518 = arith.mulf %517, %504 : vector<8x8xf32>
    %cst_168 = arith.constant dense<0.000000e+00> : vector<8xf32>
    %519 = vector.multi_reduction <add>, %518, %cst_168 [0] : vector<8x8xf32> to vector<8xf32>
    %520 = vector.shape_cast %519 : vector<8xf32> to vector<1x8xf32>
    %521 = vector.extract_strided_slice %455 {offsets = [8, 0], sizes = [8, 8], strides = [1, 1]} : vector<16x8xf32> to vector<8x8xf32>
    %cst_169 = arith.constant dense<0.000000e+00> : vector<8xf32>
    %522 = vector.multi_reduction <add>, %521, %cst_169 [1] : vector<8x8xf32> to vector<8xf32>
    %523 = vector.shape_cast %522 : vector<8xf32> to vector<8x1xf32>
    %cst_170 = arith.constant dense<0.000000e+00> : vector<1xf32>
    %524 = vector.multi_reduction <add>, %523, %cst_170 [0] : vector<8x1xf32> to vector<1xf32>
    %525 = vector.shape_cast %524 : vector<1xf32> to vector<1x1xf32>
    %cst_171 = arith.constant 1.562500e-02 : f32
    %526 = vector.broadcast %cst_171 : f32 to vector<1x1xf32>
    %527 = arith.mulf %525, %526 : vector<1x1xf32>
    %528 = vector.broadcast %527 : vector<1x1xf32> to vector<8x8xf32>
    %529 = arith.subf %521, %528 : vector<8x8xf32>
    %530 = arith.mulf %529, %529 : vector<8x8xf32>
    %cst_172 = arith.constant dense<0.000000e+00> : vector<8xf32>
    %531 = vector.multi_reduction <add>, %530, %cst_172 [1] : vector<8x8xf32> to vector<8xf32>
    %532 = vector.shape_cast %531 : vector<8xf32> to vector<8x1xf32>
    %cst_173 = arith.constant dense<0.000000e+00> : vector<1xf32>
    %533 = vector.multi_reduction <add>, %532, %cst_173 [0] : vector<8x1xf32> to vector<1xf32>
    %534 = vector.shape_cast %533 : vector<1xf32> to vector<1x1xf32>
    %cst_174 = arith.constant 1.562500e-02 : f32
    %535 = vector.broadcast %cst_174 : f32 to vector<1x1xf32>
    %536 = arith.mulf %534, %535 : vector<1x1xf32>
    %cst_175 = arith.constant 9.99999974E-6 : f32
    %537 = vector.broadcast %cst_175 : f32 to vector<1x1xf32>
    %538 = arith.addf %536, %537 : vector<1x1xf32>
    %539 = math.rsqrt %538 : vector<1x1xf32>
    %540 = vector.broadcast %539 : vector<1x1xf32> to vector<8x8xf32>
    %541 = arith.mulf %529, %540 : vector<8x8xf32>
    %542 = arith.mulf %541, %457 : vector<8x8xf32>
    %543 = arith.addf %542, %459 : vector<8x8xf32>
    %cst_176 = arith.constant dense<0.000000e+00> : vector<8xf32>
    %544 = vector.multi_reduction <add>, %543, %cst_176 [1] : vector<8x8xf32> to vector<8xf32>
    %545 = vector.shape_cast %544 : vector<8xf32> to vector<8x1xf32>
    %cst_177 = arith.constant 8.000000e+00 : f32
    %546 = vector.broadcast %cst_177 : f32 to vector<8x1xf32>
    %547 = arith.divf %545, %546 : vector<8x1xf32>
    %548 = vector.broadcast %547 : vector<8x1xf32> to vector<8x8xf32>
    %549 = arith.subf %543, %548 : vector<8x8xf32>
    %550 = arith.mulf %549, %549 : vector<8x8xf32>
    %cst_178 = arith.constant dense<0.000000e+00> : vector<8xf32>
    %551 = vector.multi_reduction <add>, %550, %cst_178 [1] : vector<8x8xf32> to vector<8xf32>
    %552 = vector.shape_cast %551 : vector<8xf32> to vector<8x1xf32>
    %cst_179 = arith.constant 8.000000e+00 : f32
    %553 = vector.broadcast %cst_179 : f32 to vector<8x1xf32>
    %554 = arith.divf %552, %553 : vector<8x1xf32>
    %555 = vector.broadcast %547 : vector<8x1xf32> to vector<8x8xf32>
    %556 = arith.subf %543, %555 : vector<8x8xf32>
    %cst_180 = arith.constant 9.99999974E-6 : f32
    %557 = vector.broadcast %cst_180 : f32 to vector<8x1xf32>
    %558 = arith.addf %554, %557 : vector<8x1xf32>
    %559 = math.rsqrt %558 : vector<8x1xf32>
    %560 = vector.broadcast %559 : vector<8x1xf32> to vector<8x8xf32>
    %561 = arith.mulf %556, %560 : vector<8x8xf32>
    %562 = vector.broadcast %1 : vector<1x8xf32> to vector<8x8xf32>
    %563 = arith.mulf %561, %562 : vector<8x8xf32>
    %564 = vector.broadcast %3 : vector<1x8xf32> to vector<8x8xf32>
    %565 = arith.addf %563, %564 : vector<8x8xf32>
    %566 = math.tanh %565 : vector<8x8xf32>
    %cst_181 = arith.constant dense<0.000000e+00> : vector<8x1xf32>
    %567 = tpu.matmul %566, %5, %cst_181 {dimension_numbers = #tpu.dot_dimension_numbers<[1], [0], [0], [1], [0, 0, 1, 1], [], []>} : vector<8x8xf32>, vector<8x1xf32>, vector<8x1xf32> -> vector<8x1xf32>
    %cst_182 = arith.constant dense<0xFF800000> : vector<1xf32>
    %568 = vector.multi_reduction <maximumf>, %567, %cst_182 [0] : vector<8x1xf32> to vector<1xf32>
    %569 = vector.shape_cast %568 : vector<1xf32> to vector<1x1xf32>
    %570 = vector.broadcast %569 : vector<1x1xf32> to vector<8x1xf32>
    %571 = arith.subf %567, %570 : vector<8x1xf32>
    %572 = math.exp %571 : vector<8x1xf32>
    %cst_183 = arith.constant dense<0.000000e+00> : vector<1xf32>
    %573 = vector.multi_reduction <add>, %572, %cst_183 [0] : vector<8x1xf32> to vector<1xf32>
    %574 = vector.shape_cast %573 : vector<1xf32> to vector<1x1xf32>
    %575 = tpu.reciprocal %574 {approx = true} : vector<1x1xf32> -> vector<1x1xf32>
    %576 = vector.broadcast %575 : vector<1x1xf32> to vector<8x1xf32>
    %577 = arith.mulf %572, %576 : vector<8x1xf32>
    %578 = vector.broadcast %577 : vector<8x1xf32> to vector<8x8xf32>
    %579 = arith.mulf %578, %565 : vector<8x8xf32>
    %cst_184 = arith.constant dense<0.000000e+00> : vector<8xf32>
    %580 = vector.multi_reduction <add>, %579, %cst_184 [0] : vector<8x8xf32> to vector<8xf32>
    %581 = vector.shape_cast %580 : vector<8xf32> to vector<1x8xf32>
    %c48 = arith.constant 48 : index
    %c0_185 = arith.constant 0 : index
    %582 = vector.load %arg0[%c48, %c0_185] : memref<64x128xf32, #tpu.memory_space<vmem>>, vector<8x128xf32>
    %c704 = arith.constant 704 : index
    %c0_186 = arith.constant 0 : index
    %583 = vector.load %arg1[%c704, %c0_186] : memref<1056x128xf32, #tpu.memory_space<vmem>>, vector<128x128xf32>
    %584 = vector.extract_strided_slice %583 {offsets = [0, 0], sizes = [128, 8], strides = [1, 1]} : vector<128x128xf32> to vector<128x8xf32>
    %cst_187 = arith.constant dense<0.000000e+00> : vector<8x8xf32>
    %585 = tpu.matmul %582, %584, %cst_187 {dimension_numbers = #tpu.dot_dimension_numbers<[1], [0], [0], [1], [0, 0, 1, 1], [], []>} : vector<8x128xf32>, vector<128x8xf32>, vector<8x8xf32> -> vector<8x8xf32>
    %c832 = arith.constant 832 : index
    %c0_188 = arith.constant 0 : index
    %586 = vector.load %arg1[%c832, %c0_188] : memref<1056x128xf32, #tpu.memory_space<vmem>>, vector<8x128xf32>
    %587 = vector.extract_strided_slice %586 {offsets = [0, 0], sizes = [1, 8], strides = [1, 1]} : vector<8x128xf32> to vector<1x8xf32>
    %c840 = arith.constant 840 : index
    %c0_189 = arith.constant 0 : index
    %588 = vector.load %arg1[%c840, %c0_189] : memref<1056x128xf32, #tpu.memory_space<vmem>>, vector<8x128xf32>
    %589 = vector.extract_strided_slice %588 {offsets = [0, 0], sizes = [1, 8], strides = [1, 1]} : vector<8x128xf32> to vector<1x8xf32>
    %cst_190 = arith.constant dense<0.000000e+00> : vector<8xf32>
    %590 = vector.multi_reduction <add>, %585, %cst_190 [1] : vector<8x8xf32> to vector<8xf32>
    %591 = vector.shape_cast %590 : vector<8xf32> to vector<8x1xf32>
    %cst_191 = arith.constant 8.000000e+00 : f32
    %592 = vector.broadcast %cst_191 : f32 to vector<8x1xf32>
    %593 = arith.divf %591, %592 : vector<8x1xf32>
    %594 = vector.broadcast %593 : vector<8x1xf32> to vector<8x8xf32>
    %595 = arith.subf %585, %594 : vector<8x8xf32>
    %596 = arith.mulf %595, %595 : vector<8x8xf32>
    %cst_192 = arith.constant dense<0.000000e+00> : vector<8xf32>
    %597 = vector.multi_reduction <add>, %596, %cst_192 [1] : vector<8x8xf32> to vector<8xf32>
    %598 = vector.shape_cast %597 : vector<8xf32> to vector<8x1xf32>
    %cst_193 = arith.constant 8.000000e+00 : f32
    %599 = vector.broadcast %cst_193 : f32 to vector<8x1xf32>
    %600 = arith.divf %598, %599 : vector<8x1xf32>
    %601 = vector.broadcast %593 : vector<8x1xf32> to vector<8x8xf32>
    %602 = arith.subf %585, %601 : vector<8x8xf32>
    %cst_194 = arith.constant 9.99999974E-6 : f32
    %603 = vector.broadcast %cst_194 : f32 to vector<8x1xf32>
    %604 = arith.addf %600, %603 : vector<8x1xf32>
    %605 = math.rsqrt %604 : vector<8x1xf32>
    %606 = vector.broadcast %605 : vector<8x1xf32> to vector<8x8xf32>
    %607 = arith.mulf %602, %606 : vector<8x8xf32>
    %608 = vector.broadcast %587 : vector<1x8xf32> to vector<8x8xf32>
    %609 = arith.mulf %607, %608 : vector<8x8xf32>
    %610 = vector.broadcast %589 : vector<1x8xf32> to vector<8x8xf32>
    %611 = arith.addf %609, %610 : vector<8x8xf32>
    %c848 = arith.constant 848 : index
    %c0_195 = arith.constant 0 : index
    %612 = vector.load %arg1[%c848, %c0_195] : memref<1056x128xf32, #tpu.memory_space<vmem>>, vector<16x128xf32>
    %613 = vector.extract_strided_slice %612 {offsets = [0, 0], sizes = [16, 8], strides = [1, 1]} : vector<16x128xf32> to vector<16x8xf32>
    %cst_196 = arith.constant dense<0.000000e+00> : vector<16x8xf32>
    %614 = tpu.matmul %613, %611, %cst_196 {dimension_numbers = #tpu.dot_dimension_numbers<[1], [0], [0], [1], [0, 0, 1, 1], [], []>} : vector<16x8xf32>, vector<8x8xf32>, vector<16x8xf32> -> vector<16x8xf32>
    %c864 = arith.constant 864 : index
    %c0_197 = arith.constant 0 : index
    %615 = vector.load %arg1[%c864, %c0_197] : memref<1056x128xf32, #tpu.memory_space<vmem>>, vector<16x128xf32>
    %616 = vector.extract_strided_slice %615 {offsets = [0, 0], sizes = [16, 1], strides = [1, 1]} : vector<16x128xf32> to vector<16x1xf32>
    %617 = vector.broadcast %616 : vector<16x1xf32> to vector<16x8xf32>
    %618 = arith.addf %614, %617 : vector<16x8xf32>
    %cst_198 = arith.constant 5.000000e-01 : f32
    %619 = vector.broadcast %cst_198 : f32 to vector<16x8xf32>
    %620 = arith.mulf %619, %618 : vector<16x8xf32>
    %cst_199 = arith.constant 0.707106769 : f32
    %621 = vector.broadcast %cst_199 : f32 to vector<16x8xf32>
    %622 = arith.mulf %618, %621 : vector<16x8xf32>
    %cst_200 = arith.constant 0.000000e+00 : f32
    %623 = vector.broadcast %cst_200 : f32 to vector<16x8xf32>
    %624 = arith.cmpf oge, %622, %623 : vector<16x8xf32>
    %cst_201 = arith.constant 1.000000e+00 : f32
    %cst_202 = arith.constant -1.000000e+00 : f32
    %625 = vector.broadcast %cst_201 : f32 to vector<16x8xf32>
    %626 = vector.broadcast %cst_202 : f32 to vector<16x8xf32>
    %627 = arith.select %624, %625, %626 : vector<16x8xi1>, vector<16x8xf32>
    %628 = math.absf %622 : vector<16x8xf32>
    %cst_203 = arith.constant 0.327591091 : f32
    %629 = vector.broadcast %cst_203 : f32 to vector<16x8xf32>
    %630 = arith.mulf %629, %628 : vector<16x8xf32>
    %cst_204 = arith.constant 1.000000e+00 : f32
    %631 = vector.broadcast %cst_204 : f32 to vector<16x8xf32>
    %632 = arith.addf %631, %630 : vector<16x8xf32>
    %633 = tpu.reciprocal %632 {approx = true} : vector<16x8xf32> -> vector<16x8xf32>
    %cst_205 = arith.constant 1.06140542 : f32
    %634 = vector.broadcast %cst_205 : f32 to vector<16x8xf32>
    %635 = arith.mulf %634, %633 : vector<16x8xf32>
    %cst_206 = arith.constant -1.45315206 : f32
    %636 = vector.broadcast %cst_206 : f32 to vector<16x8xf32>
    %637 = arith.addf %635, %636 : vector<16x8xf32>
    %638 = arith.mulf %637, %633 : vector<16x8xf32>
    %cst_207 = arith.constant 1.42141378 : f32
    %639 = vector.broadcast %cst_207 : f32 to vector<16x8xf32>
    %640 = arith.addf %638, %639 : vector<16x8xf32>
    %641 = arith.mulf %640, %633 : vector<16x8xf32>
    %cst_208 = arith.constant -0.284496725 : f32
    %642 = vector.broadcast %cst_208 : f32 to vector<16x8xf32>
    %643 = arith.addf %641, %642 : vector<16x8xf32>
    %644 = arith.mulf %643, %633 : vector<16x8xf32>
    %cst_209 = arith.constant 0.254829586 : f32
    %645 = vector.broadcast %cst_209 : f32 to vector<16x8xf32>
    %646 = arith.addf %644, %645 : vector<16x8xf32>
    %647 = arith.mulf %646, %633 : vector<16x8xf32>
    %cst_210 = arith.constant 0.000000e+00 : f32
    %648 = vector.broadcast %cst_210 : f32 to vector<16x8xf32>
    %649 = arith.subf %648, %628 : vector<16x8xf32>
    %650 = arith.mulf %649, %628 : vector<16x8xf32>
    %651 = math.exp %650 : vector<16x8xf32>
    %652 = arith.mulf %647, %651 : vector<16x8xf32>
    %cst_211 = arith.constant 1.000000e+00 : f32
    %653 = vector.broadcast %cst_211 : f32 to vector<16x8xf32>
    %654 = arith.subf %653, %652 : vector<16x8xf32>
    %655 = arith.mulf %627, %654 : vector<16x8xf32>
    %cst_212 = arith.constant 1.000000e+00 : f32
    %656 = vector.broadcast %cst_212 : f32 to vector<16x8xf32>
    %657 = arith.addf %656, %655 : vector<16x8xf32>
    %658 = arith.mulf %620, %657 : vector<16x8xf32>
    %c880 = arith.constant 880 : index
    %c0_213 = arith.constant 0 : index
    %659 = vector.load %arg1[%c880, %c0_213] : memref<1056x128xf32, #tpu.memory_space<vmem>>, vector<8x128xf32>
    %660 = vector.extract_strided_slice %659 {offsets = [0, 0], sizes = [8, 16], strides = [1, 1]} : vector<8x128xf32> to vector<8x16xf32>
    %cst_214 = arith.constant dense<0.000000e+00> : vector<8x8xf32>
    %661 = tpu.matmul %660, %658, %cst_214 {dimension_numbers = #tpu.dot_dimension_numbers<[1], [0], [0], [1], [0, 0, 1, 1], [], []>} : vector<8x16xf32>, vector<16x8xf32>, vector<8x8xf32> -> vector<8x8xf32>
    %662 = arith.addf %585, %661 : vector<8x8xf32>
    %c888 = arith.constant 888 : index
    %c0_215 = arith.constant 0 : index
    %663 = vector.load %arg1[%c888, %c0_215] : memref<1056x128xf32, #tpu.memory_space<vmem>>, vector<8x128xf32>
    %664 = vector.extract_strided_slice %663 {offsets = [0, 0], sizes = [8, 1], strides = [1, 1]} : vector<8x128xf32> to vector<8x1xf32>
    %665 = vector.broadcast %664 : vector<8x1xf32> to vector<8x8xf32>
    %666 = arith.addf %662, %665 : vector<8x8xf32>
    %cst_216 = arith.constant dense<0.000000e+00> : vector<8xf32>
    %667 = vector.multi_reduction <add>, %666, %cst_216 [1] : vector<8x8xf32> to vector<8xf32>
    %668 = vector.shape_cast %667 : vector<8xf32> to vector<8x1xf32>
    %cst_217 = arith.constant 8.000000e+00 : f32
    %669 = vector.broadcast %cst_217 : f32 to vector<8x1xf32>
    %670 = arith.divf %668, %669 : vector<8x1xf32>
    %671 = vector.broadcast %670 : vector<8x1xf32> to vector<8x8xf32>
    %672 = arith.subf %666, %671 : vector<8x8xf32>
    %673 = arith.mulf %672, %672 : vector<8x8xf32>
    %cst_218 = arith.constant dense<0.000000e+00> : vector<8xf32>
    %674 = vector.multi_reduction <add>, %673, %cst_218 [1] : vector<8x8xf32> to vector<8xf32>
    %675 = vector.shape_cast %674 : vector<8xf32> to vector<8x1xf32>
    %cst_219 = arith.constant 8.000000e+00 : f32
    %676 = vector.broadcast %cst_219 : f32 to vector<8x1xf32>
    %677 = arith.divf %675, %676 : vector<8x1xf32>
    %678 = vector.broadcast %670 : vector<8x1xf32> to vector<8x8xf32>
    %679 = arith.subf %666, %678 : vector<8x8xf32>
    %cst_220 = arith.constant 9.99999974E-6 : f32
    %680 = vector.broadcast %cst_220 : f32 to vector<8x1xf32>
    %681 = arith.addf %677, %680 : vector<8x1xf32>
    %682 = math.rsqrt %681 : vector<8x1xf32>
    %683 = vector.broadcast %682 : vector<8x1xf32> to vector<8x8xf32>
    %684 = arith.mulf %679, %683 : vector<8x8xf32>
    %685 = vector.broadcast %587 : vector<1x8xf32> to vector<8x8xf32>
    %686 = arith.mulf %684, %685 : vector<8x8xf32>
    %687 = vector.broadcast %589 : vector<1x8xf32> to vector<8x8xf32>
    %688 = arith.addf %686, %687 : vector<8x8xf32>
    %c896 = arith.constant 896 : index
    %c0_221 = arith.constant 0 : index
    %689 = vector.load %arg1[%c896, %c0_221] : memref<1056x128xf32, #tpu.memory_space<vmem>>, vector<8x128xf32>
    %690 = vector.extract_strided_slice %689 {offsets = [0, 0], sizes = [8, 16], strides = [1, 1]} : vector<8x128xf32> to vector<8x16xf32>
    %cst_222 = arith.constant dense<0.000000e+00> : vector<8x16xf32>
    %691 = tpu.matmul %688, %690, %cst_222 {dimension_numbers = #tpu.dot_dimension_numbers<[1], [0], [0], [1], [0, 0, 1, 1], [], []>} : vector<8x8xf32>, vector<8x16xf32>, vector<8x16xf32> -> vector<8x16xf32>
    %c904 = arith.constant 904 : index
    %c0_223 = arith.constant 0 : index
    %692 = vector.load %arg1[%c904, %c0_223] : memref<1056x128xf32, #tpu.memory_space<vmem>>, vector<8x128xf32>
    %693 = vector.extract_strided_slice %692 {offsets = [0, 0], sizes = [1, 16], strides = [1, 1]} : vector<8x128xf32> to vector<1x16xf32>
    %694 = vector.broadcast %693 : vector<1x16xf32> to vector<8x16xf32>
    %695 = arith.addf %691, %694 : vector<8x16xf32>
    %cst_224 = arith.constant 5.000000e-01 : f32
    %696 = vector.broadcast %cst_224 : f32 to vector<8x16xf32>
    %697 = arith.mulf %696, %695 : vector<8x16xf32>
    %cst_225 = arith.constant 0.707106769 : f32
    %698 = vector.broadcast %cst_225 : f32 to vector<8x16xf32>
    %699 = arith.mulf %695, %698 : vector<8x16xf32>
    %cst_226 = arith.constant 0.000000e+00 : f32
    %700 = vector.broadcast %cst_226 : f32 to vector<8x16xf32>
    %701 = arith.cmpf oge, %699, %700 : vector<8x16xf32>
    %cst_227 = arith.constant 1.000000e+00 : f32
    %cst_228 = arith.constant -1.000000e+00 : f32
    %702 = vector.broadcast %cst_227 : f32 to vector<8x16xf32>
    %703 = vector.broadcast %cst_228 : f32 to vector<8x16xf32>
    %704 = arith.select %701, %702, %703 : vector<8x16xi1>, vector<8x16xf32>
    %705 = math.absf %699 : vector<8x16xf32>
    %cst_229 = arith.constant 0.327591091 : f32
    %706 = vector.broadcast %cst_229 : f32 to vector<8x16xf32>
    %707 = arith.mulf %706, %705 : vector<8x16xf32>
    %cst_230 = arith.constant 1.000000e+00 : f32
    %708 = vector.broadcast %cst_230 : f32 to vector<8x16xf32>
    %709 = arith.addf %708, %707 : vector<8x16xf32>
    %710 = tpu.reciprocal %709 {approx = true} : vector<8x16xf32> -> vector<8x16xf32>
    %cst_231 = arith.constant 1.06140542 : f32
    %711 = vector.broadcast %cst_231 : f32 to vector<8x16xf32>
    %712 = arith.mulf %711, %710 : vector<8x16xf32>
    %cst_232 = arith.constant -1.45315206 : f32
    %713 = vector.broadcast %cst_232 : f32 to vector<8x16xf32>
    %714 = arith.addf %712, %713 : vector<8x16xf32>
    %715 = arith.mulf %714, %710 : vector<8x16xf32>
    %cst_233 = arith.constant 1.42141378 : f32
    %716 = vector.broadcast %cst_233 : f32 to vector<8x16xf32>
    %717 = arith.addf %715, %716 : vector<8x16xf32>
    %718 = arith.mulf %717, %710 : vector<8x16xf32>
    %cst_234 = arith.constant -0.284496725 : f32
    %719 = vector.broadcast %cst_234 : f32 to vector<8x16xf32>
    %720 = arith.addf %718, %719 : vector<8x16xf32>
    %721 = arith.mulf %720, %710 : vector<8x16xf32>
    %cst_235 = arith.constant 0.254829586 : f32
    %722 = vector.broadcast %cst_235 : f32 to vector<8x16xf32>
    %723 = arith.addf %721, %722 : vector<8x16xf32>
    %724 = arith.mulf %723, %710 : vector<8x16xf32>
    %cst_236 = arith.constant 0.000000e+00 : f32
    %725 = vector.broadcast %cst_236 : f32 to vector<8x16xf32>
    %726 = arith.subf %725, %705 : vector<8x16xf32>
    %727 = arith.mulf %726, %705 : vector<8x16xf32>
    %728 = math.exp %727 : vector<8x16xf32>
    %729 = arith.mulf %724, %728 : vector<8x16xf32>
    %cst_237 = arith.constant 1.000000e+00 : f32
    %730 = vector.broadcast %cst_237 : f32 to vector<8x16xf32>
    %731 = arith.subf %730, %729 : vector<8x16xf32>
    %732 = arith.mulf %704, %731 : vector<8x16xf32>
    %cst_238 = arith.constant 1.000000e+00 : f32
    %733 = vector.broadcast %cst_238 : f32 to vector<8x16xf32>
    %734 = arith.addf %733, %732 : vector<8x16xf32>
    %735 = arith.mulf %697, %734 : vector<8x16xf32>
    %c912 = arith.constant 912 : index
    %c0_239 = arith.constant 0 : index
    %736 = vector.load %arg1[%c912, %c0_239] : memref<1056x128xf32, #tpu.memory_space<vmem>>, vector<16x128xf32>
    %737 = vector.extract_strided_slice %736 {offsets = [0, 0], sizes = [16, 8], strides = [1, 1]} : vector<16x128xf32> to vector<16x8xf32>
    %cst_240 = arith.constant dense<0.000000e+00> : vector<8x8xf32>
    %738 = tpu.matmul %735, %737, %cst_240 {dimension_numbers = #tpu.dot_dimension_numbers<[1], [0], [0], [1], [0, 0, 1, 1], [], []>} : vector<8x16xf32>, vector<16x8xf32>, vector<8x8xf32> -> vector<8x8xf32>
    %739 = arith.addf %666, %738 : vector<8x8xf32>
    %c928 = arith.constant 928 : index
    %c0_241 = arith.constant 0 : index
    %740 = vector.load %arg1[%c928, %c0_241] : memref<1056x128xf32, #tpu.memory_space<vmem>>, vector<8x128xf32>
    %741 = vector.extract_strided_slice %740 {offsets = [0, 0], sizes = [1, 8], strides = [1, 1]} : vector<8x128xf32> to vector<1x8xf32>
    %742 = vector.broadcast %741 : vector<1x8xf32> to vector<8x8xf32>
    %743 = arith.addf %739, %742 : vector<8x8xf32>
    %c936 = arith.constant 936 : index
    %c0_242 = arith.constant 0 : index
    %744 = vector.load %arg1[%c936, %c0_242] : memref<1056x128xf32, #tpu.memory_space<vmem>>, vector<8x128xf32>
    %745 = vector.extract_strided_slice %744 {offsets = [0, 0], sizes = [4, 8], strides = [1, 1]} : vector<8x128xf32> to vector<4x8xf32>
    %c944 = arith.constant 944 : index
    %c0_243 = arith.constant 0 : index
    %746 = vector.load %arg1[%c944, %c0_243] : memref<1056x128xf32, #tpu.memory_space<vmem>>, vector<8x128xf32>
    %747 = vector.extract_strided_slice %746 {offsets = [0, 0], sizes = [4, 8], strides = [1, 1]} : vector<8x128xf32> to vector<4x8xf32>
    %748 = vector.extract_strided_slice %743 {offsets = [0, 0], sizes = [4, 8], strides = [1, 1]} : vector<8x8xf32> to vector<4x8xf32>
    %cst_244 = arith.constant dense<0.000000e+00> : vector<4xf32>
    %749 = vector.multi_reduction <add>, %748, %cst_244 [1] : vector<4x8xf32> to vector<4xf32>
    %750 = vector.shape_cast %749 : vector<4xf32> to vector<4x1xf32>
    %cst_245 = arith.constant dense<0.000000e+00> : vector<1xf32>
    %751 = vector.multi_reduction <add>, %750, %cst_245 [0] : vector<4x1xf32> to vector<1xf32>
    %752 = vector.shape_cast %751 : vector<1xf32> to vector<1x1xf32>
    %cst_246 = arith.constant 3.125000e-02 : f32
    %753 = vector.broadcast %cst_246 : f32 to vector<1x1xf32>
    %754 = arith.mulf %752, %753 : vector<1x1xf32>
    %755 = vector.broadcast %754 : vector<1x1xf32> to vector<4x8xf32>
    %756 = arith.subf %748, %755 : vector<4x8xf32>
    %757 = arith.mulf %756, %756 : vector<4x8xf32>
    %cst_247 = arith.constant dense<0.000000e+00> : vector<4xf32>
    %758 = vector.multi_reduction <add>, %757, %cst_247 [1] : vector<4x8xf32> to vector<4xf32>
    %759 = vector.shape_cast %758 : vector<4xf32> to vector<4x1xf32>
    %cst_248 = arith.constant dense<0.000000e+00> : vector<1xf32>
    %760 = vector.multi_reduction <add>, %759, %cst_248 [0] : vector<4x1xf32> to vector<1xf32>
    %761 = vector.shape_cast %760 : vector<1xf32> to vector<1x1xf32>
    %cst_249 = arith.constant 3.125000e-02 : f32
    %762 = vector.broadcast %cst_249 : f32 to vector<1x1xf32>
    %763 = arith.mulf %761, %762 : vector<1x1xf32>
    %cst_250 = arith.constant 9.99999974E-6 : f32
    %764 = vector.broadcast %cst_250 : f32 to vector<1x1xf32>
    %765 = arith.addf %763, %764 : vector<1x1xf32>
    %766 = math.rsqrt %765 : vector<1x1xf32>
    %767 = vector.broadcast %766 : vector<1x1xf32> to vector<4x8xf32>
    %768 = arith.mulf %756, %767 : vector<4x8xf32>
    %769 = arith.mulf %768, %745 : vector<4x8xf32>
    %770 = arith.addf %769, %747 : vector<4x8xf32>
    %cst_251 = arith.constant dense<0.000000e+00> : vector<4xf32>
    %771 = vector.multi_reduction <add>, %770, %cst_251 [1] : vector<4x8xf32> to vector<4xf32>
    %772 = vector.shape_cast %771 : vector<4xf32> to vector<4x1xf32>
    %cst_252 = arith.constant 8.000000e+00 : f32
    %773 = vector.broadcast %cst_252 : f32 to vector<4x1xf32>
    %774 = arith.divf %772, %773 : vector<4x1xf32>
    %775 = vector.broadcast %774 : vector<4x1xf32> to vector<4x8xf32>
    %776 = arith.subf %770, %775 : vector<4x8xf32>
    %777 = arith.mulf %776, %776 : vector<4x8xf32>
    %cst_253 = arith.constant dense<0.000000e+00> : vector<4xf32>
    %778 = vector.multi_reduction <add>, %777, %cst_253 [1] : vector<4x8xf32> to vector<4xf32>
    %779 = vector.shape_cast %778 : vector<4xf32> to vector<4x1xf32>
    %cst_254 = arith.constant 8.000000e+00 : f32
    %780 = vector.broadcast %cst_254 : f32 to vector<4x1xf32>
    %781 = arith.divf %779, %780 : vector<4x1xf32>
    %782 = vector.broadcast %774 : vector<4x1xf32> to vector<4x8xf32>
    %783 = arith.subf %770, %782 : vector<4x8xf32>
    %cst_255 = arith.constant 9.99999974E-6 : f32
    %784 = vector.broadcast %cst_255 : f32 to vector<4x1xf32>
    %785 = arith.addf %781, %784 : vector<4x1xf32>
    %786 = math.rsqrt %785 : vector<4x1xf32>
    %787 = vector.broadcast %786 : vector<4x1xf32> to vector<4x8xf32>
    %788 = arith.mulf %783, %787 : vector<4x8xf32>
    %789 = vector.broadcast %1 : vector<1x8xf32> to vector<4x8xf32>
    %790 = arith.mulf %788, %789 : vector<4x8xf32>
    %791 = vector.broadcast %3 : vector<1x8xf32> to vector<4x8xf32>
    %792 = arith.addf %790, %791 : vector<4x8xf32>
    %793 = math.tanh %792 : vector<4x8xf32>
    %cst_256 = arith.constant dense<0.000000e+00> : vector<4x1xf32>
    %794 = tpu.matmul %793, %5, %cst_256 {dimension_numbers = #tpu.dot_dimension_numbers<[1], [0], [0], [1], [0, 0, 1, 1], [], []>} : vector<4x8xf32>, vector<8x1xf32>, vector<4x1xf32> -> vector<4x1xf32>
    %cst_257 = arith.constant dense<0xFF800000> : vector<1xf32>
    %795 = vector.multi_reduction <maximumf>, %794, %cst_257 [0] : vector<4x1xf32> to vector<1xf32>
    %796 = vector.shape_cast %795 : vector<1xf32> to vector<1x1xf32>
    %797 = vector.broadcast %796 : vector<1x1xf32> to vector<4x1xf32>
    %798 = arith.subf %794, %797 : vector<4x1xf32>
    %799 = math.exp %798 : vector<4x1xf32>
    %cst_258 = arith.constant dense<0.000000e+00> : vector<1xf32>
    %800 = vector.multi_reduction <add>, %799, %cst_258 [0] : vector<4x1xf32> to vector<1xf32>
    %801 = vector.shape_cast %800 : vector<1xf32> to vector<1x1xf32>
    %802 = tpu.reciprocal %801 {approx = true} : vector<1x1xf32> -> vector<1x1xf32>
    %803 = vector.broadcast %802 : vector<1x1xf32> to vector<4x1xf32>
    %804 = arith.mulf %799, %803 : vector<4x1xf32>
    %805 = vector.broadcast %804 : vector<4x1xf32> to vector<4x8xf32>
    %806 = arith.mulf %805, %792 : vector<4x8xf32>
    %cst_259 = arith.constant dense<0.000000e+00> : vector<8xf32>
    %807 = vector.multi_reduction <add>, %806, %cst_259 [0] : vector<4x8xf32> to vector<8xf32>
    %808 = vector.shape_cast %807 : vector<8xf32> to vector<1x8xf32>
    %809 = vector.extract_strided_slice %743 {offsets = [4, 0], sizes = [4, 8], strides = [1, 1]} : vector<8x8xf32> to vector<4x8xf32>
    %cst_260 = arith.constant dense<0.000000e+00> : vector<4xf32>
    %810 = vector.multi_reduction <add>, %809, %cst_260 [1] : vector<4x8xf32> to vector<4xf32>
    %811 = vector.shape_cast %810 : vector<4xf32> to vector<4x1xf32>
    %cst_261 = arith.constant dense<0.000000e+00> : vector<1xf32>
    %812 = vector.multi_reduction <add>, %811, %cst_261 [0] : vector<4x1xf32> to vector<1xf32>
    %813 = vector.shape_cast %812 : vector<1xf32> to vector<1x1xf32>
    %cst_262 = arith.constant 3.125000e-02 : f32
    %814 = vector.broadcast %cst_262 : f32 to vector<1x1xf32>
    %815 = arith.mulf %813, %814 : vector<1x1xf32>
    %816 = vector.broadcast %815 : vector<1x1xf32> to vector<4x8xf32>
    %817 = arith.subf %809, %816 : vector<4x8xf32>
    %818 = arith.mulf %817, %817 : vector<4x8xf32>
    %cst_263 = arith.constant dense<0.000000e+00> : vector<4xf32>
    %819 = vector.multi_reduction <add>, %818, %cst_263 [1] : vector<4x8xf32> to vector<4xf32>
    %820 = vector.shape_cast %819 : vector<4xf32> to vector<4x1xf32>
    %cst_264 = arith.constant dense<0.000000e+00> : vector<1xf32>
    %821 = vector.multi_reduction <add>, %820, %cst_264 [0] : vector<4x1xf32> to vector<1xf32>
    %822 = vector.shape_cast %821 : vector<1xf32> to vector<1x1xf32>
    %cst_265 = arith.constant 3.125000e-02 : f32
    %823 = vector.broadcast %cst_265 : f32 to vector<1x1xf32>
    %824 = arith.mulf %822, %823 : vector<1x1xf32>
    %cst_266 = arith.constant 9.99999974E-6 : f32
    %825 = vector.broadcast %cst_266 : f32 to vector<1x1xf32>
    %826 = arith.addf %824, %825 : vector<1x1xf32>
    %827 = math.rsqrt %826 : vector<1x1xf32>
    %828 = vector.broadcast %827 : vector<1x1xf32> to vector<4x8xf32>
    %829 = arith.mulf %817, %828 : vector<4x8xf32>
    %830 = arith.mulf %829, %745 : vector<4x8xf32>
    %831 = arith.addf %830, %747 : vector<4x8xf32>
    %cst_267 = arith.constant dense<0.000000e+00> : vector<4xf32>
    %832 = vector.multi_reduction <add>, %831, %cst_267 [1] : vector<4x8xf32> to vector<4xf32>
    %833 = vector.shape_cast %832 : vector<4xf32> to vector<4x1xf32>
    %cst_268 = arith.constant 8.000000e+00 : f32
    %834 = vector.broadcast %cst_268 : f32 to vector<4x1xf32>
    %835 = arith.divf %833, %834 : vector<4x1xf32>
    %836 = vector.broadcast %835 : vector<4x1xf32> to vector<4x8xf32>
    %837 = arith.subf %831, %836 : vector<4x8xf32>
    %838 = arith.mulf %837, %837 : vector<4x8xf32>
    %cst_269 = arith.constant dense<0.000000e+00> : vector<4xf32>
    %839 = vector.multi_reduction <add>, %838, %cst_269 [1] : vector<4x8xf32> to vector<4xf32>
    %840 = vector.shape_cast %839 : vector<4xf32> to vector<4x1xf32>
    %cst_270 = arith.constant 8.000000e+00 : f32
    %841 = vector.broadcast %cst_270 : f32 to vector<4x1xf32>
    %842 = arith.divf %840, %841 : vector<4x1xf32>
    %843 = vector.broadcast %835 : vector<4x1xf32> to vector<4x8xf32>
    %844 = arith.subf %831, %843 : vector<4x8xf32>
    %cst_271 = arith.constant 9.99999974E-6 : f32
    %845 = vector.broadcast %cst_271 : f32 to vector<4x1xf32>
    %846 = arith.addf %842, %845 : vector<4x1xf32>
    %847 = math.rsqrt %846 : vector<4x1xf32>
    %848 = vector.broadcast %847 : vector<4x1xf32> to vector<4x8xf32>
    %849 = arith.mulf %844, %848 : vector<4x8xf32>
    %850 = vector.broadcast %1 : vector<1x8xf32> to vector<4x8xf32>
    %851 = arith.mulf %849, %850 : vector<4x8xf32>
    %852 = vector.broadcast %3 : vector<1x8xf32> to vector<4x8xf32>
    %853 = arith.addf %851, %852 : vector<4x8xf32>
    %854 = math.tanh %853 : vector<4x8xf32>
    %cst_272 = arith.constant dense<0.000000e+00> : vector<4x1xf32>
    %855 = tpu.matmul %854, %5, %cst_272 {dimension_numbers = #tpu.dot_dimension_numbers<[1], [0], [0], [1], [0, 0, 1, 1], [], []>} : vector<4x8xf32>, vector<8x1xf32>, vector<4x1xf32> -> vector<4x1xf32>
    %cst_273 = arith.constant dense<0xFF800000> : vector<1xf32>
    %856 = vector.multi_reduction <maximumf>, %855, %cst_273 [0] : vector<4x1xf32> to vector<1xf32>
    %857 = vector.shape_cast %856 : vector<1xf32> to vector<1x1xf32>
    %858 = vector.broadcast %857 : vector<1x1xf32> to vector<4x1xf32>
    %859 = arith.subf %855, %858 : vector<4x1xf32>
    %860 = math.exp %859 : vector<4x1xf32>
    %cst_274 = arith.constant dense<0.000000e+00> : vector<1xf32>
    %861 = vector.multi_reduction <add>, %860, %cst_274 [0] : vector<4x1xf32> to vector<1xf32>
    %862 = vector.shape_cast %861 : vector<1xf32> to vector<1x1xf32>
    %863 = tpu.reciprocal %862 {approx = true} : vector<1x1xf32> -> vector<1x1xf32>
    %864 = vector.broadcast %863 : vector<1x1xf32> to vector<4x1xf32>
    %865 = arith.mulf %860, %864 : vector<4x1xf32>
    %866 = vector.broadcast %865 : vector<4x1xf32> to vector<4x8xf32>
    %867 = arith.mulf %866, %853 : vector<4x8xf32>
    %cst_275 = arith.constant dense<0.000000e+00> : vector<8xf32>
    %868 = vector.multi_reduction <add>, %867, %cst_275 [0] : vector<4x8xf32> to vector<8xf32>
    %869 = vector.shape_cast %868 : vector<8xf32> to vector<1x8xf32>
    %c56 = arith.constant 56 : index
    %c0_276 = arith.constant 0 : index
    %870 = vector.load %arg0[%c56, %c0_276] : memref<64x128xf32, #tpu.memory_space<vmem>>, vector<8x128xf32>
    %871 = vector.extract_strided_slice %870 {offsets = [0, 0], sizes = [2, 16], strides = [1, 1]} : vector<8x128xf32> to vector<2x16xf32>
    %c976 = arith.constant 976 : index
    %c0_277 = arith.constant 0 : index
    %872 = vector.load %arg1[%c976, %c0_277] : memref<1056x128xf32, #tpu.memory_space<vmem>>, vector<16x128xf32>
    %873 = vector.extract_strided_slice %872 {offsets = [0, 0], sizes = [16, 8], strides = [1, 1]} : vector<16x128xf32> to vector<16x8xf32>
    %cst_278 = arith.constant dense<0.000000e+00> : vector<2x8xf32>
    %874 = tpu.matmul %871, %873, %cst_278 {dimension_numbers = #tpu.dot_dimension_numbers<[1], [0], [0], [1], [0, 0, 1, 1], [], []>} : vector<2x16xf32>, vector<16x8xf32>, vector<2x8xf32> -> vector<2x8xf32>
    %c992 = arith.constant 992 : index
    %c0_279 = arith.constant 0 : index
    %875 = vector.load %arg1[%c992, %c0_279] : memref<1056x128xf32, #tpu.memory_space<vmem>>, vector<8x128xf32>
    %876 = vector.extract_strided_slice %875 {offsets = [0, 0], sizes = [1, 8], strides = [1, 1]} : vector<8x128xf32> to vector<1x8xf32>
    %877 = vector.broadcast %876 : vector<1x8xf32> to vector<2x8xf32>
    %878 = arith.addf %874, %877 : vector<2x8xf32>
    %c1000 = arith.constant 1000 : index
    %c0_280 = arith.constant 0 : index
    %879 = vector.load %arg1[%c1000, %c0_280] : memref<1056x128xf32, #tpu.memory_space<vmem>>, vector<24x128xf32>
    %880 = vector.extract_strided_slice %879 {offsets = [0, 0], sizes = [24, 8], strides = [1, 1]} : vector<24x128xf32> to vector<24x8xf32>
    %c1024 = arith.constant 1024 : index
    %c0_281 = arith.constant 0 : index
    %881 = vector.load %arg1[%c1024, %c0_281] : memref<1056x128xf32, #tpu.memory_space<vmem>>, vector<8x128xf32>
    %882 = vector.extract_strided_slice %881 {offsets = [0, 0], sizes = [1, 8], strides = [1, 1]} : vector<8x128xf32> to vector<1x8xf32>
    %c1032 = arith.constant 1032 : index
    %c0_282 = arith.constant 0 : index
    %883 = vector.load %arg1[%c1032, %c0_282] : memref<1056x128xf32, #tpu.memory_space<vmem>>, vector<16x128xf32>
    %884 = vector.extract_strided_slice %883 {offsets = [0, 0], sizes = [16, 8], strides = [1, 1]} : vector<16x128xf32> to vector<16x8xf32>
    %c1048 = arith.constant 1048 : index
    %c0_283 = arith.constant 0 : index
    %885 = vector.load %arg1[%c1048, %c0_283] : memref<1056x128xf32, #tpu.memory_space<vmem>>, vector<8x128xf32>
    %886 = vector.extract_strided_slice %885 {offsets = [0, 0], sizes = [1, 8], strides = [1, 1]} : vector<8x128xf32> to vector<1x8xf32>
    %887 = vector.extract_strided_slice %880 {offsets = [0, 0], sizes = [8, 8], strides = [1, 1]} : vector<24x8xf32> to vector<8x8xf32>
    %cst_284 = arith.constant dense<0.000000e+00> : vector<1x8xf32>
    %888 = tpu.matmul %232, %887, %cst_284 {dimension_numbers = #tpu.dot_dimension_numbers<[1], [0], [0], [1], [0, 0, 1, 1], [], []>} : vector<1x8xf32>, vector<8x8xf32>, vector<1x8xf32> -> vector<1x8xf32>
    %889 = vector.extract_strided_slice %880 {offsets = [8, 0], sizes = [8, 8], strides = [1, 1]} : vector<24x8xf32> to vector<8x8xf32>
    %cst_285 = arith.constant dense<0.000000e+00> : vector<1x8xf32>
    %890 = tpu.matmul %520, %889, %cst_285 {dimension_numbers = #tpu.dot_dimension_numbers<[1], [0], [0], [1], [0, 0, 1, 1], [], []>} : vector<1x8xf32>, vector<8x8xf32>, vector<1x8xf32> -> vector<1x8xf32>
    %891 = arith.addf %888, %890 : vector<1x8xf32>
    %892 = vector.extract_strided_slice %880 {offsets = [16, 0], sizes = [8, 8], strides = [1, 1]} : vector<24x8xf32> to vector<8x8xf32>
    %cst_286 = arith.constant dense<0.000000e+00> : vector<1x8xf32>
    %893 = tpu.matmul %808, %892, %cst_286 {dimension_numbers = #tpu.dot_dimension_numbers<[1], [0], [0], [1], [0, 0, 1, 1], [], []>} : vector<1x8xf32>, vector<8x8xf32>, vector<1x8xf32> -> vector<1x8xf32>
    %894 = arith.addf %891, %893 : vector<1x8xf32>
    %895 = arith.addf %894, %882 : vector<1x8xf32>
    %896 = vector.extract_strided_slice %878 {offsets = [0, 0], sizes = [1, 8], strides = [1, 1]} : vector<2x8xf32> to vector<1x8xf32>
    %897 = vector.extract_strided_slice %884 {offsets = [0, 0], sizes = [8, 8], strides = [1, 1]} : vector<16x8xf32> to vector<8x8xf32>
    %cst_287 = arith.constant dense<0.000000e+00> : vector<1x8xf32>
    %898 = tpu.matmul %896, %897, %cst_287 {dimension_numbers = #tpu.dot_dimension_numbers<[1], [0], [0], [1], [0, 0, 1, 1], [], []>} : vector<1x8xf32>, vector<8x8xf32>, vector<1x8xf32> -> vector<1x8xf32>
    %899 = vector.extract_strided_slice %884 {offsets = [8, 0], sizes = [8, 8], strides = [1, 1]} : vector<16x8xf32> to vector<8x8xf32>
    %cst_288 = arith.constant dense<0.000000e+00> : vector<1x8xf32>
    %900 = tpu.matmul %895, %899, %cst_288 {dimension_numbers = #tpu.dot_dimension_numbers<[1], [0], [0], [1], [0, 0, 1, 1], [], []>} : vector<1x8xf32>, vector<8x8xf32>, vector<1x8xf32> -> vector<1x8xf32>
    %901 = arith.addf %898, %900 : vector<1x8xf32>
    %902 = arith.addf %901, %886 : vector<1x8xf32>
    %903 = vector.extract_strided_slice %880 {offsets = [0, 0], sizes = [8, 8], strides = [1, 1]} : vector<24x8xf32> to vector<8x8xf32>
    %cst_289 = arith.constant dense<0.000000e+00> : vector<1x8xf32>
    %904 = tpu.matmul %293, %903, %cst_289 {dimension_numbers = #tpu.dot_dimension_numbers<[1], [0], [0], [1], [0, 0, 1, 1], [], []>} : vector<1x8xf32>, vector<8x8xf32>, vector<1x8xf32> -> vector<1x8xf32>
    %905 = vector.extract_strided_slice %880 {offsets = [8, 0], sizes = [8, 8], strides = [1, 1]} : vector<24x8xf32> to vector<8x8xf32>
    %cst_290 = arith.constant dense<0.000000e+00> : vector<1x8xf32>
    %906 = tpu.matmul %581, %905, %cst_290 {dimension_numbers = #tpu.dot_dimension_numbers<[1], [0], [0], [1], [0, 0, 1, 1], [], []>} : vector<1x8xf32>, vector<8x8xf32>, vector<1x8xf32> -> vector<1x8xf32>
    %907 = arith.addf %904, %906 : vector<1x8xf32>
    %908 = vector.extract_strided_slice %880 {offsets = [16, 0], sizes = [8, 8], strides = [1, 1]} : vector<24x8xf32> to vector<8x8xf32>
    %cst_291 = arith.constant dense<0.000000e+00> : vector<1x8xf32>
    %909 = tpu.matmul %869, %908, %cst_291 {dimension_numbers = #tpu.dot_dimension_numbers<[1], [0], [0], [1], [0, 0, 1, 1], [], []>} : vector<1x8xf32>, vector<8x8xf32>, vector<1x8xf32> -> vector<1x8xf32>
    %910 = arith.addf %907, %909 : vector<1x8xf32>
    %911 = arith.addf %910, %882 : vector<1x8xf32>
    %912 = vector.extract_strided_slice %878 {offsets = [1, 0], sizes = [1, 8], strides = [1, 1]} : vector<2x8xf32> to vector<1x8xf32>
    %913 = vector.extract_strided_slice %884 {offsets = [0, 0], sizes = [8, 8], strides = [1, 1]} : vector<16x8xf32> to vector<8x8xf32>
    %cst_292 = arith.constant dense<0.000000e+00> : vector<1x8xf32>
    %914 = tpu.matmul %912, %913, %cst_292 {dimension_numbers = #tpu.dot_dimension_numbers<[1], [0], [0], [1], [0, 0, 1, 1], [], []>} : vector<1x8xf32>, vector<8x8xf32>, vector<1x8xf32> -> vector<1x8xf32>
    %915 = vector.extract_strided_slice %884 {offsets = [8, 0], sizes = [8, 8], strides = [1, 1]} : vector<16x8xf32> to vector<8x8xf32>
    %cst_293 = arith.constant dense<0.000000e+00> : vector<1x8xf32>
    %916 = tpu.matmul %911, %915, %cst_293 {dimension_numbers = #tpu.dot_dimension_numbers<[1], [0], [0], [1], [0, 0, 1, 1], [], []>} : vector<1x8xf32>, vector<8x8xf32>, vector<1x8xf32> -> vector<1x8xf32>
    %917 = arith.addf %914, %916 : vector<1x8xf32>
    %918 = arith.addf %917, %886 : vector<1x8xf32>
    %919 = tpu.concatenate %902, %918 in 0 : vector<1x8xf32>, vector<1x8xf32> -> vector<2x8xf32>
    %c0_294 = arith.constant 0 : index
    %c0_295 = arith.constant 0 : index
    %920 = vector.load %arg2[%c0_294, %c0_295] : memref<2x8xf32, #tpu.memory_space<vmem>>, vector<2x8xf32>
    tpu.vector_store %arg2[%c0_294, %c0_295], %919 {strides = array<i32>} : memref<2x8xf32, #tpu.memory_space<vmem>>, vector<2x8xf32>,
    return
  }
}

</mosaic_0001>

<bundles_post_ra>
// kernel: forward.1
= control target key start
LH: loop header
LB: loop body
LE: loop exit
PB: predicated region body
PF: predicated region fallthrough
CT: control target
= control target key end

     0   :  { %s6302_s0 = inlined_call_operand.vmem [shape: f32[64,128], index: 0, kind: input, shape index: {}]   ;;  %s6303_s1 = inlined_call_operand.vmem [shape: f32[1056,128], index: 1, kind: input, shape index: {}]   ;;  %s6304_s2 = inlined_call_operand.hbm [shape: f32[2,8], index: 2, kind: output, shape index: {}]  }
   0x1   :  { %v19_v0 = vld [vmem:[%s6303_s1] sm:$0xff]  ;;  %v20_v1 = vld [vmem:[%s6303_s1 + $0x8] sm:$0xff]  ;;  %v21_v2 = vld [vmem:[%s6303_s1 + $0x10] sm:$0xff] }
   0x2   :  { %v4768_v3 = vpack.c.bf16 %v20_v1, %v19_v0  ;;  %v22_v4 = vld [vmem:[%s6303_s1 + $0x18] sm:$0xff]  ;;  %v23_v6 = vld [vmem:[%s6303_s1 + $0x20] sm:$0xff]  ;;  %v24_v7 = vld [vmem:[%s6303_s1 + $0x28] sm:$0xff] }
   0x3   :  { %v4772_v5 = vpack.c.bf16 %v22_v4, %v21_v2  ;;  %v4776_v8 = vpack.c.bf16 %v24_v7, %v23_v6  ;;  %v15_v9 = vld [vmem:[%s6302_s0] sm:$0xff]  ;;  %v25_v10 = vld [vmem:[%s6303_s1 + $0x30] sm:$0xff]  ;;  %v26_v11 = vld [vmem:[%s6303_s1 + $0x38] sm:$0xff] }
   0x4   :  { %4769 = vmatprep.subr.bf16.mxu0 %v4768_v3  ;;  %4488 = vmatprep.mubr.f32.mxu0 %v15_v9 }
   0x5   :  { %4771 = vmatpush3.bf16.msra.mxu0 %v4768_v3 }
   0x6   :  { %4773 = vmatprep.subr.bf16.mxu0 %v4772_v5 }
   0x7   :  { %7 = vsyncpa [#allocation3], 0  ;;  %v4780_v12 = vpack.c.bf16 %v26_v11, %v25_v10  ;;  %v27_v13 = vld [vmem:[%s6303_s1 + $0x40] sm:$0xff]  ;;  %v28_v14 = vld [vmem:[%s6303_s1 + $0x48] sm:$0xff]  ;;  %vm122_vm0 = vcmask 64512   ;;  %vm248_vm1 = vcmask 261120  }
   0x8   :  { %v4784_v15 = vpack.c.bf16 %v28_v14, %v27_v13  ;;  %v29_v16 = vld [vmem:[%s6303_s1 + $0x50] sm:$0xff]  ;;  %v30_v17 = vld [vmem:[%s6303_s1 + $0x58] sm:$0xff]  ;;  %v31_v19 = vld [vmem:[%s6303_s1 + $0x60] sm:$0xff]  ;;  %v5126_v58 = vmov 0   ;;  %v176_v13 = vlaneseq  ;;  %vm590_vm2 = vcmask 523264   ;;  %s5131_s10 = smov [#allocation2]  }
   0x9   :  { %4775 = vmatpush3.bf16.msra.mxu0 %v4772_v5  ;;  %v4788_v18 = vpack.c.bf16 %v30_v17, %v29_v16  ;;  %v32_v20 = vld [vmem:[%s6303_s1 + $0x68] sm:$0xff]  ;;  %v33_v22 = vld [vmem:[%s6303_s1 + $0x70] sm:$0xff]  ;;  %v34_v23 = vld [vmem:[%s6303_s1 + $0x78] sm:$0xff]  ;;  %4916 = vset.pattern.permute.xlu1 %v5126_v58  ;;  %vm989_vm14 = vcmask 130048   ;;  %s4237_s11 = sshll.u32 %s5131_s10, 4  ;;  %s4238_s11 = int_to_ptr.vmem [resolvable:$true] %s4237_s11 }
   0xa   :  { %4777 = vmatprep.subr.bf16.mxu0 %v4776_v8  ;;  %v4792_v21 = vpack.c.bf16 %v32_v20, %v31_v19  ;;  %v4796_v24 = vpack.c.bf16 %v34_v23, %v33_v22  ;;  %v16_v25 = vld [vmem:[%s6302_s0 + $0x8] sm:$0xff]  ;;  %v17_v26 = vld [vmem:[%s6302_s0 + $0x10] sm:$0xff]  ;;  %v18_v27 = vld [vmem:[%s6302_s0 + $0x18] sm:$0xff]  ;;  %4915 = vset.pattern.permute.xlu0 %v5126_v58  ;;  %s5102_s12 = scalar_lea.vmem %s4238_s11, 32  ;;  %p5107_p1 = scmp.lt.s32.totalorder %s4238_s11, %s4238_s11 }
   0xb   :  { %v192_v56 = vld [vmem:[%s6303_s1 + $0x90] sm:$0xff]  ;;  %v201_v57 = vld [vmem:[%s6303_s1 + $0xd8] sm:$0xff]  ;;  %v202_v59 = vld [vmem:[%s6303_s1 + $0xe0] sm:$0xff]  ;;  %p5103_p0 = scmp.ne.s32.totalorder %s4238_s11, %s5102_s12  ;;  %p5108_p2 = scmp.lt.s32.totalorder %s5102_s12, %s5102_s12 }
   0xc   :  { %4502 = vmatprep.mubr.msk.f32.mxu1 %vm248_vm1, %v192_v56  ;;  %v200_v60 = vld [vmem:[%s6303_s1 + $0xd0] sm:$0xff]  ;;  %v693_v61 = vld [vmem:[%s6303_s1 + $0x138] sm:$0xff]  ;;  %v203_v62 = vld [vmem:[%s6303_s1 + $0xe8] sm:$0xff] }
   0xd   :  { %4779 = vmatpush3.bf16.msra.mxu0 %v4776_v8  ;;  %v695_v63 = vld [vmem:[%s6303_s1 + $0x148] sm:$0xff]  ;;  %v204_v0 = vld [vmem:[%s6303_s1 + $0xf0] sm:$0xff]  ;;  %v205_v1 = vld [vmem:[%s6303_s1 + $0xf8] sm:$0xff]  ;;  %p5109_p3 = por %p5108_p2, %p5107_p1 }
   0xe   :  { %4781 = vmatprep.subr.bf16.mxu0 %v4780_v12  ;;  %v206_v2 = vld [vmem:[%s6303_s1 + $0x100] sm:$0xff]  ;;  %v207_v3 = vld [vmem:[%s6303_s1 + $0x108] sm:$0xff]  ;;  %v692_v4 = vld [vmem:[%s6303_s1 + $0x130] sm:$0xff] }
   0xf   :  { %v694_v5 = vld [vmem:[%s6303_s1 + $0x140] sm:$0xff]  ;;  %p5110_p4 = pnand %p5109_p3, %p5103_p0 }
  0x11   :  { %4783 = vmatpush3.bf16.msra.mxu0 %v4780_v12 }
  0x12   :  { %4785 = vmatprep.subr.bf16.mxu0 %v4784_v15 }
  0x15   :  { %4787 = vmatpush3.bf16.msra.mxu0 %v4784_v15 }
  0x16   :  { %4789 = vmatprep.subr.bf16.mxu0 %v4788_v18 }
  0x19   :  { %4791 = vmatpush3.bf16.msra.mxu0 %v4788_v18  ;;  %v177_v18 = vshrl.u32 %v176_v13, 7 }
  0x1a   :  { %4793 = vmatprep.subr.bf16.mxu0 %v4792_v21 }
  0x1b   :  { %v5287_v20 = vsub.s32 0, %v177_v18 }
  0x1d   :  { %4795 = vmatpush3.bf16.msra.mxu0 %v4792_v21  ;;  %v120_v21 = vld [vmem:[%s6303_s1 + $0x80] sm:$0xff] }
  0x1e   :  { %4797 = vmatprep.subr.bf16.mxu0 %v4796_v24 }
  0x21   :  { %4799 = vmatpush3.bf16.msra.mxu0 %v4796_v24  ;;  %v5294_v24 = vrot.slane %v120_v21, %v5287_v20 }
  0x24   :  { %4489 = vmatmul.mubr.f32.vlgmr.msra.gmra.mrb[0].mxu0 %v16_v25  ;;  %v121_v25 = vld [vmem:[%s6303_s1 + $0x88] sm:$0xff] }
  0x25   :  { %4491 = vmatprep.mubr.f32.mxu0 %v17_v26 }
  0x28   :  { %4492 = vmatmul.mubr.f32.gmra.mrb[2].mxu0 %v18_v27 }
  0xf7   :  { %v5207_v28 = vpop.f32.mrb[0].mxu0 }
  0xf8   :  { %v5209_v29 = vpop.f32.mrb[1].mxu0  ;;  %v126_v33 = vsel %vm122_vm0, %v5207_v28, 0.0 }
  0xf9   :  { %v123_v30 = vsel %vm122_vm0, %v5209_v29, 0.0 }
  0xfa   :  { %124 = vadd.xlane.f32.xlu0 %v123_v30 }
  0xfb   :  { %v5213_v31 = vpop.f32.mrb[2].mxu0 }
  0xfc   :  { %v5215_v32 = vpop.f32.mrb[3].mxu0  ;;  %v132_v35 = vsel %vm122_vm0, %v5213_v31, 0.0 }
  0xfd   :  { %v129_v34 = vsel %vm122_vm0, %v5215_v32, 0.0 }
  0xfe   :  { %127 = vadd.xlane.f32.xlu0 %v126_v33  ;;  %130 = vadd.xlane.f32.xlu1 %v129_v34 }
 0x102   :  { %133 = vadd.xlane.f32.xlu1 %v132_v35  ;;  %v5303_v35 = vrot.slane %v121_v25, %v5287_v20 }
 0x187   :  { %v125_v36 = vpop.xlane.xlu0 %124 }
 0x188   :  { %v136_v37 = vmul.f32 0.125, %v125_v36 }
 0x18a   :  { %v5224_v38 = vsub.f32 %v5209_v29, %v136_v37 }
 0x18b   :  { %v128_v39 = vpop.xlane.xlu0 %127  ;;  %v131_v40 = vpop.xlane.xlu1 %130 }
 0x18c   :  { %v137_v41 = vmul.f32 0.125, %v128_v39  ;;  %v138_v42 = vmul.f32 0.125, %v131_v40  ;;  %v144_v43 = vmul.f32 %v5224_v38, %v5224_v38 }
 0x18e   :  { %v5229_v44 = vsub.f32 %v5207_v28, %v137_v41  ;;  %v5232_v45 = vsub.f32 %v5215_v32, %v138_v42  ;;  %v148_v46 = vsel %vm122_vm0, %v144_v43, 0.0 }
 0x18f   :  { %149 = vadd.xlane.f32.xlu0 %v148_v46  ;;  %v134_v47 = vpop.xlane.xlu1 %133 }
 0x190   :  { %v139_v48 = vmul.f32 0.125, %v134_v47  ;;  %v145_v49 = vmul.f32 %v5229_v44, %v5229_v44  ;;  %v146_v50 = vmul.f32 %v5232_v45, %v5232_v45  ;;  %v193_v47 = vld [vmem:[%s6303_s1 + $0x98] sm:$0xff] }
 0x192   :  { %v5240_v51 = vsub.f32 %v5213_v31, %v139_v48  ;;  %v151_v52 = vsel %vm122_vm0, %v145_v49, 0.0  ;;  %v154_v53 = vsel %vm122_vm0, %v146_v50, 0.0  ;;  %v194_v48 = vld [vmem:[%s6303_s1 + $0xa0] sm:$0xff]  ;;  %v195_v49 = vld [vmem:[%s6303_s1 + $0xa8] sm:$0xff]  ;;  %v196_v50 = vld [vmem:[%s6303_s1 + $0xb0] sm:$0xff] }
 0x193   :  { %152 = vadd.xlane.f32.xlu1 %v151_v52  ;;  %155 = vadd.xlane.f32.xlu0 %v154_v53  ;;  %v198_v52 = vld [vmem:[%s6303_s1 + $0xc0] sm:$0xff]  ;;  %v199_v53 = vld [vmem:[%s6303_s1 + $0xc8] sm:$0xff] }
 0x194   :  { %v147_v54 = vmul.f32 %v5240_v51, %v5240_v51 }
 0x196   :  { %v157_v55 = vsel %vm122_vm0, %v147_v54, 0.0  ;;  %v586_v54 = vld [vmem:[%s6303_s1 + $0x110] sm:$0xff] }
 0x197   :  { %158 = vadd.xlane.f32.xlu1 %v157_v55 }
 0x1a8   :  { %215 = vperm.xlu1 %4916, %v201_v57  }
 0x1a9   :  { %210 = vperm.xlu0 %4915, %v200_v60  }
 0x1ac   :  { %220 = vperm.xlu1 %4916, %v202_v59  }
 0x1ad   :  { %703 = vperm.xlu0 %4915, %v693_v61  }
 0x1b0   :  { %225 = vperm.xlu1 %4916, %v203_v62  }
 0x1b1   :  { %713 = vperm.xlu0 %4915, %v695_v63  }
 0x1b4   :  { %230 = vperm.xlu1 %4916, %v204_v0  }
 0x1b8   :  { %235 = vperm.xlu1 %4916, %v205_v1  }
 0x1bc   :  { %240 = vperm.xlu1 %4916, %v206_v2  }
 0x1c0   :  { %245 = vperm.xlu1 %4916, %v207_v3  }
 0x1c4   :  { %698 = vperm.xlu1 %4916, %v692_v4  }
 0x1c8   :  { %708 = vperm.xlu1 %4916, %v694_v5  }
 0x21c   :  { %v150_v6 = vpop.xlane.xlu0 %149 }
 0x21d   :  { %v160_v7 = vmul.f32 0.125, %v150_v6 }
 0x21f   :  { %v164_v8 = vadd.f32 1e-05, %v160_v7 }
 0x220   :  { %v156_v9 = vpop.xlane.xlu0 %155  ;;  %v153_v10 = vpop.xlane.xlu1 %152 }
 0x221   :  { %4917 = vrsqrt.f32 %v164_v8  ;;  %v162_v11 = vmul.f32 0.125, %v156_v9  ;;  %v161_v12 = vmul.f32 0.125, %v153_v10 }
 0x223   :  { %v166_v14 = vadd.f32 1e-05, %v162_v11  ;;  %v165_v15 = vadd.f32 1e-05, %v161_v12 }
 0x224   :  { %v159_v16 = vpop.xlane.xlu1 %158 }
 0x225   :  { %4919 = vrsqrt.f32 %v166_v14  ;;  %v163_v17 = vmul.f32 0.125, %v159_v16 }
 0x226   :  { %4921 = vrsqrt.f32 %v165_v15 }
 0x227   :  { %v167_v19 = vadd.f32 1e-05, %v163_v17 }
 0x228   :  { %v216_v55 = vpop.permute.xlu1 %215  ;;  %v211_v58 = vpop.permute.xlu0 %210 }
 0x229   :  { %4923 = vrsqrt.f32 %v167_v19 }
 0x22b   :  { %v4918_v22 = vpop.eup %4917 }
 0x22c   :  { %v172_v23 = vmul.f32 %v4918_v22, %v5224_v38  ;;  %v221_v56 = vpop.permute.xlu1 %220 }
 0x22e   :  { %v180_v34 = vmul.f32 %v5294_v24, %v172_v23 }
 0x22f   :  { %v4920_v26 = vpop.eup %4919 }
 0x230   :  { %v4922_v27 = vpop.eup %4921  ;;  %v174_v30 = vmul.f32 %v4920_v26, %v5232_v45  ;;  %v188_v40 = vadd.f32 %v5303_v35, %v180_v34  ;;  %v226_v57 = vpop.permute.xlu1 %225 }
 0x231   :  { %v173_v33 = vmul.f32 %v4922_v27, %v5229_v44 }
 0x232   :  { %v182_v39 = vmul.f32 %v5294_v24, %v174_v30 }
 0x233   :  { %v4924_v36 = vpop.eup %4923  ;;  %v181_v37 = vmul.f32 %v5294_v24, %v173_v33 }
 0x234   :  { %v175_v38 = vmul.f32 %v4924_v36, %v5240_v51  ;;  %v190_v44 = vadd.f32 %v5303_v35, %v182_v39  ;;  %v197_v51 = vld [vmem:[%s6303_s1 + $0xb8] sm:$0xff]  ;;  %v231_v60 = vpop.permute.xlu1 %230 }
 0x235   :  { %v189_v41 = vadd.f32 %v5303_v35, %v181_v37 }
 0x236   :  { %v183_v42 = vmul.f32 %v5294_v24, %v175_v38 }
 0x237   :  { %v4800_v43 = vpack.c.bf16 %v189_v41, %v188_v40 }
 0x238   :  { %v191_v45 = vadd.f32 %v5303_v35, %v183_v42  ;;  %v236_v8 = vpop.permute.xlu1 %235 }
 0x239   :  { %4801 = vmatprep.subr.bf16.mxu1 %v4800_v43 }
 0x23a   :  { %4803 = vmatpush3.bf16.msra.mxu1 %v4800_v43  ;;  %v4804_v46 = vpack.c.bf16 %v191_v45, %v190_v44  ;;  %v5127_v44 = vmov -1.0  }
 0x23c   :  { %4805 = vmatprep.subr.bf16.mxu1 %v4804_v46  ;;  %v241_v22 = vpop.permute.xlu1 %240 }
 0x23e   :  { %4807 = vmatpush3.bf16.msra.mxu1 %v4804_v46 }
 0x241   :  { %4503 = vmatmul.mubr.msk.f32.vlgmr.msra.gmra.mrb[0].mxu1 %vm248_vm1, %v193_v47 }
 0x242   :  { %4505 = vmatprep.mubr.msk.f32.mxu1 %vm248_vm1, %v194_v48  ;;  %v246_v48 = vpop.permute.xlu1 %245 }
 0x245   :  { %4506 = vmatmul.mubr.msk.f32.gmra.mrb[2].mxu1 %vm248_vm1, %v195_v49 }
 0x246   :  { %4508 = vmatprep.mubr.msk.f32.mxu1 %vm248_vm1, %v196_v50 }
 0x249   :  { %4509 = vmatmul.mubr.msk.f32.gmra.mrb[4].mxu1 %vm248_vm1, %v197_v51 }
 0x24a   :  { %4511 = vmatprep.mubr.msk.f32.mxu1 %vm248_vm1, %v198_v52 }
 0x24d   :  { %4512 = vmatmul.mubr.msk.f32.gmra.mrb[6].mxu1 %vm248_vm1, %v199_v53 }
 0x24e   :  { %4530 = vmatprep.mubr.msk.f32.mxu1 %vm590_vm2, %v586_v54 }
 0x314   :  { %v4504_v59 = vpop.f32.mrb[0].mxu1 }
 0x315   :  { %v345_v61 = vadd.f32 %v4504_v59, %v216_v55  ;;  %v339_v62 = vpop.f32.mrb[1].mxu1 }
 0x316   :  { %v340_v63 = vadd.f32 %v339_v62, %v211_v58 }
 0x317   :  { %v387_v0 = vmul.f32 0.70710677, %v345_v61  ;;  %v5358_v37 = vmul.f32 0.5, %v345_v61 }
 0x318   :  { %v386_v1 = vmul.f32 0.70710677, %v340_v63  ;;  %v4507_v2 = vpop.f32.mrb[2].mxu1  ;;  %v5363_v40 = vmul.f32 0.5, %v340_v63 }
 0x319   :  { %v411_v3 = vand.u32 2147483647, %v387_v0  ;;  %v355_v4 = vadd.f32 %v4507_v2, %v226_v57  ;;  %v349_v5 = vpop.f32.mrb[3].mxu1  ;;  %vm395_vm3 = vcmp.ge.f32.partialorder %v387_v0, 0.0 }
 0x31a   :  { %v410_v6 = vand.u32 2147483647, %v386_v1  ;;  %v5345_v7 = vadd.f32 %v349_v5, %v221_v56  ;;  %vm394_vm4 = vcmp.ge.f32.partialorder %v386_v1, 0.0  ;;  %v5368_v45 = vsel %vm395_vm3, 1.0, %v5127_v44 }
 0x31b   :  { %v419_v9 = vmul.f32 0.3275911, %v411_v3  ;;  %v389_v11 = vmul.f32 0.70710677, %v355_v4  ;;  %v515_v18 = vsub.f32 0.0, %v411_v3  ;;  %v5371_v46 = vsel %vm394_vm4, 1.0, %v5127_v44 }
 0x31c   :  { %v418_v10 = vmul.f32 0.3275911, %v410_v6  ;;  %v5348_v13 = vmul.f32 0.70710677, %v5345_v7  ;;  %v4510_v14 = vpop.f32.mrb[4].mxu1  ;;  %v514_v33 = vsub.f32 0.0, %v410_v6 }
 0x31d   :  { %v427_v12 = vadd.f32 1.0, %v419_v9  ;;  %v413_v16 = vand.u32 2147483647, %v389_v11  ;;  %v359_v17 = vpop.f32.mrb[5].mxu1  ;;  %v5351_v25 = vadd.f32 %v4510_v14, %v236_v8  ;;  %v523_v38 = vmul.f32 %v515_v18, %v411_v3 }
 0x31e   :  { %v426_v15 = vadd.f32 1.0, %v418_v10  ;;  %v412_v23 = vand.u32 2147483647, %v5348_v13  ;;  %v5353_v30 = vadd.f32 %v359_v17, %v231_v60  ;;  %vm397_vm5 = vcmp.ge.f32.partialorder %v389_v11, 0.0 }
 0x31f   :  { %4925 = vrcp.f32 %v427_v12  ;;  %v421_v19 = vmul.f32 0.3275911, %v413_v16  ;;  %v5356_v36 = vmul.f32 0.70710677, %v5351_v25  ;;  %v517_v41 = vsub.f32 0.0, %v413_v16 }
 0x320   :  { %4927 = vrcp.f32 %v426_v15  ;;  %v4513_v21 = vpop.f32.mrb[6].mxu1  ;;  %v420_v34 = vmul.f32 0.3275911, %v412_v23  ;;  %v5361_v39 = vmul.f32 0.70710677, %v5353_v30  ;;  %v522_v49 = vmul.f32 %v514_v33, %v410_v6 }
 0x321   :  { %v369_v26 = vpop.f32.mrb[7].mxu1  ;;  %v429_v27 = vadd.f32 1.0, %v421_v19  ;;  %v415_v43 = vand.u32 2147483647, %v5356_v36  ;;  %v5374_v50 = vmul.f32 0.5, %v355_v4  ;;  %v516_v53 = vsub.f32 0.0, %v412_v23 }
 0x322   :  { %v428_v42 = vadd.f32 1.0, %v420_v34  ;;  %v414_v47 = vand.u32 2147483647, %v5361_v39  ;;  %v532_v52 = vmul.f32 1.442695, %v523_v38  ;;  %v5376_v55 = vadd.f32 %v4513_v21, %v246_v48 }
 0x323   :  { %4929 = vrcp.f32 %v429_v27  ;;  %v423_v51 = vmul.f32 0.3275911, %v415_v43  ;;  %v5381_v57 = vsel %vm397_vm5, 1.0, %v5127_v44  ;;  %v525_v58 = vmul.f32 %v517_v41, %v413_v16 }
 0x324   :  { %4931 = vrcp.f32 %v428_v42  ;;  %v422_v54 = vmul.f32 0.3275911, %v414_v47  ;;  %v519_v60 = vsub.f32 0.0, %v415_v43  ;;  %v518_v0 = vsub.f32 0.0, %v414_v47 }
 0x325   :  { %v431_v59 = vadd.f32 1.0, %v423_v51  ;;  %v5386_v1 = vadd.f32 %v369_v26, %v241_v22  ;;  %vm396_vm6 = vcmp.ge.f32.partialorder %v5348_v13, 0.0  ;;  %v5391_v3 = vmul.f32 0.70710677, %v5376_v55 }
 0x326   :  { %v430_v63 = vadd.f32 1.0, %v422_v54  ;;  %v530_v5 = vmul.f32 1.442695, %v522_v49  ;;  %v524_v6 = vmul.f32 %v516_v53, %v412_v23  ;;  %v536_v9 = vmul.f32 1.442695, %v525_v58 }
 0x327   :  { %4933 = vrcp.f32 %v431_v59  ;;  %v417_v10 = vand.u32 2147483647, %v5391_v3  ;;  %v527_v14 = vmul.f32 %v519_v60, %v415_v43  ;;  %v526_v15 = vmul.f32 %v518_v0, %v414_v47 }
 0x328   :  { %4935 = vrcp.f32 %v430_v63  ;;  %v5398_v16 = vmul.f32 0.70710677, %v5386_v1  ;;  %v534_v23 = vmul.f32 1.442695, %v524_v6  ;;  %v5412_v54 = vsel %vm396_vm6, 1.0, %v5127_v44 }
 0x329   :  { %v5378_v56 = vpop.eup %4925  ;;  %4937 = vpow2.f32 %v532_v52  ;;  %v425_v19 = vmul.f32 0.3275911, %v417_v10  ;;  %v521_v21 = vsub.f32 0.0, %v417_v10  ;;  %v540_v47 = vmul.f32 1.442695, %v527_v14 }
 0x32a   :  { %v5383_v61 = vpop.eup %4927  ;;  %v443_v62 = vmul.f32 1.0614054, %v5378_v56  ;;  %4939 = vpow2.f32 %v530_v5  ;;  %v416_v26 = vand.u32 2147483647, %v5398_v16  ;;  %v538_v52 = vmul.f32 1.442695, %v526_v15 }
 0x32b   :  { %v442_v2 = vmul.f32 1.0614054, %v5383_v61  ;;  %v433_v38 = vadd.f32 1.0, %v425_v19  ;;  %v529_v41 = vmul.f32 %v521_v21, %v417_v10  ;;  %vm399_vm7 = vcmp.ge.f32.partialorder %v5356_v36, 0.0 }
 0x32c   :  { %v451_v4 = vadd.f32 -1.4531521, %v443_v62  ;;  %v424_v48 = vmul.f32 0.3275911, %v416_v26  ;;  %v520_v14 = vsub.f32 0.0, %v416_v26  ;;  %vm398_vm8 = vcmp.ge.f32.partialorder %v5361_v39, 0.0 }
 0x32d   :  { %v450_v8 = vadd.f32 -1.4531521, %v442_v2  ;;  %v5394_v11 = vpop.eup %4929  ;;  %4941 = vrcp.f32 %v433_v38  ;;  %v544_v0 = vmul.f32 1.442695, %v529_v41  ;;  %v406_v39 = vsel %vm398_vm8, 1.0, %v5127_v44 }
 0x32e   :  { %v459_v12 = vmul.f32 %v5378_v56, %v451_v4  ;;  %v445_v18 = vmul.f32 1.0614054, %v5394_v11  ;;  %v5403_v27 = vpop.eup %4931  ;;  %v432_v59 = vadd.f32 1.0, %v424_v48  ;;  %4943 = vpow2.f32 %v536_v9 }
 0x32f   :  { %v458_v17 = vmul.f32 %v5383_v61, %v450_v8  ;;  %v444_v43 = vmul.f32 1.0614054, %v5403_v27  ;;  %v528_v48 = vmul.f32 %v520_v14, %v416_v26  ;;  %vm401_vm9 = vcmp.ge.f32.partialorder %v5391_v3, 0.0 }
 0x330   :  { %v467_v22 = vadd.f32 1.4214138, %v459_v12  ;;  %v453_v34 = vadd.f32 -1.4531521, %v445_v18  ;;  %4945 = vrcp.f32 %v432_v59  ;;  %vm400_vm10 = vcmp.ge.f32.partialorder %v5398_v16, 0.0  ;;  %v587_v16 = vld [vmem:[%s6303_s1 + $0x118] sm:$0xff] }
 0x331   :  { %v466_v33 = vadd.f32 1.4214138, %v458_v17  ;;  %v452_v58 = vadd.f32 -1.4531521, %v444_v43  ;;  %v5414_v60 = vpop.eup %4933  ;;  %4947 = vpow2.f32 %v534_v23  ;;  %v408_v3 = vsel %vm400_vm10, 1.0, %v5127_v44 }
 0x332   :  { %v475_v42 = vmul.f32 %v5378_v56, %v467_v22  ;;  %v461_v51 = vmul.f32 %v5394_v11, %v453_v34  ;;  %v5416_v2 = vpop.eup %4935  ;;  %v447_v6 = vmul.f32 1.0614054, %v5414_v60  ;;  %4949 = vpow2.f32 %v540_v47 }
 0x333   :  { %v474_v49 = vmul.f32 %v5383_v61, %v466_v33  ;;  %v460_v5 = vmul.f32 %v5403_v27, %v452_v58  ;;  %v4938_v13 = vpop.eup %4937  ;;  %v446_v12 = vmul.f32 1.0614054, %v5416_v2  ;;  %4951 = vpow2.f32 %v538_v52 }
 0x334   :  { %v483_v53 = vadd.f32 -0.28449672, %v475_v42  ;;  %v469_v63 = vadd.f32 1.4214138, %v461_v51  ;;  %v455_v17 = vadd.f32 -1.4531521, %v447_v6  ;;  %v4940_v22 = vpop.eup %4939  ;;  %4953 = vpow2.f32 %v544_v0 }
 0x335   :  { %v482_v62 = vadd.f32 -0.28449672, %v474_v49  ;;  %v468_v9 = vadd.f32 1.4214138, %v460_v5  ;;  %v454_v21 = vadd.f32 -1.4531521, %v446_v12 }
 0x336   :  { %v491_v4 = vmul.f32 %v5378_v56, %v483_v53  ;;  %v477_v10 = vmul.f32 %v5394_v11, %v469_v63  ;;  %v463_v38 = vmul.f32 %v5414_v60, %v455_v17  ;;  %v542_v52 = vmul.f32 1.442695, %v528_v48 }
 0x337   :  { %v490_v8 = vmul.f32 %v5383_v61, %v482_v62  ;;  %v476_v34 = vmul.f32 %v5403_v27, %v468_v9  ;;  %v462_v43 = vmul.f32 %v5416_v2, %v454_v21  ;;  %v5430_v23 = vpop.eup %4941  ;;  %vm5129_vm8 = vmmov 0  }
 0x338   :  { %v499_v15 = vadd.f32 0.2548296, %v491_v4  ;;  %v485_v19 = vadd.f32 -0.28449672, %v477_v10  ;;  %v471_v53 = vadd.f32 1.4214138, %v463_v38  ;;  %v4944_v4 = vpop.eup %4943  ;;  %4955 = vpow2.f32 %v542_v52 }
 0x339   :  { %v498_v18 = vadd.f32 0.2548296, %v490_v8  ;;  %v484_v51 = vadd.f32 -0.28449672, %v476_v34  ;;  %v470_v59 = vadd.f32 1.4214138, %v462_v43 }
 0x33a   :  { %v507_v33 = vmul.f32 %v5378_v56, %v499_v15  ;;  %v493_v42 = vmul.f32 %v5394_v11, %v485_v19  ;;  %v449_v63 = vmul.f32 1.0614054, %v5430_v23 }
 0x33b   :  { %v506_v41 = vmul.f32 %v5383_v61, %v498_v18  ;;  %v492_v47 = vmul.f32 %v5403_v27, %v484_v51  ;;  %v479_v61 = vmul.f32 %v5414_v60, %v471_v53  ;;  %v478_v6 = vmul.f32 %v5416_v2, %v470_v59 }
 0x33c   :  { %v547_v49 = vmul.f32 %v4938_v13, %v507_v33  ;;  %v501_v56 = vadd.f32 0.2548296, %v493_v42  ;;  %v5437_v13 = vpop.eup %4945  ;;  %v457_v12 = vadd.f32 -1.4531521, %v449_v63 }
 0x33d   :  { %v546_v58 = vmul.f32 %v4940_v22, %v506_v41  ;;  %v500_v10 = vadd.f32 0.2548296, %v492_v47  ;;  %v487_v0 = vadd.f32 -0.28449672, %v479_v61  ;;  %v486_v9 = vadd.f32 -0.28449672, %v478_v6  ;;  %v4948_v22 = vpop.eup %4947 }
 0x33e   :  { %v555_v62 = vsub.f32 1.0, %v547_v49  ;;  %v509_v26 = vmul.f32 %v5394_v11, %v501_v56  ;;  %v448_v17 = vmul.f32 1.0614054, %v5437_v13  ;;  %v465_v21 = vmul.f32 %v5430_v23, %v457_v12  ;;  %v4950_v41 = vpop.eup %4949 }
 0x33f   :  { %v554_v5 = vsub.f32 1.0, %v546_v58  ;;  %v508_v19 = vmul.f32 %v5403_v27, %v500_v10  ;;  %v495_v11 = vmul.f32 %v5414_v60, %v487_v0  ;;  %v4952_v58 = vpop.eup %4951 }
 0x340   :  { %v563_v8 = vmul.f32 %v555_v62, %v5368_v45  ;;  %v549_v15 = vmul.f32 %v4944_v4, %v509_v26  ;;  %v494_v45 = vmul.f32 %v5416_v2, %v486_v9  ;;  %v456_v38 = vadd.f32 -1.4531521, %v448_v17  ;;  %v4954_v47 = vpop.eup %4953 }
 0x341   :  { %v562_v14 = vmul.f32 %v554_v5, %v5371_v46  ;;  %v548_v42 = vmul.f32 %v4948_v22, %v508_v19  ;;  %v503_v43 = vadd.f32 0.2548296, %v495_v11  ;;  %v473_v48 = vadd.f32 1.4214138, %v465_v21 }
 0x342   :  { %v571_v18 = vadd.f32 1.0, %v563_v8  ;;  %v557_v34 = vsub.f32 1.0, %v549_v15  ;;  %v502_v51 = vadd.f32 0.2548296, %v494_v45  ;;  %v464_v53 = vmul.f32 %v5437_v13, %v456_v38 }
 0x343   :  { %v570_v33 = vadd.f32 1.0, %v562_v14  ;;  %v556_v56 = vsub.f32 1.0, %v548_v42  ;;  %v511_v59 = vmul.f32 %v5414_v60, %v503_v43  ;;  %v481_v62 = vmul.f32 %v5430_v23, %v473_v48 }
 0x344   :  { %v579_v46 = vmul.f32 %v571_v18, %v5358_v37  ;;  %v565_v27 = vmul.f32 %v557_v34, %v5381_v57  ;;  %v510_v61 = vmul.f32 %v5416_v2, %v502_v51  ;;  %v472_v63 = vadd.f32 1.4214138, %v464_v53 }
 0x345   :  { %v578_v49 = vmul.f32 %v570_v33, %v5363_v40  ;;  %v564_v40 = vmul.f32 %v556_v56, %v5412_v54  ;;  %v551_v57 = vmul.f32 %v4950_v41, %v511_v59  ;;  %v489_v5 = vadd.f32 -0.28449672, %v481_v62  ;;  %v4956_v41 = vpop.eup %4955  ;;  %v588_v59 = vld [vmem:[%s6303_s1 + $0x120] sm:$0xff] }
 0x346   :  { %v573_v37 = vadd.f32 1.0, %v565_v27  ;;  %v380_v26 = vmul.f32 0.5, %v5345_v7  ;;  %v550_v6 = vmul.f32 %v4952_v58, %v510_v61  ;;  %v480_v60 = vmul.f32 %v5437_v13, %v472_v63 }
 0x347   :  { %v4808_v4 = vpack.c.bf16 %v579_v46, %v578_v49  ;;  %v572_v10 = vadd.f32 1.0, %v564_v40  ;;  %v559_v0 = vsub.f32 1.0, %v551_v57  ;;  %v497_v2 = vmul.f32 %v5430_v23, %v489_v5 }
 0x348   :  { %v581_v8 = vmul.f32 %v573_v37, %v5374_v50  ;;  %v407_v54 = vsel %vm399_vm7, 1.0, %v5127_v44  ;;  %v558_v52 = vsub.f32 1.0, %v550_v6  ;;  %v488_v12 = vadd.f32 -0.28449672, %v480_v60 }
 0x349   :  { %4809 = vmatprep.subr.bf16.mxu1 %v4808_v4  ;;  %v580_v7 = vmul.f32 %v572_v10, %v380_v26  ;;  %v567_v14 = vmul.f32 %v559_v0, %v407_v54  ;;  %v505_v15 = vadd.f32 0.2548296, %v497_v2  ;;  %v383_v50 = vmul.f32 0.5, %v5351_v25 }
 0x34a   :  { %4811 = vmatpush3.bf16.msra.mxu1 %v4808_v4  ;;  %v566_v9 = vmul.f32 %v558_v52, %v406_v39  ;;  %v496_v17 = vmul.f32 %v5437_v13, %v488_v12  ;;  %v382_v21 = vmul.f32 0.5, %v5353_v30  ;;  %v409_v25 = vsel %vm401_vm9, 1.0, %v5127_v44 }
 0x34b   :  { %v575_v18 = vadd.f32 1.0, %v567_v14  ;;  %v513_v19 = vmul.f32 %v5430_v23, %v505_v15  ;;  %v4812_v11 = vpack.c.bf16 %v581_v8, %v580_v7  ;;  %v385_v49 = vmul.f32 0.5, %v5376_v55  ;;  %v589_v55 = vld [vmem:[%s6303_s1 + $0x128] sm:$0xff] }
 0x34c   :  { %v574_v36 = vadd.f32 1.0, %v566_v9  ;;  %v504_v22 = vadd.f32 0.2548296, %v496_v17  ;;  %v384_v51 = vmul.f32 0.5, %v5386_v1  ;;  %v704_v1 = vpop.permute.xlu0 %703 }
 0x34d   :  { %v583_v33 = vmul.f32 %v575_v18, %v383_v50  ;;  %v553_v34 = vmul.f32 %v4954_v47, %v513_v19  ;;  %4813 = vmatprep.subr.bf16.mxu1 %v4812_v11  ;;  %v699_v47 = vpop.permute.xlu1 %698 }
 0x34e   :  { %v582_v45 = vmul.f32 %v574_v36, %v382_v21  ;;  %v512_v38 = vmul.f32 %v5437_v13, %v504_v22  ;;  %4815 = vmatpush3.bf16.msra.mxu1 %v4812_v11 }
 0x34f   :  { %v561_v46 = vsub.f32 1.0, %v553_v34 }
 0x350   :  { %v552_v23 = vmul.f32 %v4956_v41, %v512_v38  ;;  %v4816_v42 = vpack.c.bf16 %v583_v33, %v582_v45  ;;  %v714_v60 = vpop.permute.xlu0 %713  ;;  %v780_v38 = vld [vmem:[%s6303_s1 + $0x150] sm:$0xff] }
 0x351   :  { %v569_v30 = vmul.f32 %v561_v46, %v409_v25  ;;  %v709_v10 = vpop.permute.xlu1 %708 }
 0x352   :  { %v560_v43 = vsub.f32 1.0, %v552_v23  ;;  %4817 = vmatprep.subr.bf16.mxu1 %v4816_v42 }
 0x353   :  { %v577_v48 = vadd.f32 1.0, %v569_v30  ;;  %4819 = vmatpush3.bf16.msra.mxu1 %v4816_v42 }
 0x354   :  { %v568_v27 = vmul.f32 %v560_v43, %v408_v3 }
 0x355   :  { %v585_v13 = vmul.f32 %v577_v48, %v385_v49 }
 0x356   :  { %v576_v53 = vadd.f32 1.0, %v568_v27 }
 0x358   :  { %v584_v58 = vmul.f32 %v576_v53, %v384_v51 }
 0x35a   :  { %v4820_v56 = vpack.c.bf16 %v585_v13, %v584_v58 }
 0x35c   :  { %4821 = vmatprep.subr.bf16.mxu1 %v4820_v56 }
 0x35d   :  { %4823 = vmatpush3.bf16.msra.mxu1 %v4820_v56 }
 0x35e   :  { %4536 = vmatprep.subr.mxu1 %v780_v38 }
 0x360   :  { %4531 = vmatmul.mubr.msk.f32.vlgmr.msra.gmra.mrb[8].mxu1 %vm590_vm2, %v587_v16 }
 0x361   :  { %4533 = vmatprep.mubr.msk.f32.mxu1 %vm590_vm2, %v588_v59  ;;  %4537 = vmatpush3.msra.mxu1 %v780_v38 }
 0x364   :  { %4534 = vmatmul.mubr.msk.f32.gmra.mrb[10].mxu1 %vm590_vm2, %v589_v55  ;;  %vm1265_vm2 = vcmask 7168  }
 0x433   :  { %v4532_v62 = vpop.f32.mrb[8].mxu1 }
 0x434   :  { %v689_v37 = vadd.f32 %v4532_v62, %v5207_v28  ;;  %v669_v61 = vpop.f32.mrb[9].mxu1 }
 0x435   :  { %v688_v63 = vadd.f32 %v669_v61, %v5209_v29 }
 0x436   :  { %v5489_v4 = vadd.f32 %v704_v1, %v689_v37 }
 0x437   :  { %v5491_v40 = vadd.f32 %v699_v47, %v688_v63  ;;  %v4535_v57 = vpop.f32.mrb[10].mxu1 }
 0x438   :  { %v691_v5 = vadd.f32 %v4535_v57, %v5213_v31  ;;  %v679_v26 = vpop.f32.mrb[11].mxu1  ;;  %v723_v6 = vsel %vm122_vm0, %v5489_v4, 0.0 }
 0x439   :  { %v690_v8 = vadd.f32 %v679_v26, %v5215_v32  ;;  %724 = vadd.xlane.f32.xlu0 %v723_v6  ;;  %v720_v28 = vsel %vm122_vm0, %v5491_v40, 0.0  ;;  %v987_v6 = vld [vmem:[%s6303_s1 + $0x160] sm:$0xff] }
 0x43a   :  { %v5499_v29 = vadd.f32 %v714_v60, %v691_v5  ;;  %721 = vadd.xlane.f32.xlu1 %v720_v28  ;;  %v988_v60 = vld [vmem:[%s6303_s1 + $0x168] sm:$0xff] }
 0x43b   :  { %v5501_v0 = vadd.f32 %v709_v10, %v690_v8  ;;  %v4824_v8 = vpack.c.bf16 %v988_v60, %v987_v6 }
 0x43c   :  { %v729_v31 = vsel %vm122_vm0, %v5499_v29, 0.0 }
 0x43d   :  { %v726_v2 = vsel %vm122_vm0, %v5501_v0, 0.0  ;;  %4825 = vmatprep.subr.bf16.mxu0 %v4824_v8 }
 0x43e   :  { %730 = vadd.xlane.f32.xlu1 %v729_v31  ;;  %727 = vadd.xlane.f32.xlu0 %v726_v2 }
 0x43f   :  { %4827 = vmatpush3.bf16.msra.mxu0 %v4824_v8 }
 0x4c6   :  { %v725_v54 = vpop.xlane.xlu0 %724 }
 0x4c7   :  { %v733_v32 = vmul.f32 0.125, %v725_v54  ;;  %v722_v52 = vpop.xlane.xlu1 %721 }
 0x4c8   :  { %v732_v12 = vmul.f32 0.125, %v722_v52 }
 0x4c9   :  { %v737_v7 = vsub.f32 %v5489_v4, %v733_v32 }
 0x4ca   :  { %v736_v14 = vsub.f32 %v5491_v40, %v732_v12 }
 0x4cb   :  { %v728_v39 = vpop.xlane.xlu0 %727  ;;  %v731_v15 = vpop.xlane.xlu1 %730  ;;  %v741_v9 = vmul.f32 %v737_v7, %v737_v7 }
 0x4cc   :  { %v734_v17 = vmul.f32 0.125, %v728_v39  ;;  %v735_v50 = vmul.f32 0.125, %v731_v15  ;;  %v740_v18 = vmul.f32 %v736_v14, %v736_v14 }
 0x4cd   :  { %v747_v19 = vsel %vm122_vm0, %v741_v9, 0.0 }
 0x4ce   :  { %v738_v11 = vsub.f32 %v5501_v0, %v734_v17  ;;  %v739_v21 = vsub.f32 %v5499_v29, %v735_v50  ;;  %748 = vadd.xlane.f32.xlu1 %v747_v19  ;;  %v744_v36 = vsel %vm122_vm0, %v740_v18, 0.0 }
 0x4cf   :  { %745 = vadd.xlane.f32.xlu0 %v744_v36 }
 0x4d0   :  { %v742_v22 = vmul.f32 %v738_v11, %v738_v11  ;;  %v743_v33 = vmul.f32 %v739_v21, %v739_v21 }
 0x4d2   :  { %v750_v34 = vsel %vm122_vm0, %v742_v22, 0.0  ;;  %v753_v45 = vsel %vm122_vm0, %v743_v33, 0.0 }
 0x4d3   :  { %751 = vadd.xlane.f32.xlu0 %v750_v34  ;;  %754 = vadd.xlane.f32.xlu1 %v753_v45 }
 0x55b   :  { %v749_v41 = vpop.xlane.xlu1 %748 }
 0x55c   :  { %v757_v46 = vmul.f32 0.125, %v749_v41  ;;  %v746_v25 = vpop.xlane.xlu0 %745 }
 0x55d   :  { %v756_v23 = vmul.f32 0.125, %v746_v25 }
 0x55e   :  { %v761_v42 = vadd.f32 1e-05, %v757_v46 }
 0x55f   :  { %v760_v30 = vadd.f32 1e-05, %v756_v23 }
 0x560   :  { %4957 = vrsqrt.f32 %v761_v42  ;;  %v752_v43 = vpop.xlane.xlu0 %751  ;;  %v755_v48 = vpop.xlane.xlu1 %754 }
 0x561   :  { %4959 = vrsqrt.f32 %v760_v30  ;;  %v758_v3 = vmul.f32 0.125, %v752_v43  ;;  %v759_v49 = vmul.f32 0.125, %v755_v48 }
 0x563   :  { %v762_v27 = vadd.f32 1e-05, %v758_v3  ;;  %v763_v13 = vadd.f32 1e-05, %v759_v49 }
 0x565   :  { %4961 = vrsqrt.f32 %v762_v27 }
 0x566   :  { %4963 = vrsqrt.f32 %v763_v13 }
 0x56a   :  { %v4958_v51 = vpop.eup %4957 }
 0x56b   :  { %v4960_v53 = vpop.eup %4959  ;;  %v769_v58 = vmul.f32 %v4958_v51, %v737_v7 }
 0x56c   :  { %v768_v56 = vmul.f32 %v4960_v53, %v736_v14 }
 0x56d   :  { %v773_v16 = vmul.f32 %v769_v58, %v5294_v24 }
 0x56e   :  { %v772_v59 = vmul.f32 %v768_v56, %v5294_v24 }
 0x56f   :  { %v4962_v55 = vpop.eup %4961  ;;  %v777_v37 = vadd.f32 %v773_v16, %v5303_v35 }
 0x570   :  { %v4964_v1 = vpop.eup %4963  ;;  %v776_v62 = vadd.f32 %v772_v59, %v5303_v35  ;;  %v770_v47 = vmul.f32 %v4962_v55, %v738_v11 }
 0x571   :  { %v771_v61 = vmul.f32 %v4964_v1, %v739_v21 }
 0x572   :  { %4538 = vmatprep.mubr.msk.f32.mxu1 %vm122_vm0, %v776_v62  ;;  %v774_v63 = vmul.f32 %v770_v47, %v5294_v24 }
 0x573   :  { %4539 = vmatmul.mubr.msk.f32.vlgmr.msra.gmra.mrb[12].mxu1 %vm122_vm0, %v777_v37  ;;  %v775_v57 = vmul.f32 %v771_v61, %v5294_v24  ;;  %v781_v24 = vld [vmem:[%s6303_s1 + $0x158] sm:$0xff] }
 0x574   :  { %v778_v5 = vadd.f32 %v774_v63, %v5303_v35 }
 0x575   :  { %v779_v26 = vadd.f32 %v775_v57, %v5303_v35  ;;  %v785_v35 = vrot.slane %v781_v24, %v5287_v20 }
 0x576   :  { %4541 = vmatprep.mubr.msk.f32.mxu1 %vm122_vm0, %v778_v5 }
 0x577   :  { %4542 = vmatmul.mubr.msk.f32.gmra.mrb[14].mxu1 %vm122_vm0, %v779_v26 }
 0x646   :  { %v4540_v28 = vpop.f32.mrb[12].mxu1 }
 0x647   :  { %v5540_v10 = vadd.f32 %v4540_v28, %v785_v35  ;;  %v864_v31 = vpop.f32.mrb[13].mxu1 }
 0x648   :  { %v5542_v2 = vadd.f32 %v864_v31, %v785_v35 }
 0x649   :  { %v5545_v54 = vmul.f32 0.70710677, %v5540_v10 }
 0x64a   :  { %v5548_v32 = vmul.f32 0.70710677, %v5542_v2  ;;  %v4543_v52 = vpop.f32.mrb[14].mxu1 }
 0x64b   :  { %v900_v12 = vand.u32 2147483647, %v5545_v54  ;;  %v5551_v7 = vadd.f32 %v4543_v52, %v785_v35  ;;  %v874_v14 = vpop.f32.mrb[15].mxu1  ;;  %vm892_vm11 = vcmp.ge.f32.partialorder %v5545_v54, 0.0 }
 0x64c   :  { %v899_v39 = vand.u32 2147483647, %v5548_v32  ;;  %v5554_v15 = vadd.f32 %v874_v14, %v785_v35  ;;  %vm891_vm12 = vcmp.ge.f32.partialorder %v5548_v32, 0.0 }
 0x64d   :  { %v904_v9 = vmul.f32 0.3275911, %v900_v12  ;;  %v5557_v50 = vmul.f32 0.70710677, %v5551_v7  ;;  %v952_v45 = vsub.f32 0.0, %v900_v12 }
 0x64e   :  { %v903_v17 = vmul.f32 0.3275911, %v899_v39  ;;  %v5560_v19 = vmul.f32 0.70710677, %v5554_v15  ;;  %v951_v41 = vsub.f32 0.0, %v899_v39 }
 0x64f   :  { %v908_v18 = vadd.f32 1.0, %v904_v9  ;;  %v902_v21 = vand.u32 2147483647, %v5557_v50  ;;  %v956_v25 = vmul.f32 %v952_v45, %v900_v12  ;;  %vm894_vm13 = vcmp.ge.f32.partialorder %v5557_v50, 0.0 }
 0x650   :  { %v907_v11 = vadd.f32 1.0, %v903_v17  ;;  %v901_v22 = vand.u32 2147483647, %v5560_v19  ;;  %v955_v30 = vmul.f32 %v951_v41, %v899_v39  ;;  %vm893_vm15 = vcmp.ge.f32.partialorder %v5560_v19, 0.0 }
 0x651   :  { %4965 = vrcp.f32 %v908_v18  ;;  %v906_v36 = vmul.f32 0.3275911, %v902_v21  ;;  %v954_v43 = vsub.f32 0.0, %v902_v21  ;;  %v961_v49 = vmul.f32 1.442695, %v956_v25 }
 0x652   :  { %4967 = vrcp.f32 %v907_v11  ;;  %v905_v34 = vmul.f32 0.3275911, %v901_v22  ;;  %v953_v13 = vsub.f32 0.0, %v901_v22  ;;  %v959_v58 = vmul.f32 1.442695, %v955_v30 }
 0x653   :  { %v910_v33 = vadd.f32 1.0, %v906_v36  ;;  %v958_v56 = vmul.f32 %v954_v43, %v902_v21  ;;  %v896_v30 = vsel %vm892_vm11, 1.0, %v5127_v44 }
 0x654   :  { %v909_v38 = vadd.f32 1.0, %v905_v34  ;;  %v957_v37 = vmul.f32 %v953_v13, %v901_v22 }
 0x655   :  { %4969 = vrcp.f32 %v910_v33  ;;  %v965_v63 = vmul.f32 1.442695, %v958_v56 }
 0x656   :  { %4971 = vrcp.f32 %v909_v38  ;;  %v963_v35 = vmul.f32 1.442695, %v957_v37 }
 0x657   :  { %4973 = vpow2.f32 %v961_v49 }
 0x658   :  { %4975 = vpow2.f32 %v959_v58  ;;  %v883_v58 = vmul.f32 0.5, %v5542_v2 }
 0x659   :  { %4977 = vpow2.f32 %v965_v63  ;;  %v885_v63 = vmul.f32 0.5, %v5554_v15  ;;  %v1519_v15 = vld [vmem:[%s6303_s1 + $0x1a8] sm:$0xff] }
 0x65a   :  { %4979 = vpow2.f32 %v963_v35  ;;  %v1522_v35 = vld [vmem:[%s6303_s1 + $0x1c0] sm:$0xff] }
 0x65b   :  { %v4966_v46 = vpop.eup %4965 }
 0x65c   :  { %v4968_v23 = vpop.eup %4967  ;;  %v916_v42 = vmul.f32 1.0614054, %v4966_v46 }
 0x65d   :  { %v915_v48 = vmul.f32 1.0614054, %v4968_v23 }
 0x65e   :  { %v920_v3 = vadd.f32 -1.4531521, %v916_v42 }
 0x65f   :  { %v919_v27 = vadd.f32 -1.4531521, %v915_v48  ;;  %v4970_v51 = vpop.eup %4969 }
 0x660   :  { %v924_v53 = vmul.f32 %v4966_v46, %v920_v3  ;;  %v918_v59 = vmul.f32 1.0614054, %v4970_v51  ;;  %v4972_v1 = vpop.eup %4971 }
 0x661   :  { %v923_v16 = vmul.f32 %v4968_v23, %v919_v27  ;;  %v917_v57 = vmul.f32 1.0614054, %v4972_v1  ;;  %v4974_v21 = vpop.eup %4973 }
 0x662   :  { %v928_v55 = vadd.f32 1.4214138, %v924_v53  ;;  %v922_v47 = vadd.f32 -1.4531521, %v918_v59  ;;  %v4976_v33 = vpop.eup %4975  ;;  %v884_v59 = vmul.f32 0.5, %v5540_v10 }
 0x663   :  { %v927_v62 = vadd.f32 1.4214138, %v923_v16  ;;  %v921_v60 = vadd.f32 -1.4531521, %v917_v57  ;;  %v886_v57 = vmul.f32 0.5, %v5551_v7  ;;  %v1520_v7 = vld [vmem:[%s6303_s1 + $0x1b0] sm:$0xff] }
 0x664   :  { %v932_v61 = vmul.f32 %v4966_v46, %v928_v55  ;;  %v926_v26 = vmul.f32 %v4970_v51, %v922_v47 }
 0x665   :  { %v931_v5 = vmul.f32 %v4968_v23, %v927_v62  ;;  %v925_v31 = vmul.f32 %v4972_v1, %v921_v60 }
 0x666   :  { %v936_v6 = vadd.f32 -0.28449672, %v932_v61  ;;  %v930_v24 = vadd.f32 1.4214138, %v926_v26  ;;  %v897_v61 = vsel %vm893_vm15, 1.0, %v5127_v44  ;;  %v1517_v26 = vld [vmem:[%s6303_s1 + $0x198] sm:$0xff] }
 0x667   :  { %v935_v8 = vadd.f32 -0.28449672, %v931_v5  ;;  %v929_v39 = vadd.f32 1.4214138, %v925_v31  ;;  %v1515_v31 = vld [vmem:[%s6302_s0 + $0x20] sm:$0xff]  ;;  %vm3233_vm15 = vcmask 64516  }
 0x668   :  { %v940_v28 = vmul.f32 %v4966_v46, %v936_v6  ;;  %v934_v12 = vmul.f32 %v4970_v51, %v930_v24  ;;  %v1518_v6 = vld [vmem:[%s6303_s1 + $0x1a0] sm:$0xff]  ;;  %v1521_v24 = vld [vmem:[%s6303_s1 + $0x1b8] sm:$0xff] }
 0x669   :  { %v939_v52 = vmul.f32 %v4968_v23, %v935_v8  ;;  %v933_v11 = vmul.f32 %v4972_v1, %v929_v39  ;;  %v4828_v60 = vpack.c.bf16 %v1518_v6, %v1517_v26  ;;  %v4832_v8 = vpack.c.bf16 %v1520_v7, %v1519_v15  ;;  %v1525_v39 = vld [vmem:[%s6303_s1 + $0x1d8] sm:$0xff] }
 0x66a   :  { %v944_v14 = vadd.f32 0.2548296, %v940_v28  ;;  %v938_v17 = vadd.f32 -0.28449672, %v934_v12  ;;  %v4836_v28 = vpack.c.bf16 %v1522_v35, %v1521_v24  ;;  %v1524_v12 = vld [vmem:[%s6303_s1 + $0x1d0] sm:$0xff] }
 0x66b   :  { %v943_v9 = vadd.f32 0.2548296, %v939_v52  ;;  %v937_v45 = vadd.f32 -0.28449672, %v933_v11  ;;  %4829 = vmatprep.subr.bf16.mxu0 %v4828_v60  ;;  %v1523_v52 = vld [vmem:[%s6303_s1 + $0x1c8] sm:$0xff]  ;;  %v1528_v11 = vld [vmem:[%s6303_s1 + $0x1f0] sm:$0xff] }
 0x66c   :  { %v948_v18 = vmul.f32 %v4966_v46, %v944_v14  ;;  %v942_v22 = vmul.f32 %v4970_v51, %v938_v17  ;;  %v4978_v46 = vpop.eup %4977  ;;  %v4840_v14 = vpack.c.bf16 %v1524_v12, %v1523_v52 }
 0x66d   :  { %v947_v36 = vmul.f32 %v4968_v23, %v943_v9  ;;  %v941_v42 = vmul.f32 %v4972_v1, %v937_v45  ;;  %v895_v23 = vsel %vm891_vm12, 1.0, %v5127_v44  ;;  %v4980_v32 = vpop.eup %4979  ;;  %v1526_v9 = vld [vmem:[%s6303_s1 + $0x1e0] sm:$0xff]  ;;  %v1532_v45 = vld [vmem:[%s6303_s1 + $0x210] sm:$0xff]  ;;  %vm3080_vm12 = vcmask 60416  }
 0x66e   :  { %v968_v34 = vmul.f32 %v4974_v21, %v948_v18  ;;  %v946_v41 = vadd.f32 0.2548296, %v942_v22  ;;  %v4844_v17 = vpack.c.bf16 %v1526_v9, %v1525_v39  ;;  %v1527_v18 = vld [vmem:[%s6303_s1 + $0x1e8] sm:$0xff]  ;;  %v1530_v22 = vld [vmem:[%s6303_s1 + $0x200] sm:$0xff] }
 0x66f   :  { %v967_v38 = vmul.f32 %v4976_v33, %v947_v36  ;;  %v945_v49 = vadd.f32 0.2548296, %v941_v42  ;;  %v4848_v21 = vpack.c.bf16 %v1528_v11, %v1527_v18  ;;  %v1529_v36 = vld [vmem:[%s6303_s1 + $0x1f8] sm:$0xff] }
 0x670   :  { %v972_v25 = vsub.f32 1.0, %v968_v34  ;;  %v950_v48 = vmul.f32 %v4970_v51, %v946_v41  ;;  %v898_v51 = vsel %vm894_vm13, 1.0, %v5127_v44  ;;  %v4852_v33 = vpack.c.bf16 %v1530_v22, %v1529_v36  ;;  %v1531_v34 = vld [vmem:[%s6303_s1 + $0x208] sm:$0xff] }
 0x671   :  { %v971_v43 = vsub.f32 1.0, %v967_v38  ;;  %v949_v53 = vmul.f32 %v4972_v1, %v945_v49  ;;  %v4856_v38 = vpack.c.bf16 %v1532_v45, %v1531_v34  ;;  %v1516_v41 = vld [vmem:[%s6302_s0 + $0x28] sm:$0xff]  ;;  %vm3084_vm13 = vcmask 1043456  }
 0x672   :  { %v976_v3 = vmul.f32 %v972_v25, %v896_v30  ;;  %v970_v54 = vmul.f32 %v4978_v46, %v950_v48  ;;  %v1091_v25 = vld [vmem:[%s6303_s1 + $0x170] sm:$0xff] }
 0x673   :  { %v975_v27 = vmul.f32 %v971_v43, %v895_v23  ;;  %v969_v55 = vmul.f32 %v4980_v32, %v949_v53  ;;  %v1095_v42 = vrot.slane %v1091_v25, %v5287_v20 }
 0x674   :  { %v980_v13 = vadd.f32 1.0, %v976_v3  ;;  %v974_v16 = vsub.f32 1.0, %v970_v54 }
 0x675   :  { %v979_v56 = vadd.f32 1.0, %v975_v27  ;;  %v973_v50 = vsub.f32 1.0, %v969_v55 }
 0x676   :  { %v978_v47 = vmul.f32 %v974_v16, %v898_v51  ;;  %v984_v37 = vmul.f32 %v980_v13, %v884_v59 }
 0x677   :  { %v983_v62 = vmul.f32 %v979_v56, %v883_v58  ;;  %v977_v1 = vmul.f32 %v973_v50, %v897_v61 }
 0x678   :  { %v982_v2 = vadd.f32 1.0, %v978_v47 }
 0x679   :  { %4548 = vmatprep.mubr.msk.f32.mxu0 %vm989_vm14, %v983_v62  ;;  %v981_v10 = vadd.f32 1.0, %v977_v1 }
 0x67a   :  { %4549 = vmatmul.mubr.msk.f32.vlgmr.msra.gmra.mrb[4].mxu0 %vm989_vm14, %v984_v37  ;;  %v986_v19 = vmul.f32 %v982_v2, %v886_v57 }
 0x67b   :  { %v985_v5 = vmul.f32 %v981_v10, %v885_v63  ;;  %4831 = vmatpush3.bf16.msra.mxu0 %v4828_v60 }
 0x67c   :  { %4833 = vmatprep.subr.bf16.mxu0 %v4832_v8 }
 0x67d   :  { %4551 = vmatprep.mubr.msk.f32.mxu0 %vm989_vm14, %v985_v5 }
 0x67e   :  { %4552 = vmatmul.mubr.msk.f32.gmra.mrb[6].mxu0 %vm989_vm14, %v986_v19 }
 0x67f   :  { %4596 = vmatprep.mubr.f32.mxu0 %v1515_v31  ;;  %4835 = vmatpush3.bf16.msra.mxu0 %v4832_v8 }
 0x680   :  { %4837 = vmatprep.subr.bf16.mxu0 %v4836_v28 }
 0x683   :  { %4839 = vmatpush3.bf16.msra.mxu0 %v4836_v28 }
 0x684   :  { %4841 = vmatprep.subr.bf16.mxu0 %v4840_v14 }
 0x687   :  { %4843 = vmatpush3.bf16.msra.mxu0 %v4840_v14 }
 0x688   :  { %4845 = vmatprep.subr.bf16.mxu0 %v4844_v17 }
 0x68b   :  { %4847 = vmatpush3.bf16.msra.mxu0 %v4844_v17 }
 0x68c   :  { %4849 = vmatprep.subr.bf16.mxu0 %v4848_v21 }
 0x68f   :  { %4851 = vmatpush3.bf16.msra.mxu0 %v4848_v21 }
 0x690   :  { %4853 = vmatprep.subr.bf16.mxu0 %v4852_v33 }
 0x693   :  { %4855 = vmatpush3.bf16.msra.mxu0 %v4852_v33 }
 0x694   :  { %4857 = vmatprep.subr.bf16.mxu0 %v4856_v38 }
 0x697   :  { %4859 = vmatpush3.bf16.msra.mxu0 %v4856_v38 }
 0x69a   :  { %4597 = vmatmul.mubr.f32.vlgmr.msra.gmra.mrb[8].mxu0 %v1516_v41 }
 0x74d   :  { %v4550_v30 = vpop.f32.mrb[4].mxu0 }
 0x74e   :  { %v1088_v43 = vadd.f32 %v4550_v30, %v5489_v4  ;;  %v1068_v48 = vpop.f32.mrb[5].mxu0 }
 0x74f   :  { %v1087_v46 = vadd.f32 %v1068_v48, %v5491_v40 }
 0x750   :  { %v1097_v3 = vadd.f32 %v1095_v42, %v1088_v43 }
 0x751   :  { %v1096_v23 = vadd.f32 %v1095_v42, %v1087_v46  ;;  %v4553_v54 = vpop.f32.mrb[6].mxu0 }
 0x752   :  { %v1107_v49 = vsel %vm122_vm0, %v1097_v3, 0.0  ;;  %v1090_v13 = vadd.f32 %v4553_v54, %v5499_v29  ;;  %v1078_v53 = vpop.f32.mrb[7].mxu0 }
 0x753   :  { %1108 = vadd.xlane.f32.xlu1 %v1107_v49  ;;  %v1104_v27 = vsel %vm122_vm0, %v1096_v23, 0.0  ;;  %v1089_v32 = vadd.f32 %v1078_v53, %v5501_v0 }
 0x754   :  { %1105 = vadd.xlane.f32.xlu0 %v1104_v27  ;;  %v1099_v58 = vadd.f32 %v1095_v42, %v1090_v13 }
 0x755   :  { %v1098_v56 = vadd.f32 %v1095_v42, %v1089_v32  ;;  %v1101_v32 = vld [vmem:[%s6303_s1 + $0x180] sm:$0xff] }
 0x756   :  { %v1317_v4 = vsel %vm122_vm0, %v1099_v58, 0.0 }
 0x757   :  { %1318 = vadd.xlane.f32.xlu1 %v1317_v4  ;;  %v1314_v40 = vsel %vm122_vm0, %v1098_v56, 0.0 }
 0x758   :  { %1315 = vadd.xlane.f32.xlu0 %v1314_v40  ;;  %v1103_v40 = vld [vmem:[%s6303_s1 + $0x190] sm:$0xff] }
 0x76d   :  { %v5650_v9 = vpop.f32.mrb[8].mxu0 }
 0x76e   :  { %v5652_v17 = vpop.f32.mrb[9].mxu0 }
 0x7e0   :  { %v1109_v16 = vpop.xlane.xlu1 %1108 }
 0x7e1   :  { %v1106_v59 = vpop.xlane.xlu0 %1105 }
 0x7e2   :  { %v1110_v51 = vadd.f32 %v1109_v16, %v1106_v59  ;;  %v1102_v16 = vld [vmem:[%s6303_s1 + $0x188] sm:$0xff] }
 0x7e4   :  { %v1111_v55 = vrot.slane %v1110_v51, 4  ;;  %v1319_v47 = vpop.xlane.xlu1 %1318 }
 0x7e5   :  { %v1316_v50 = vpop.xlane.xlu0 %1315 }
 0x7e6   :  { %v1112_v62 = vadd.f32 %v1111_v55, %v1110_v51  ;;  %v1320_v29 = vadd.f32 %v1319_v47, %v1316_v50 }
 0x7e8   :  { %v1113_v37 = vrot.slane %v1112_v62, 2  ;;  %v1321_v1 = vrot.slane %v1320_v29, 4 }
 0x7ea   :  { %v1114_v61 = vadd.f32 %v1113_v37, %v1112_v62  ;;  %v1322_v2 = vadd.f32 %v1321_v1, %v1320_v29 }
 0x7ec   :  { %v1115_v0 = vrot.slane %v1114_v61, 1  ;;  %v1323_v10 = vrot.slane %v1322_v2, 2 }
 0x7ee   :  { %v1116_v63 = vadd.f32 %v1115_v0, %v1114_v61  ;;  %v1324_v5 = vadd.f32 %v1323_v10, %v1322_v2 }
 0x7f0   :  { %v1117_v57 = vmul.f32 0.0078125, %v1116_v63  ;;  %v1325_v6 = vrot.slane %v1324_v5, 1 }
 0x7f2   :  { %v1119_v19 = vsub.f32 %v1097_v3, %v1117_v57  ;;  %v1118_v26 = vsub.f32 %v1096_v23, %v1117_v57  ;;  %v1326_v7 = vadd.f32 %v1325_v6, %v1324_v5  ;;  %v1613_v5 = vsel %vm122_vm0, %v5650_v9, 0.0 }
 0x7f4   :  { %v1121_v15 = vmul.f32 %v1119_v19, %v1119_v19  ;;  %v1120_v60 = vmul.f32 %v1118_v26, %v1118_v26  ;;  %v1327_v35 = vmul.f32 0.0078125, %v1326_v7 }
 0x7f6   :  { %v1125_v8 = vsel %vm122_vm0, %v1121_v15, 0.0  ;;  %v1122_v24 = vsel %vm122_vm0, %v1120_v60, 0.0  ;;  %v1329_v28 = vsub.f32 %v1099_v58, %v1327_v35  ;;  %v1328_v31 = vsub.f32 %v1098_v56, %v1327_v35  ;;  %v1100_v58 = vld [vmem:[%s6303_s1 + $0x178] sm:$0xff] }
 0x7f7   :  { %1126 = vadd.xlane.f32.xlu1 %v1125_v8  ;;  %1123 = vadd.xlane.f32.xlu0 %v1122_v24 }
 0x7f8   :  { %v1331_v52 = vmul.f32 %v1329_v28, %v1329_v28  ;;  %v1330_v12 = vmul.f32 %v1328_v31, %v1328_v31 }
 0x7fa   :  { %v1335_v14 = vsel %vm122_vm0, %v1331_v52, 0.0  ;;  %v1332_v39 = vsel %vm122_vm0, %v1330_v12, 0.0 }
 0x7fb   :  { %1336 = vadd.xlane.f32.xlu1 %v1335_v14  ;;  %1333 = vadd.xlane.f32.xlu0 %v1332_v39 }
 0x884   :  { %v1124_v18 = vpop.xlane.xlu0 %1123  ;;  %v1127_v11 = vpop.xlane.xlu1 %1126 }
 0x885   :  { %v1128_v21 = vadd.f32 %v1127_v11, %v1124_v18 }
 0x887   :  { %v1129_v36 = vrot.slane %v1128_v21, 4 }
 0x888   :  { %v1334_v34 = vpop.xlane.xlu0 %1333  ;;  %v1337_v45 = vpop.xlane.xlu1 %1336 }
 0x889   :  { %v1130_v22 = vadd.f32 %v1129_v36, %v1128_v21  ;;  %v1338_v38 = vadd.f32 %v1337_v45, %v1334_v34 }
 0x88b   :  { %v1131_v33 = vrot.slane %v1130_v22, 2  ;;  %v1339_v25 = vrot.slane %v1338_v38, 4 }
 0x88d   :  { %v1132_v41 = vadd.f32 %v1131_v33, %v1130_v22  ;;  %v1340_v30 = vadd.f32 %v1339_v25, %v1338_v38 }
 0x88f   :  { %v1133_v42 = vrot.slane %v1132_v41, 1  ;;  %v1341_v48 = vrot.slane %v1340_v30, 2 }
 0x891   :  { %v1134_v43 = vadd.f32 %v1133_v42, %v1132_v41  ;;  %v1342_v3 = vadd.f32 %v1341_v48, %v1340_v30 }
 0x893   :  { %v1135_v46 = vmul.f32 0.0078125, %v1134_v43  ;;  %v1343_v49 = vrot.slane %v1342_v3, 1 }
 0x895   :  { %v1136_v23 = vadd.f32 1e-05, %v1135_v46  ;;  %v1344_v27 = vadd.f32 %v1343_v49, %v1342_v3  ;;  %v1653_v3 = vld [vmem:[%s6303_s1 + $0x250] sm:$0xff]  ;;  %v1652_v49 = vld [vmem:[%s6303_s1 + $0x248] sm:$0xff] }
 0x897   :  { %4981 = vrsqrt.f32 %v1136_v23  ;;  %v1345_v54 = vmul.f32 0.0078125, %v1344_v27  ;;  %v1654_v23 = vld [vmem:[%s6303_s1 + $0x258] sm:$0xff] }
 0x898   :  { %v1962_v27 = vld [vmem:[%s6303_s1 + $0x278] sm:$0xff] }
 0x899   :  { %v1346_v13 = vadd.f32 1e-05, %v1345_v54  ;;  %v1655_v54 = vld [vmem:[%s6303_s1 + $0x260] sm:$0xff] }
 0x89b   :  { %4983 = vrsqrt.f32 %v1346_v13  ;;  %v1963_v13 = vld [vmem:[%s6303_s1 + $0x280] sm:$0xff] }
 0x8a1   :  { %v4982_v53 = vpop.eup %4981 }
 0x8a2   :  { %v1139_v56 = vmul.f32 %v4982_v53, %v1119_v19  ;;  %v1138_v4 = vmul.f32 %v4982_v53, %v1118_v26  ;;  %v1610_v19 = vsel %vm122_vm0, %v5652_v17, 0.0  ;;  %v5727_v53 = vld [vmem:[%s6303_s1 + $0x3c8] sm:$0xff] }
 0x8a3   :  { %4554 = vmatprep.subr.mxu1 %v5727_v53 }
 0x8a4   :  { %v1141_v59 = vmul.f32 %v1139_v56, %v1101_v32  ;;  %v1140_v51 = vmul.f32 %v1138_v4, %v1100_v58  ;;  %4555 = vmatpush3.msra.mxu1 %v5727_v53 }
 0x8a5   :  { %v4984_v47 = vpop.eup %4983  ;;  %4559 = vmatprep.subr.mxu1 %v5727_v53 }
 0x8a6   :  { %v1143_v55 = vadd.f32 %v1141_v59, %v1103_v40  ;;  %v1142_v62 = vadd.f32 %v1140_v51, %v1102_v16  ;;  %v1349_v29 = vmul.f32 %v4984_v47, %v1329_v28  ;;  %v1348_v61 = vmul.f32 %v4984_v47, %v1328_v31 }
 0x8a8   :  { %v1147_v37 = vsel %vm122_vm0, %v1143_v55, 0.0  ;;  %v1144_v50 = vsel %vm122_vm0, %v1142_v62, 0.0  ;;  %v1351_v1 = vmul.f32 %v1349_v29, %v1101_v32  ;;  %v1350_v0 = vmul.f32 %v1348_v61, %v1100_v58 }
 0x8a9   :  { %1148 = vadd.xlane.f32.xlu1 %v1147_v37  ;;  %1145 = vadd.xlane.f32.xlu0 %v1144_v50  ;;  %v12_v50 = vld [vmem:[%s6303_s1 + $0x3b8] sm:$0xff] }
 0x8aa   :  { %v1353_v2 = vadd.f32 %v1351_v1, %v1103_v40  ;;  %v1352_v63 = vadd.f32 %v1350_v0, %v1102_v16 }
 0x8ac   :  { %v1357_v10 = vsel %vm122_vm0, %v1353_v2, 0.0  ;;  %v1354_v57 = vsel %vm122_vm0, %v1352_v63, 0.0 }
 0x8ad   :  { %1358 = vadd.xlane.f32.xlu1 %v1357_v10  ;;  %1355 = vadd.xlane.f32.xlu0 %v1354_v57 }
 0x8b1   :  { %1614 = vadd.xlane.f32.xlu1 %v1613_v5  ;;  %1611 = vadd.xlane.f32.xlu0 %v1610_v19 }
 0x936   :  { %v1146_v26 = vpop.xlane.xlu0 %1145  ;;  %v1149_v6 = vpop.xlane.xlu1 %1148 }
 0x937   :  { %v1150_v15 = vmul.f32 0.125, %v1146_v26  ;;  %v1151_v60 = vmul.f32 0.125, %v1149_v6 }
 0x939   :  { %v5674_v7 = vsub.f32 %v1142_v62, %v1150_v15  ;;  %v5676_v8 = vsub.f32 %v1143_v55, %v1151_v60 }
 0x93a   :  { %v1356_v28 = vpop.xlane.xlu0 %1355  ;;  %v1359_v31 = vpop.xlane.xlu1 %1358 }
 0x93b   :  { %v1154_v24 = vmul.f32 %v5674_v7, %v5674_v7  ;;  %v1155_v35 = vmul.f32 %v5676_v8, %v5676_v8  ;;  %v1360_v14 = vmul.f32 0.125, %v1356_v28  ;;  %v1361_v39 = vmul.f32 0.125, %v1359_v31 }
 0x93d   :  { %v1156_v52 = vsel %vm122_vm0, %v1154_v24, 0.0  ;;  %v1159_v12 = vsel %vm122_vm0, %v1155_v35, 0.0  ;;  %v5684_v18 = vsub.f32 %v1352_v63, %v1360_v14  ;;  %v5686_v11 = vsub.f32 %v1353_v2, %v1361_v39  ;;  %v13_v2 = vld [vmem:[%s6303_s1 + $0x3c0] sm:$0xff] }
 0x93e   :  { %1157 = vadd.xlane.f32.xlu0 %v1156_v52  ;;  %1160 = vadd.xlane.f32.xlu1 %v1159_v12  ;;  %v1612_v21 = vpop.xlane.xlu0 %1611  ;;  %v1615_v36 = vpop.xlane.xlu1 %1614  ;;  %v5739_v63 = vrot.slane %v12_v50, %v5287_v20  ;;  %v5743_v6 = vrot.slane %v13_v2, %v5287_v20  ;;  %v1609_v14 = vld [vmem:[%s6303_s1 + $0x220] sm:$0xff] }
 0x93f   :  { %v1616_v22 = vmul.f32 0.125, %v1612_v21  ;;  %v1617_v33 = vmul.f32 0.125, %v1615_v36  ;;  %v1364_v34 = vmul.f32 %v5684_v18, %v5684_v18  ;;  %v1365_v45 = vmul.f32 %v5686_v11, %v5686_v11 }
 0x941   :  { %v5693_v38 = vsub.f32 %v5652_v17, %v1616_v22  ;;  %v5696_v41 = vsub.f32 %v5650_v9, %v1617_v33  ;;  %v1366_v25 = vsel %vm122_vm0, %v1364_v34, 0.0  ;;  %v1369_v42 = vsel %vm122_vm0, %v1365_v45, 0.0 }
 0x942   :  { %1367 = vadd.xlane.f32.xlu0 %v1366_v25  ;;  %1370 = vadd.xlane.f32.xlu1 %v1369_v42 }
 0x943   :  { %v1620_v30 = vmul.f32 %v5693_v38, %v5693_v38  ;;  %v1621_v43 = vmul.f32 %v5696_v41, %v5696_v41 }
 0x945   :  { %v1622_v48 = vsel %vm122_vm0, %v1620_v30, 0.0  ;;  %v1625_v46 = vsel %vm122_vm0, %v1621_v43, 0.0 }
 0x946   :  { %1623 = vadd.xlane.f32.xlu0 %v1622_v48  ;;  %1626 = vadd.xlane.f32.xlu1 %v1625_v46 }
 0x957   :  { %1663 = vperm.xlu1 %4916, %v1653_v3  }
 0x95b   :  { %1668 = vperm.xlu1 %4916, %v1654_v23   ;;  %v1648_v23 = vld [vmem:[%s6303_s1 + $0x228] sm:$0xff] }
 0x95c   :  { %1658 = vperm.xlu0 %4915, %v1652_v49  }
 0x95f   :  { %1966 = vperm.xlu1 %4916, %v1962_v27   ;;  %v1649_v27 = vld [vmem:[%s6303_s1 + $0x230] sm:$0xff] }
 0x960   :  { %1673 = vperm.xlu0 %4915, %v1655_v54   ;;  %v1650_v54 = vld [vmem:[%s6303_s1 + $0x238] sm:$0xff] }
 0x964   :  { %1971 = vperm.xlu0 %4915, %v1963_v13   ;;  %v1651_v13 = vld [vmem:[%s6303_s1 + $0x240] sm:$0xff] }
 0x9cb   :  { %v1158_v32 = vpop.xlane.xlu0 %1157  ;;  %v1161_v58 = vpop.xlane.xlu1 %1160 }
 0x9cc   :  { %v1162_v56 = vmul.f32 0.125, %v1158_v32  ;;  %v1163_v4 = vmul.f32 0.125, %v1161_v58  ;;  %v1877_v32 = vld [vmem:[%s6303_s1 + $0x268] sm:$0xff] }
 0x9ce   :  { %v1164_v40 = vadd.f32 1e-05, %v1162_v56  ;;  %v1165_v16 = vadd.f32 1e-05, %v1163_v4 }
 0x9cf   :  { %v1368_v59 = vpop.xlane.xlu0 %1367  ;;  %v1371_v51 = vpop.xlane.xlu1 %1370 }
 0x9d0   :  { %4985 = vrsqrt.f32 %v1164_v40  ;;  %v1372_v55 = vmul.f32 0.125, %v1368_v59  ;;  %v1373_v62 = vmul.f32 0.125, %v1371_v51 }
 0x9d1   :  { %4987 = vrsqrt.f32 %v1165_v16 }
 0x9d2   :  { %v1374_v47 = vadd.f32 1e-05, %v1372_v55  ;;  %v1375_v37 = vadd.f32 1e-05, %v1373_v62 }
 0x9d3   :  { %v1624_v29 = vpop.xlane.xlu0 %1623  ;;  %v1627_v61 = vpop.xlane.xlu1 %1626 }
 0x9d4   :  { %4989 = vrsqrt.f32 %v1374_v47  ;;  %v1628_v1 = vmul.f32 0.125, %v1624_v29  ;;  %v1629_v0 = vmul.f32 0.125, %v1627_v61 }
 0x9d5   :  { %4991 = vrsqrt.f32 %v1375_v37 }
 0x9d6   :  { %v1630_v10 = vadd.f32 1e-05, %v1628_v1  ;;  %v1631_v57 = vadd.f32 1e-05, %v1629_v0 }
 0x9d7   :  { %v1664_v1 = vpop.permute.xlu1 %1663 }
 0x9d8   :  { %4993 = vrsqrt.f32 %v1630_v10 }
 0x9d9   :  { %4995 = vrsqrt.f32 %v1631_v57 }
 0x9da   :  { %v4986_v5 = vpop.eup %4985 }
 0x9db   :  { %v4988_v19 = vpop.eup %4987  ;;  %v1168_v26 = vmul.f32 %v4986_v5, %v5674_v7  ;;  %v1608_v7 = vld [vmem:[%s6303_s1 + $0x218] sm:$0xff]  ;;  %v1659_v29 = vpop.permute.xlu0 %1658 }
 0x9dc   :  { %v1169_v15 = vmul.f32 %v4988_v19, %v5676_v8  ;;  %v5766_v21 = vrot.slane %v1608_v7, %v5287_v20 }
 0x9dd   :  { %v1174_v60 = vmul.f32 %v5739_v63, %v1168_v26 }
 0x9de   :  { %v1175_v24 = vmul.f32 %v5739_v63, %v1169_v15  ;;  %v4990_v31 = vpop.eup %4989 }
 0x9df   :  { %v5749_v35 = vadd.f32 %v5743_v6, %v1174_v60  ;;  %v4992_v52 = vpop.eup %4991  ;;  %v1378_v8 = vmul.f32 %v4990_v31, %v5684_v18 }
 0x9e0   :  { %v5752_v28 = vadd.f32 %v5743_v6, %v1175_v24  ;;  %v1379_v12 = vmul.f32 %v4992_v52, %v5686_v11  ;;  %v5774_v11 = vrot.slane %v1609_v14, %v5287_v20  ;;  %v1674_v52 = vpop.permute.xlu0 %1673 }
 0x9e1   :  { %4997 = vtanh.f32 %v5749_v35  ;;  %v1380_v39 = vmul.f32 %v1378_v8, %v5739_v63 }
 0x9e2   :  { %4999 = vtanh.f32 %v5752_v28  ;;  %v4994_v36 = vpop.eup %4993  ;;  %v1381_v22 = vmul.f32 %v1379_v12, %v5739_v63 }
 0x9e3   :  { %v4996_v33 = vpop.eup %4995  ;;  %v5770_v34 = vadd.f32 %v1380_v39, %v5743_v6  ;;  %v1634_v18 = vmul.f32 %v4994_v36, %v5693_v38 }
 0x9e4   :  { %v5777_v45 = vadd.f32 %v1381_v22, %v5743_v6  ;;  %v1635_v25 = vmul.f32 %v4996_v33, %v5696_v41 }
 0x9e5   :  { %5001 = vtanh.f32 %v5770_v34  ;;  %v1640_v42 = vmul.f32 %v5766_v21, %v1634_v18 }
 0x9e6   :  { %5003 = vtanh.f32 %v5777_v45  ;;  %v1641_v30 = vmul.f32 %v5766_v21, %v1635_v25 }
 0x9e7   :  { %v1646_v43 = vadd.f32 %v5774_v11, %v1640_v42 }
 0x9e8   :  { %v1647_v38 = vadd.f32 %v5774_v11, %v1641_v30 }
 0x9ea   :  { %v4860_v3 = vpack.c.bf16 %v1647_v38, %v1646_v43  ;;  %v1669_v43 = vpop.permute.xlu1 %1668 }
 0x9eb   :  { %v4998_v48 = vpop.eup %4997 }
 0x9ec   :  { %v5000_v46 = vpop.eup %4999  ;;  %4556 = vmatprep.mubr.msk.f32.mxu1 %vm122_vm0, %v4998_v48 }
 0x9ed   :  { %4557 = vmatmul.mubr.msk.f32.vlgmr.msra.gmra.mrb[16].mxu1 %vm122_vm0, %v5000_v46 }
 0x9ee   :  { %4560 = vmatpush3.msra.mxu1 %v5727_v53 }
 0x9ef   :  { %4861 = vmatprep.subr.bf16.mxu1 %v4860_v3  ;;  %v5002_v41 = vpop.eup %5001 }
 0x9f0   :  { %v5004_v49 = vpop.eup %5003  ;;  %4561 = vmatprep.mubr.msk.f32.mxu1 %vm122_vm0, %v5002_v41 }
 0x9f1   :  { %4562 = vmatmul.mubr.msk.f32.vlgmr.msra.gmra.mrb[18].mxu1 %vm122_vm0, %v5004_v49 }
 0x9f2   :  { %4863 = vmatpush3.bf16.msra.mxu1 %v4860_v3  ;;  %4603 = vmatprep.mubr.msk.f32.mxu1 %vm989_vm14, %v1648_v23 }
 0x9f5   :  { %4604 = vmatmul.mubr.msk.f32.vlgmr.msra.gmra.mrb[20].mxu1 %vm989_vm14, %v1649_v27 }
 0x9f6   :  { %4606 = vmatprep.mubr.msk.f32.mxu1 %vm989_vm14, %v1650_v54 }
 0x9f9   :  { %4607 = vmatmul.mubr.msk.f32.gmra.mrb[22].mxu1 %vm989_vm14, %v1651_v13 }
 0x9fa   :  { %4617 = vmatprep.mubr.msk.f32.mxu1 %vm248_vm1, %v1877_v32 }
 0xac0   :  { %v4558_v58 = vpop.f32.mrb[16].mxu1 }
 0xac1   :  { %v1267_v56 = vsel %vm1265_vm2, %v4558_v58, -inf  ;;  %v1256_v4 = vpop.f32.mrb[17].mxu1 }
 0xac2   :  { %v1266_v40 = vsel %vm1265_vm2, %v1256_v4, -inf }
 0xac3   :  { %v1268_v16 = vmax.f32 %v1266_v40, %v1267_v56 }
 0xac4   :  { %v4563_v55 = vpop.f32.mrb[18].mxu1 }
 0xac5   :  { %v1269_v59 = vrot.slane %v1268_v16, 4  ;;  %v1468_v62 = vsel %vm1265_vm2, %v4563_v55, -inf  ;;  %v1458_v47 = vpop.f32.mrb[19].mxu1 }
 0xac6   :  { %v1467_v50 = vsel %vm1265_vm2, %v1458_v47, -inf }
 0xac7   :  { %v1270_v51 = vmax.f32 %v1268_v16, %v1269_v59  ;;  %v1469_v61 = vmax.f32 %v1467_v50, %v1468_v62 }
 0xac8   :  { %v4605_v2 = vpop.f32.mrb[20].mxu1 }
 0xac9   :  { %v1271_v37 = vrot.slane %v1270_v51, 2  ;;  %v1470_v10 = vrot.slane %v1469_v61, 4  ;;  %v5815_v57 = vadd.f32 %v4605_v2, %v1664_v1  ;;  %v1754_v5 = vpop.f32.mrb[21].mxu1 }
 0xaca   :  { %v5817_v26 = vadd.f32 %v1754_v5, %v1659_v29 }
 0xacb   :  { %v1272_v0 = vmax.f32 %v1270_v51, %v1271_v37  ;;  %v1471_v15 = vmax.f32 %v1469_v61, %v1470_v10  ;;  %v5820_v60 = vmul.f32 0.70710677, %v5815_v57 }
 0xacc   :  { %v5823_v31 = vmul.f32 0.70710677, %v5817_v26  ;;  %v4608_v7 = vpop.f32.mrb[22].mxu1 }
 0xacd   :  { %v1273_v19 = vrot.slane %v1272_v0, 1  ;;  %v1472_v8 = vrot.slane %v1471_v15, 2  ;;  %v1790_v12 = vand.u32 2147483647, %v5820_v60  ;;  %v1764_v14 = vpop.f32.mrb[23].mxu1  ;;  %v5826_v22 = vadd.f32 %v4608_v7, %v1674_v52 }
 0xace   :  { %v1789_v30 = vand.u32 2147483647, %v5823_v31  ;;  %v5832_v41 = vadd.f32 %v1764_v14, %v1669_v43  ;;  %vm1782_vm3 = vcmp.ge.f32.partialorder %v5820_v60, 0.0  ;;  %vm1781_vm4 = vcmp.ge.f32.partialorder %v5823_v31, 0.0 }
 0xacf   :  { %v1274_v24 = vmax.f32 %v1272_v0, %v1273_v19  ;;  %v1473_v33 = vmax.f32 %v1471_v15, %v1472_v8  ;;  %v1794_v18 = vmul.f32 0.3275911, %v1790_v12  ;;  %v5830_v3 = vmul.f32 0.70710677, %v5826_v22 }
 0xad0   :  { %v1793_v46 = vmul.f32 0.3275911, %v1789_v30  ;;  %v5836_v32 = vmul.f32 0.70710677, %v5832_v41  ;;  %v1842_v16 = vsub.f32 0.0, %v1790_v12 }
 0xad1   :  { %v1275_v39 = vsub.f32 %v1256_v4, %v1274_v24  ;;  %v1276_v36 = vsub.f32 %v4558_v58, %v1274_v24  ;;  %v1474_v48 = vrot.slane %v1473_v33, 1  ;;  %v1798_v38 = vadd.f32 1.0, %v1794_v18 }
 0xad2   :  { %v1797_v49 = vadd.f32 1.0, %v1793_v46  ;;  %v1792_v13 = vand.u32 2147483647, %v5830_v3  ;;  %v1791_v40 = vand.u32 2147483647, %v5836_v32  ;;  %v1846_v1 = vmul.f32 %v1842_v16, %v1790_v12 }
 0xad3   :  { %v1277_v25 = vmul.f32 1.442695, %v1275_v39  ;;  %v1279_v42 = vmul.f32 1.442695, %v1276_v36  ;;  %v1475_v23 = vmax.f32 %v1473_v33, %v1474_v48  ;;  %vm1784_vm5 = vcmp.ge.f32.partialorder %v5830_v3, 0.0 }
 0xad4   :  { %v1796_v4 = vmul.f32 0.3275911, %v1792_v13  ;;  %v1795_v51 = vmul.f32 0.3275911, %v1791_v40  ;;  %v1851_v7 = vmul.f32 1.442695, %v1846_v1 }
 0xad5   :  { %5005 = vpow2.f32 %v1277_v25  ;;  %v1476_v27 = vsub.f32 %v1458_v47, %v1475_v23  ;;  %v1477_v54 = vsub.f32 %v4563_v55, %v1475_v23  ;;  %v1841_v47 = vsub.f32 0.0, %v1789_v30 }
 0xad6   :  { %5007 = vpow2.f32 %v1279_v42  ;;  %v1800_v59 = vadd.f32 1.0, %v1796_v4  ;;  %v1799_v50 = vadd.f32 1.0, %v1795_v51  ;;  %v1844_v52 = vsub.f32 0.0, %v1792_v13 }
 0xad7   :  { %5009 = vrcp.f32 %v1798_v38  ;;  %v1478_v58 = vmul.f32 1.442695, %v1476_v27  ;;  %v1480_v56 = vmul.f32 1.442695, %v1477_v54  ;;  %v1845_v5 = vmul.f32 %v1841_v47, %v1789_v30 }
 0xad8   :  { %5011 = vrcp.f32 %v1797_v49  ;;  %v1843_v25 = vsub.f32 0.0, %v1791_v40  ;;  %v1848_v23 = vmul.f32 %v1844_v52, %v1792_v13  ;;  %vm1783_vm6 = vcmp.ge.f32.partialorder %v5836_v32, 0.0 }
 0xad9   :  { %5013 = vpow2.f32 %v1478_v58  ;;  %v1849_v18 = vmul.f32 1.442695, %v1845_v5 }
 0xada   :  { %5015 = vpow2.f32 %v1480_v56  ;;  %v1847_v4 = vmul.f32 %v1843_v25, %v1791_v40 }
 0xadb   :  { %5017 = vrcp.f32 %v1800_v59 }
 0xadc   :  { %5019 = vrcp.f32 %v1799_v50 }
 0xadd   :  { %5021 = vpow2.f32 %v1851_v7 }
 0xade   :  { %5023 = vpow2.f32 %v1849_v18 }
 0xadf   :  { %v5839_v62 = vpop.eup %5005 }
 0xae0   :  { %v5841_v55 = vpop.eup %5007  ;;  %v1281_v37 = vsel %vm1265_vm2, %v5839_v62, 0.0 }
 0xae1   :  { %v5010_v29 = vpop.eup %5009  ;;  %v1282_v61 = vsel %vm1265_vm2, %v5841_v55, 0.0 }
 0xae2   :  { %v1283_v0 = vadd.f32 %v1282_v61, %v1281_v37  ;;  %v1806_v2 = vmul.f32 1.0614054, %v5010_v29  ;;  %v5012_v10 = vpop.eup %5011  ;;  %v1855_v61 = vmul.f32 1.442695, %v1848_v23 }
 0xae3   :  { %v1805_v24 = vmul.f32 1.0614054, %v5012_v10  ;;  %v5847_v8 = vpop.eup %5013 }
 0xae4   :  { %v1284_v19 = vrot.slane %v1283_v0, 4  ;;  %v1810_v15 = vadd.f32 -1.4531521, %v1806_v2  ;;  %v5849_v33 = vpop.eup %5015  ;;  %v1482_v12 = vsel %vm1265_vm2, %v5847_v8, 0.0 }
 0xae5   :  { %v1809_v36 = vadd.f32 -1.4531521, %v1805_v24  ;;  %v1483_v30 = vsel %vm1265_vm2, %v5849_v33, 0.0  ;;  %v5855_v38 = vpop.eup %5017  ;;  %v1853_v24 = vmul.f32 1.442695, %v1847_v4 }
 0xae6   :  { %v1285_v14 = vadd.f32 %v1284_v19, %v1283_v0  ;;  %v1814_v39 = vmul.f32 %v5010_v29, %v1810_v15  ;;  %v1484_v46 = vadd.f32 %v1483_v30, %v1482_v12  ;;  %v1808_v54 = vmul.f32 1.0614054, %v5855_v38  ;;  %v5020_v16 = vpop.eup %5019 }
 0xae7   :  { %v1813_v48 = vmul.f32 %v5012_v10, %v1809_v36  ;;  %v1807_v1 = vmul.f32 1.0614054, %v5020_v16  ;;  %v5022_v25 = vpop.eup %5021 }
 0xae8   :  { %v1286_v42 = vrot.slane %v1285_v14, 2  ;;  %v1818_v43 = vadd.f32 1.4214138, %v1814_v39  ;;  %v1485_v56 = vrot.slane %v1484_v46, 4  ;;  %v1812_v47 = vadd.f32 -1.4531521, %v1808_v54  ;;  %v5024_v23 = vpop.eup %5023 }
 0xae9   :  { %v1817_v27 = vadd.f32 1.4214138, %v1813_v48  ;;  %v1811_v15 = vadd.f32 -1.4531521, %v1807_v1 }
 0xaea   :  { %v1822_v49 = vmul.f32 %v5010_v29, %v1818_v43  ;;  %v1287_v58 = vadd.f32 %v1286_v42, %v1285_v14  ;;  %v1486_v50 = vadd.f32 %v1485_v56, %v1484_v46  ;;  %v1816_v13 = vmul.f32 %v5855_v38, %v1812_v47 }
 0xaeb   :  { %v1821_v51 = vmul.f32 %v5012_v10, %v1817_v27  ;;  %v1815_v40 = vmul.f32 %v5020_v16, %v1811_v15  ;;  %v1786_v56 = vsel %vm1782_vm3, 1.0, %v5127_v44  ;;  %vm4229_vm3 = vcmask 58368  }
 0xaec   :  { %v1826_v59 = vadd.f32 -0.28449672, %v1822_v49  ;;  %v1288_v37 = vrot.slane %v1287_v58, 1  ;;  %v1487_v19 = vrot.slane %v1486_v50, 2  ;;  %v1820_v14 = vadd.f32 1.4214138, %v1816_v13 }
 0xaed   :  { %v1825_v2 = vadd.f32 -0.28449672, %v1821_v51  ;;  %v1819_v42 = vadd.f32 1.4214138, %v1815_v40 }
 0xaee   :  { %v1830_v0 = vmul.f32 %v5010_v29, %v1826_v59  ;;  %v1289_v5 = vadd.f32 %v1288_v37, %v1287_v58  ;;  %v1488_v39 = vadd.f32 %v1487_v19, %v1486_v50  ;;  %v1824_v18 = vmul.f32 %v5855_v38, %v1820_v14 }
 0xaef   :  { %v1829_v52 = vmul.f32 %v5012_v10, %v1825_v2  ;;  %v1823_v49 = vmul.f32 %v5020_v16, %v1819_v42  ;;  %v1774_v50 = vmul.f32 0.5, %v5815_v57  ;;  %v1773_v2 = vmul.f32 0.5, %v5817_v26 }
 0xaf0   :  { %v1834_v7 = vadd.f32 0.2548296, %v1830_v0  ;;  %5025 = vrcp.f32 %v1289_v5  ;;  %v1489_v30 = vrot.slane %v1488_v39, 1  ;;  %v1828_v46 = vadd.f32 -0.28449672, %v1824_v18 }
 0xaf1   :  { %5027 = vpow2.f32 %v1855_v61  ;;  %v1833_v12 = vadd.f32 0.2548296, %v1829_v52  ;;  %v1827_v4 = vadd.f32 -0.28449672, %v1823_v49  ;;  %v1787_v18 = vsel %vm1783_vm6, 1.0, %v5127_v44  ;;  %v1972_v49 = vpop.permute.xlu0 %1971 }
 0xaf2   :  { %v1838_v36 = vmul.f32 %v5010_v29, %v1834_v7  ;;  %5029 = vpow2.f32 %v1853_v24  ;;  %v1490_v27 = vadd.f32 %v1489_v30, %v1488_v39  ;;  %v1832_v29 = vmul.f32 %v5855_v38, %v1828_v46 }
 0xaf3   :  { %v1837_v48 = vmul.f32 %v5012_v10, %v1833_v12  ;;  %v1785_v10 = vsel %vm1781_vm4, 1.0, %v5127_v44  ;;  %v1831_v47 = vmul.f32 %v5020_v16, %v1827_v4  ;;  %v1775_v30 = vmul.f32 0.5, %v5832_v41 }
 0xaf4   :  { %v1858_v43 = vmul.f32 %v5022_v25, %v1838_v36  ;;  %5031 = vrcp.f32 %v1490_v27  ;;  %v1836_v51 = vadd.f32 0.2548296, %v1832_v29  ;;  %v1776_v25 = vmul.f32 0.5, %v5826_v22 }
 0xaf5   :  { %v1857_v58 = vmul.f32 %v5024_v23, %v1837_v48  ;;  %v1835_v13 = vadd.f32 0.2548296, %v1831_v47 }
 0xaf6   :  { %v1862_v54 = vsub.f32 1.0, %v1858_v43  ;;  %v1840_v31 = vmul.f32 %v5855_v38, %v1836_v51  ;;  %v1788_v38 = vsel %vm1784_vm5, 1.0, %v5127_v44 }
 0xaf7   :  { %v1861_v59 = vsub.f32 1.0, %v1857_v58  ;;  %v1839_v57 = vmul.f32 %v5020_v16, %v1835_v13 }
 0xaf8   :  { %v1866_v60 = vmul.f32 %v1862_v54, %v1786_v56  ;;  %v1967_v54 = vpop.permute.xlu1 %1966 }
 0xaf9   :  { %v1865_v1 = vmul.f32 %v1861_v59, %v1785_v10 }
 0xafa   :  { %v5026_v37 = vpop.eup %5025  ;;  %v1870_v61 = vadd.f32 1.0, %v1866_v60 }
 0xafb   :  { %v5028_v0 = vpop.eup %5027  ;;  %v5869_v5 = vmul.f32 %v5026_v37, %v5839_v62  ;;  %v5872_v19 = vmul.f32 %v5026_v37, %v5841_v55  ;;  %v1869_v24 = vadd.f32 1.0, %v1865_v1 }
 0xafc   :  { %v1874_v15 = vmul.f32 %v1870_v61, %v1774_v50  ;;  %v1860_v7 = vmul.f32 %v5028_v0, %v1840_v31  ;;  %v5030_v52 = vpop.eup %5029  ;;  %v2006_v61 = vld [vmem:[%s6303_s1 + $0x288] sm:$0xff] }
 0xafd   :  { %v1873_v14 = vmul.f32 %v1869_v24, %v1773_v2  ;;  %v1859_v26 = vmul.f32 %v5030_v52, %v1839_v57 }
 0xafe   :  { %v1864_v40 = vsub.f32 1.0, %v1860_v7  ;;  %v5032_v36 = vpop.eup %5031 }
 0xaff   :  { %v4864_v62 = vpack.c.bf16 %v1874_v15, %v1873_v14  ;;  %v1863_v12 = vsub.f32 1.0, %v1859_v26  ;;  %v5879_v3 = vmul.f32 %v5032_v36, %v5847_v8  ;;  %v5882_v16 = vmul.f32 %v5032_v36, %v5849_v33  ;;  %v1878_v8 = vld [vmem:[%s6303_s1 + $0x270] sm:$0xff] }
 0xb00   :  { %v1868_v39 = vmul.f32 %v1864_v40, %v1788_v38 }
 0xb01   :  { %4865 = vmatprep.subr.bf16.mxu1 %v4864_v62  ;;  %v1867_v42 = vmul.f32 %v1863_v12, %v1787_v18 }
 0xb02   :  { %v1872_v55 = vadd.f32 1.0, %v1868_v39  ;;  %4867 = vmatpush3.bf16.msra.mxu1 %v4864_v62  ;;  %v2145_v39 = vld [vmem:[%s6303_s1 + $0x298] sm:$0xff]  ;;  %v2146_v62 = vld [vmem:[%s6303_s1 + $0x2a0] sm:$0xff] }
 0xb03   :  { %v1871_v43 = vadd.f32 1.0, %v1867_v42  ;;  %v4872_v36 = vpack.c.bf16 %v2146_v62, %v2145_v39 }
 0xb04   :  { %v1876_v32 = vmul.f32 %v1872_v55, %v1776_v25 }
 0xb05   :  { %v1875_v48 = vmul.f32 %v1871_v43, %v1775_v30 }
 0xb07   :  { %v4868_v46 = vpack.c.bf16 %v1876_v32, %v1875_v48 }
 0xb09   :  { %4869 = vmatprep.subr.bf16.mxu1 %v4868_v46 }
 0xb0a   :  { %4871 = vmatpush3.bf16.msra.mxu1 %v4868_v46 }
 0xb0b   :  { %4620 = vmatprep.subr.mxu1 %v2006_v61 }
 0xb0d   :  { %4618 = vmatmul.mubr.msk.f32.vlgmr.msra.gmra.mrb[24].mxu1 %vm248_vm1, %v1878_v8 }
 0xb0e   :  { %4621 = vmatpush3.msra.mxu1 %v2006_v61 }
 0xb0f   :  { %4873 = vmatprep.subr.bf16.mxu1 %v4872_v36 }
 0xbe0   :  { %v4619_v33 = vpop.f32.mrb[24].mxu1 }
 0xbe1   :  { %v1961_v23 = vadd.f32 %v4619_v33, %v5650_v9  ;;  %v1951_v22 = vpop.f32.mrb[25].mxu1 }
 0xbe2   :  { %v1960_v27 = vadd.f32 %v1951_v22, %v5652_v17 }
 0xbe3   :  { %v5892_v41 = vadd.f32 %v1972_v49, %v1961_v23 }
 0xbe4   :  { %v5894_v58 = vadd.f32 %v1967_v54, %v1960_v27 }
 0xbe5   :  { %v1979_v29 = vsel %vm122_vm0, %v5892_v41, 0.0 }
 0xbe6   :  { %1980 = vadd.xlane.f32.xlu0 %v1979_v29  ;;  %v1976_v56 = vsel %vm122_vm0, %v5894_v58, 0.0 }
 0xbe7   :  { %1977 = vadd.xlane.f32.xlu1 %v1976_v56 }
 0xc73   :  { %v1981_v4 = vpop.xlane.xlu0 %1980 }
 0xc74   :  { %v1983_v60 = vmul.f32 0.125, %v1981_v4  ;;  %v1978_v9 = vpop.xlane.xlu1 %1977 }
 0xc75   :  { %v1982_v59 = vmul.f32 0.125, %v1978_v9 }
 0xc76   :  { %v1985_v51 = vsub.f32 %v5892_v41, %v1983_v60 }
 0xc77   :  { %v1984_v17 = vsub.f32 %v5894_v58, %v1982_v59 }
 0xc78   :  { %v1987_v10 = vmul.f32 %v1985_v51, %v1985_v51 }
 0xc79   :  { %v1986_v47 = vmul.f32 %v1984_v17, %v1984_v17 }
 0xc7a   :  { %v1991_v37 = vsel %vm122_vm0, %v1987_v10, 0.0 }
 0xc7b   :  { %1992 = vadd.xlane.f32.xlu1 %v1991_v37  ;;  %v1988_v50 = vsel %vm122_vm0, %v1986_v47, 0.0 }
 0xc7c   :  { %1989 = vadd.xlane.f32.xlu0 %v1988_v50 }
 0xd08   :  { %v1993_v1 = vpop.xlane.xlu1 %1992 }
 0xd09   :  { %v1995_v31 = vmul.f32 0.125, %v1993_v1  ;;  %v1990_v0 = vpop.xlane.xlu0 %1989 }
 0xd0a   :  { %v1994_v2 = vmul.f32 0.125, %v1990_v0 }
 0xd0b   :  { %v1997_v13 = vadd.f32 1e-05, %v1995_v31 }
 0xd0c   :  { %v1996_v15 = vadd.f32 1e-05, %v1994_v2 }
 0xd0d   :  { %5033 = vrsqrt.f32 %v1997_v13 }
 0xd0e   :  { %5035 = vrsqrt.f32 %v1996_v15 }
 0xd17   :  { %v5034_v24 = vpop.eup %5033 }
 0xd18   :  { %v5036_v7 = vpop.eup %5035  ;;  %v2001_v57 = vmul.f32 %v5034_v24, %v1985_v51 }
 0xd19   :  { %v2000_v52 = vmul.f32 %v5036_v7, %v1984_v17 }
 0xd1a   :  { %v2003_v14 = vmul.f32 %v2001_v57, %v5766_v21 }
 0xd1b   :  { %v2002_v40 = vmul.f32 %v2000_v52, %v5766_v21  ;;  %v2007_v21 = vld [vmem:[%s6303_s1 + $0x290] sm:$0xff] }
 0xd1c   :  { %v2005_v26 = vadd.f32 %v2003_v14, %v5774_v11 }
 0xd1d   :  { %v2004_v38 = vadd.f32 %v2002_v40, %v5774_v11  ;;  %v2011_v11 = vrot.slane %v2007_v21, %v5287_v20 }
 0xd1f   :  { %4622 = vmatprep.mubr.msk.f32.mxu1 %vm122_vm0, %v2004_v38 }
 0xd20   :  { %4623 = vmatmul.mubr.msk.f32.vlgmr.msra.gmra.mrb[26].mxu1 %vm122_vm0, %v2005_v26 }
 0xd21   :  { %4875 = vmatpush3.bf16.msra.mxu1 %v4872_v36 }
 0xdf3   :  { %v4624_v12 = vpop.f32.mrb[26].mxu1 }
 0xdf4   :  { %v2090_v55 = vadd.f32 %v4624_v12, %v2011_v11  ;;  %v2084_v18 = vpop.f32.mrb[27].mxu1 }
 0xdf5   :  { %v2085_v25 = vadd.f32 %v2084_v18, %v2011_v11 }
 0xdf6   :  { %v2096_v42 = vmul.f32 0.70710677, %v2090_v55 }
 0xdf7   :  { %v2095_v32 = vmul.f32 0.70710677, %v2085_v25  ;;  %v2093_v12 = vmul.f32 0.5, %v2085_v25  ;;  %v2538_v25 = vld [vmem:[%s6303_s1 + $0x2d0] sm:$0xff] }
 0xdf8   :  { %v2102_v30 = vand.u32 2147483647, %v2096_v42  ;;  %vm2098_vm1 = vcmp.ge.f32.partialorder %v2096_v42, 0.0  ;;  %v2536_v42 = vld [vmem:[%s6303_s1 + $0x2c0] sm:$0xff] }
 0xdf9   :  { %v2101_v43 = vand.u32 2147483647, %v2095_v32  ;;  %vm2097_vm7 = vcmp.ge.f32.partialorder %v2095_v32, 0.0  ;;  %v2100_v26 = vsel %vm2098_vm1, 1.0, %v5127_v44  ;;  %v2537_v32 = vld [vmem:[%s6303_s1 + $0x2c8] sm:$0xff] }
 0xdfa   :  { %v2104_v48 = vmul.f32 0.3275911, %v2102_v30  ;;  %v2128_v23 = vsub.f32 0.0, %v2102_v30  ;;  %v2099_v36 = vsel %vm2097_vm7, 1.0, %v5127_v44 }
 0xdfb   :  { %v2103_v46 = vmul.f32 0.3275911, %v2101_v43  ;;  %v2127_v22 = vsub.f32 0.0, %v2101_v43 }
 0xdfc   :  { %v2106_v8 = vadd.f32 1.0, %v2104_v48  ;;  %v2130_v27 = vmul.f32 %v2128_v23, %v2102_v30  ;;  %v2094_v30 = vmul.f32 0.5, %v2090_v55  ;;  %v4877_v55 = vpack.c.bf16 %v2537_v32, %v2536_v42 }
 0xdfd   :  { %v2105_v33 = vadd.f32 1.0, %v2103_v46  ;;  %v2129_v56 = vmul.f32 %v2127_v22, %v2101_v43  ;;  %v5128_v46 = vmov 0.0|0.0   ;;  %v2540_v22 = vld [vmem:[%s6303_s1 + $0x2e0] sm:$0xff] }
 0xdfe   :  { %5037 = vrcp.f32 %v2106_v8  ;;  %v2133_v9 = vmul.f32 1.442695, %v2130_v27  ;;  %4876 = vmatprep.subr.bf16.mxu0 %v5128_v46  ;;  %v2539_v8 = vld [vmem:[%s6303_s1 + $0x2d8] sm:$0xff] }
 0xdff   :  { %5039 = vrcp.f32 %v2105_v33  ;;  %v2131_v17 = vmul.f32 1.442695, %v2129_v56  ;;  %v5130_v33 = vmov 0.0   ;;  %4878 = vmatpush3.bf16.msra.mxu0 %v4877_v55  ;;  %v4880_v23 = vpack.c.bf16 %v2539_v8, %v2538_v25  ;;  %v2544_v56 = vld [vmem:[%s6303_s1 + $0x300] sm:$0xff] }
 0xe00   :  { %5041 = vpow2.f32 %v2133_v9  ;;  %4674 = vmatprep.mubr.msk.f32.mxu0 %vm5129_vm8, %v5130_v33  ;;  %4632 = vmatprep.subr.mxu1 %v5130_v33  ;;  %v2546_v9 = vld [vmem:[%s6303_s1 + $0x310] sm:$0xff] }
 0xe01   :  { %5043 = vpow2.f32 %v2131_v17  ;;  %4879 = vmatprep.subr.bf16.mxu0 %v5128_v46  ;;  %v2548_v17 = vld [vmem:[%s6303_s1 + $0x320] sm:$0xff] }
 0xe03   :  { %4881 = vmatpush3.bf16.msra.mxu0 %v4880_v23 }
 0xe04   :  { %4882 = vmatprep.subr.bf16.mxu0 %v5128_v46 }
 0xe08   :  { %v5038_v49 = vpop.eup %5037 }
 0xe09   :  { %v5040_v54 = vpop.eup %5039  ;;  %v2110_v29 = vmul.f32 1.0614054, %v5038_v49 }
 0xe0a   :  { %v2109_v4 = vmul.f32 1.0614054, %v5040_v54  ;;  %v5042_v7 = vpop.eup %5041 }
 0xe0b   :  { %v2112_v60 = vadd.f32 -1.4531521, %v2110_v29  ;;  %v5044_v52 = vpop.eup %5043 }
 0xe0c   :  { %v2111_v59 = vadd.f32 -1.4531521, %v2109_v4  ;;  %v2545_v4 = vld [vmem:[%s6303_s1 + $0x308] sm:$0xff] }
 0xe0d   :  { %v2114_v51 = vmul.f32 %v5038_v49, %v2112_v60  ;;  %v4889_v60 = vpack.c.bf16 %v2545_v4, %v2544_v56 }
 0xe0e   :  { %v2113_v10 = vmul.f32 %v5040_v54, %v2111_v59  ;;  %v2547_v59 = vld [vmem:[%s6303_s1 + $0x318] sm:$0xff] }
 0xe0f   :  { %v2116_v47 = vadd.f32 1.4214138, %v2114_v51  ;;  %v4892_v51 = vpack.c.bf16 %v2547_v59, %v2546_v9 }
 0xe10   :  { %v2115_v37 = vadd.f32 1.4214138, %v2113_v10  ;;  %v2549_v10 = vld [vmem:[%s6303_s1 + $0x328] sm:$0xff] }
 0xe11   :  { %v2118_v50 = vmul.f32 %v5038_v49, %v2116_v47  ;;  %v4895_v47 = vpack.c.bf16 %v2549_v10, %v2548_v17 }
 0xe12   :  { %v2117_v61 = vmul.f32 %v5040_v54, %v2115_v37  ;;  %v2550_v37 = vld [vmem:[%s6303_s1 + $0x330] sm:$0xff] }
 0xe13   :  { %v2120_v1 = vadd.f32 -0.28449672, %v2118_v50  ;;  %v2551_v50 = vld [vmem:[%s6303_s1 + $0x338] sm:$0xff] }
 0xe14   :  { %v2119_v31 = vadd.f32 -0.28449672, %v2117_v61  ;;  %v4898_v61 = vpack.c.bf16 %v2551_v50, %v2550_v37 }
 0xe15   :  { %v2122_v0 = vmul.f32 %v5038_v49, %v2120_v1  ;;  %v2535_v1 = vld [vmem:[%s6302_s0 + $0x30] sm:$0xff] }
 0xe16   :  { %v2121_v2 = vmul.f32 %v5040_v54, %v2119_v31  ;;  %v2230_v31 = vld [vmem:[%s6303_s1 + $0x2a8] sm:$0xff] }
 0xe17   :  { %v2124_v13 = vadd.f32 0.2548296, %v2122_v0  ;;  %v2234_v0 = vrot.slane %v2230_v31, %v5287_v20 }
 0xe18   :  { %v2123_v15 = vadd.f32 0.2548296, %v2121_v2 }
 0xe19   :  { %v2126_v24 = vmul.f32 %v5038_v49, %v2124_v13  ;;  %v2541_v49 = vld [vmem:[%s6303_s1 + $0x2e8] sm:$0xff] }
 0xe1a   :  { %v2125_v57 = vmul.f32 %v5040_v54, %v2123_v15  ;;  %v4883_v27 = vpack.c.bf16 %v2541_v49, %v2540_v22  ;;  %v2543_v54 = vld [vmem:[%s6303_s1 + $0x2f8] sm:$0xff] }
 0xe1b   :  { %v2136_v14 = vmul.f32 %v5042_v7, %v2126_v24 }
 0xe1c   :  { %v2135_v40 = vmul.f32 %v5044_v52, %v2125_v57  ;;  %4884 = vmatpush3.bf16.msra.mxu0 %v4883_v27 }
 0xe1d   :  { %v2138_v38 = vsub.f32 1.0, %v2136_v14  ;;  %4885 = vmatprep.subr.bf16.mxu0 %v5128_v46 }
 0xe1e   :  { %v2137_v39 = vsub.f32 1.0, %v2135_v40 }
 0xe1f   :  { %v2140_v62 = vmul.f32 %v2138_v38, %v2100_v26 }
 0xe20   :  { %v2139_v21 = vmul.f32 %v2137_v39, %v2099_v36 }
 0xe21   :  { %v2142_v11 = vadd.f32 1.0, %v2140_v62 }
 0xe22   :  { %v2141_v18 = vadd.f32 1.0, %v2139_v21 }
 0xe23   :  { %v2144_v48 = vmul.f32 %v2142_v11, %v2094_v30 }
 0xe24   :  { %v2143_v43 = vmul.f32 %v2141_v18, %v2093_v12 }
 0xe26   :  { %4629 = vmatprep.mubr.msk.f32.mxu1 %vm989_vm14, %v2143_v43 }
 0xe27   :  { %4630 = vmatmul.mubr.msk.f32.vlgmr.msra.gmra.mrb[28].mxu1 %vm989_vm14, %v2144_v48 }
 0xe28   :  { %4634 = vmatprep.mubr.msk.f32.mxu1 %vm5129_vm8, %v5130_v33  ;;  %4633 = vmatpush3.msra.mxu1 %v5727_v53  ;;  %v2542_v53 = vld [vmem:[%s6303_s1 + $0x2f0] sm:$0xff] }
 0xe29   :  { %4637 = vmatprep.subr.mxu1 %v5130_v33  ;;  %v4886_v29 = vpack.c.bf16 %v2543_v54, %v2542_v53 }
 0xe2b   :  { %4887 = vmatpush3.bf16.msra.mxu0 %v4886_v29 }
 0xe2c   :  { %4888 = vmatprep.subr.bf16.mxu0 %v5128_v46 }
 0xe2f   :  { %4890 = vmatpush3.bf16.msra.mxu0 %v4889_v60 }
 0xe30   :  { %4891 = vmatprep.subr.bf16.mxu0 %v5128_v46 }
 0xe33   :  { %4893 = vmatpush3.bf16.msra.mxu0 %v4892_v51 }
 0xe34   :  { %4894 = vmatprep.subr.bf16.mxu0 %v5128_v46 }
 0xe37   :  { %4896 = vmatpush3.bf16.msra.mxu0 %v4895_v47 }
 0xe38   :  { %4897 = vmatprep.subr.bf16.mxu0 %v5128_v46 }
 0xe3b   :  { %4899 = vmatpush3.bf16.msra.mxu0 %v4898_v61 }
 0xe3c   :  { %4723 = vmatprep.subr.mxu0 %v5130_v33 }
 0xe3e   :  { %4675 = vmatmul.mubr.f32.vlgmr.msra.gmra.mrb[10].mxu0 %v2535_v1 }
 0xe3f   :  { %4725 = vmatprep.mubr.msk.f32.mxu0 %vm5129_vm8, %v5130_v33 }
 0xefa   :  { %v4631_v2 = vpop.f32.mrb[28].mxu1 }
 0xefb   :  { %v2229_v13 = vadd.f32 %v4631_v2, %v5892_v41  ;;  %v2219_v15 = vpop.f32.mrb[29].mxu1 }
 0xefc   :  { %v2228_v24 = vadd.f32 %v2219_v15, %v5894_v58 }
 0xefd   :  { %v2236_v7 = vadd.f32 %v2234_v0, %v2229_v13  ;;  %v2237_v13 = vld [vmem:[%s6303_s1 + $0x2b0] sm:$0xff] }
 0xefe   :  { %v2235_v57 = vadd.f32 %v2234_v0, %v2228_v24 }
 0xeff   :  { %v2387_v52 = vsel %vm122_vm0, %v2236_v7, 0.0 }
 0xf00   :  { %2388 = vadd.xlane.f32.xlu1 %v2387_v52  ;;  %v2239_v14 = vsel %vm122_vm0, %v2235_v57, 0.0 }
 0xf01   :  { %2240 = vadd.xlane.f32.xlu0 %v2239_v14 }
 0xf11   :  { %v6006_v49 = vpop.f32.mrb[10].mxu0 }
 0xf12   :  { %v4676_v27 = vpop.f32.mrb[11].mxu0 }
 0xf13   :  { %v2869_v27 = vld [vmem:[%s6303_s1 + $0x378] sm:$0xff] }
 0xf8d   :  { %v2389_v40 = vpop.xlane.xlu1 %2388 }
 0xf8e   :  { %v2390_v38 = vrot.slane %v2389_v40, 4  ;;  %v2241_v26 = vpop.xlane.xlu0 %2240 }
 0xf8f   :  { %v2242_v39 = vrot.slane %v2241_v26, 4 }
 0xf90   :  { %v2391_v62 = vadd.f32 %v2390_v38, %v2389_v40 }
 0xf91   :  { %v2243_v36 = vadd.f32 %v2242_v39, %v2241_v26 }
 0xf92   :  { %v2392_v21 = vrot.slane %v2391_v62, 2 }
 0xf93   :  { %v2244_v11 = vrot.slane %v2243_v36, 2 }
 0xf94   :  { %v2393_v41 = vadd.f32 %v2392_v21, %v2391_v62  ;;  %v2624_v62 = vsel %vm122_vm0, %v6006_v49, 0.0 }
 0xf95   :  { %v2245_v12 = vadd.f32 %v2244_v11, %v2243_v36 }
 0xf96   :  { %v2394_v18 = vrot.slane %v2393_v41, 1 }
 0xf97   :  { %v2246_v58 = vrot.slane %v2245_v12, 1 }
 0xf98   :  { %v2395_v30 = vadd.f32 %v2394_v18, %v2393_v41 }
 0xf99   :  { %v2247_v43 = vadd.f32 %v2246_v58, %v2245_v12 }
 0xf9a   :  { %v2396_v48 = vmul.f32 0.015625, %v2395_v30 }
 0xf9b   :  { %v2248_v42 = vmul.f32 0.015625, %v2247_v43 }
 0xf9c   :  { %v2397_v32 = vsub.f32 %v2236_v7, %v2396_v48  ;;  %v2238_v7 = vld [vmem:[%s6303_s1 + $0x2b8] sm:$0xff] }
 0xf9d   :  { %v2249_v25 = vsub.f32 %v2235_v57, %v2248_v42 }
 0xf9e   :  { %v2398_v55 = vmul.f32 %v2397_v32, %v2397_v32 }
 0xf9f   :  { %v2250_v8 = vmul.f32 %v2249_v25, %v2249_v25 }
 0xfa0   :  { %v2399_v23 = vsel %vm122_vm0, %v2398_v55, 0.0 }
 0xfa1   :  { %2400 = vadd.xlane.f32.xlu1 %v2399_v23  ;;  %v2251_v22 = vsel %vm122_vm0, %v2250_v8, 0.0  ;;  %v2649_v23 = vld [vmem:[%s6303_s1 + $0x360] sm:$0xff] }
 0xfa2   :  { %2252 = vadd.xlane.f32.xlu0 %v2251_v22  ;;  %v2650_v22 = vld [vmem:[%s6303_s1 + $0x368] sm:$0xff] }
0x102e   :  { %v2401_v53 = vpop.xlane.xlu1 %2400 }
0x102f   :  { %v2402_v54 = vrot.slane %v2401_v53, 4  ;;  %v2253_v29 = vpop.xlane.xlu0 %2252 }
0x1030   :  { %v2254_v56 = vrot.slane %v2253_v29, 4 }
0x1031   :  { %v2403_v4 = vadd.f32 %v2402_v54, %v2401_v53 }
0x1032   :  { %v2255_v60 = vadd.f32 %v2254_v56, %v2253_v29 }
0x1033   :  { %v2404_v9 = vrot.slane %v2403_v4, 2 }
0x1034   :  { %v2256_v59 = vrot.slane %v2255_v60, 2 }
0x1035   :  { %v2405_v51 = vadd.f32 %v2404_v9, %v2403_v4 }
0x1036   :  { %v2257_v17 = vadd.f32 %v2256_v59, %v2255_v60 }
0x1037   :  { %v2406_v10 = vrot.slane %v2405_v51, 1 }
0x1038   :  { %v2258_v47 = vrot.slane %v2257_v17, 1 }
0x1039   :  { %v2407_v37 = vadd.f32 %v2406_v10, %v2405_v51 }
0x103a   :  { %v2259_v50 = vadd.f32 %v2258_v47, %v2257_v17 }
0x103b   :  { %v2408_v61 = vmul.f32 0.015625, %v2407_v37 }
0x103c   :  { %v2260_v1 = vmul.f32 0.015625, %v2259_v50 }
0x103d   :  { %v2409_v31 = vadd.f32 1e-05, %v2408_v61 }
0x103e   :  { %v2261_v0 = vadd.f32 1e-05, %v2260_v1 }
0x103f   :  { %5045 = vrsqrt.f32 %v2409_v31 }
0x1040   :  { %5047 = vrsqrt.f32 %v2261_v0 }
0x1049   :  { %v5046_v2 = vpop.eup %5045 }
0x104a   :  { %v5048_v15 = vpop.eup %5047  ;;  %v2411_v24 = vmul.f32 %v5046_v2, %v2397_v32  ;;  %v2622_v2 = vld [vmem:[%s6303_s1 + $0x340] sm:$0xff] }
0x104b   :  { %v2263_v57 = vmul.f32 %v5048_v15, %v2249_v25  ;;  %v6044_v15 = vrot.slane %v2622_v2, %v5287_v20 }
0x104c   :  { %v2412_v52 = vmul.f32 %v2411_v24, %v2237_v13  ;;  %v2623_v24 = vld [vmem:[%s6303_s1 + $0x348] sm:$0xff] }
0x104d   :  { %v2264_v14 = vmul.f32 %v2263_v57, %v2237_v13  ;;  %v6052_v57 = vrot.slane %v2623_v24, %v5287_v20 }
0x104e   :  { %v2413_v40 = vadd.f32 %v2412_v52, %v2238_v7 }
0x104f   :  { %v2265_v38 = vadd.f32 %v2264_v14, %v2238_v7 }
0x1050   :  { %v2414_v26 = vsel %vm122_vm0, %v2413_v40, 0.0 }
0x1051   :  { %2415 = vadd.xlane.f32.xlu1 %v2414_v26  ;;  %v2266_v39 = vsel %vm122_vm0, %v2265_v38, 0.0 }
0x1052   :  { %2267 = vadd.xlane.f32.xlu0 %v2266_v39  ;;  %v2648_v39 = vld [vmem:[%s6303_s1 + $0x358] sm:$0xff] }
0x1056   :  { %2625 = vadd.xlane.f32.xlu0 %v2624_v62 }
0x10de   :  { %v2416_v36 = vpop.xlane.xlu1 %2415 }
0x10df   :  { %v2417_v21 = vmul.f32 0.125, %v2416_v36  ;;  %v2268_v11 = vpop.xlane.xlu0 %2267 }
0x10e0   :  { %v2269_v41 = vmul.f32 0.125, %v2268_v11 }
0x10e1   :  { %v2418_v12 = vsub.f32 %v2413_v40, %v2417_v21  ;;  %v6059_v40 = vld [vmem:[%s6303_s1 + $0x3c8] sm:$0xff] }
0x10e2   :  { %v2270_v18 = vsub.f32 %v2265_v38, %v2269_v41  ;;  %v2647_v38 = vld [vmem:[%s6303_s1 + $0x350] sm:$0xff] }
0x10e3   :  { %v2626_v58 = vpop.xlane.xlu0 %2625  ;;  %v2419_v30 = vmul.f32 %v2418_v12, %v2418_v12 }
0x10e4   :  { %v2627_v43 = vmul.f32 0.125, %v2626_v58  ;;  %v2271_v48 = vmul.f32 %v2270_v18, %v2270_v18 }
0x10e5   :  { %v2420_v42 = vsel %vm122_vm0, %v2419_v30, 0.0 }
0x10e6   :  { %v2628_v32 = vsub.f32 %v6006_v49, %v2627_v43  ;;  %2421 = vadd.xlane.f32.xlu0 %v2420_v42  ;;  %v2272_v25 = vsel %vm122_vm0, %v2271_v48, 0.0 }
0x10e7   :  { %2273 = vadd.xlane.f32.xlu1 %v2272_v25 }
0x10e8   :  { %v2629_v55 = vmul.f32 %v2628_v32, %v2628_v32 }
0x10ea   :  { %v2630_v8 = vsel %vm122_vm0, %v2629_v55, 0.0 }
0x10eb   :  { %2631 = vadd.xlane.f32.xlu1 %v2630_v8 }
0x10fc   :  { %2653 = vperm.xlu0 %4915, %v2649_v23   ;;  %2658 = vperm.xlu1 %4916, %v2650_v22  }
0x1100   :  { %2872 = vperm.xlu1 %4916, %v2869_v27  }
0x1173   :  { %v2422_v53 = vpop.xlane.xlu0 %2421 }
0x1174   :  { %v2423_v54 = vmul.f32 0.125, %v2422_v53  ;;  %v2274_v29 = vpop.xlane.xlu1 %2273 }
0x1175   :  { %v2275_v56 = vmul.f32 0.125, %v2274_v29 }
0x1176   :  { %v2424_v4 = vadd.f32 1e-05, %v2423_v54 }
0x1177   :  { %v2276_v60 = vadd.f32 1e-05, %v2275_v56 }
0x1178   :  { %5049 = vrsqrt.f32 %v2424_v4  ;;  %v2632_v9 = vpop.xlane.xlu1 %2631 }
0x1179   :  { %5051 = vrsqrt.f32 %v2276_v60  ;;  %v2633_v59 = vmul.f32 0.125, %v2632_v9 }
0x117b   :  { %v2634_v51 = vadd.f32 1e-05, %v2633_v59 }
0x117c   :  { %v2659_v41 = vpop.permute.xlu1 %2658 }
0x117d   :  { %5053 = vrsqrt.f32 %v2634_v51 }
0x1182   :  { %v5050_v17 = vpop.eup %5049 }
0x1183   :  { %v5052_v10 = vpop.eup %5051  ;;  %v2426_v47 = vmul.f32 %v5050_v17, %v2418_v12 }
0x1184   :  { %v2278_v37 = vmul.f32 %v5052_v10, %v2270_v18  ;;  %v2654_v18 = vpop.permute.xlu0 %2653 }
0x1185   :  { %v2427_v50 = vmul.f32 %v2426_v47, %v5739_v63 }
0x1186   :  { %v2279_v61 = vmul.f32 %v2278_v37, %v5739_v63 }
0x1187   :  { %v5054_v31 = vpop.eup %5053  ;;  %v6037_v0 = vadd.f32 %v2427_v50, %v5743_v6 }
0x1188   :  { %v6034_v1 = vadd.f32 %v2279_v61, %v5743_v6  ;;  %v2636_v13 = vmul.f32 %v5054_v31, %v2628_v32 }
0x118a   :  { %5055 = vtanh.f32 %v6034_v1  ;;  %v2641_v7 = vmul.f32 %v6044_v15, %v2636_v13 }
0x118b   :  { %5057 = vtanh.f32 %v6037_v0 }
0x118c   :  { %v2646_v14 = vadd.f32 %v6052_v57, %v2641_v7 }
0x1194   :  { %v5056_v52 = vpop.eup %5055 }
0x1195   :  { %4635 = vmatmul.mubr.msk.f32.vlgmr.msra.gmra.mrb[30].mxu1 %vm122_vm0, %v5056_v52  ;;  %v5058_v26 = vpop.eup %5057 }
0x1196   :  { %4638 = vmatpush3.msra.mxu1 %v6059_v40  ;;  %4639 = vmatprep.mubr.msk.f32.mxu1 %vm5129_vm8, %v5130_v33 }
0x1197   :  { %4677 = vmatprep.subr.mxu1 %v2646_v14 }
0x1199   :  { %4640 = vmatmul.mubr.msk.f32.vlgmr.msra.gmra.mrb[32].mxu1 %vm122_vm0, %v5058_v26 }
0x119a   :  { %4678 = vmatpush3.msra.mxu1 %v2646_v14  ;;  %4679 = vmatprep.mubr.msk.f32.mxu1 %vm122_vm0, %v2647_v38 }
0x119b   :  { %4900 = vmatprep.subr.bf16.mxu1 %v5128_v46 }
0x119d   :  { %4680 = vmatmul.mubr.msk.f32.vlgmr.msra.gmra.mrb[34].mxu1 %vm122_vm0, %v2648_v39 }
0x119e   :  { %4686 = vmatprep.mubr.msk.f32.mxu1 %vm5129_vm8, %v5130_v33 }
0x1268   :  { %v6076_v62 = vpop.f32.mrb[30].mxu1 }
0x1269   :  { %v4636_v36 = vpop.f32.mrb[31].mxu1 }
0x126c   :  { %v6078_v21 = vpop.f32.mrb[32].mxu1 }
0x126d   :  { %v4641_v11 = vpop.f32.mrb[33].mxu1 }
0x1270   :  { %v4681_v12 = vpop.f32.mrb[34].mxu1 }
0x1271   :  { %v2739_v58 = vadd.f32 %v4681_v12, %v2659_v41  ;;  %v2733_v30 = vpop.f32.mrb[35].mxu1 }
0x1272   :  { %v2734_v43 = vadd.f32 %v2733_v30, %v2654_v18 }
0x1273   :  { %v2745_v48 = vmul.f32 0.70710677, %v2739_v58 }
0x1274   :  { %v2744_v42 = vmul.f32 0.70710677, %v2734_v43 }
0x1275   :  { %v2751_v32 = vand.u32 2147483647, %v2745_v48  ;;  %vm2747_vm9 = vcmp.ge.f32.partialorder %v2745_v48, 0.0 }
0x1276   :  { %v2750_v55 = vand.u32 2147483647, %v2744_v42  ;;  %v2749_v18 = vsel %vm2747_vm9, 1.0, %v5127_v44  ;;  %vm2746_vm10 = vcmp.ge.f32.partialorder %v2744_v42, 0.0 }
0x1277   :  { %v2753_v25 = vmul.f32 0.3275911, %v2751_v32  ;;  %v2777_v27 = vsub.f32 0.0, %v2751_v32 }
0x1278   :  { %v2752_v23 = vmul.f32 0.3275911, %v2750_v55  ;;  %v2776_v29 = vsub.f32 0.0, %v2750_v55 }
0x1279   :  { %v2755_v8 = vadd.f32 1.0, %v2753_v25  ;;  %v2779_v54 = vmul.f32 %v2777_v27, %v2751_v32 }
0x127a   :  { %v2754_v22 = vadd.f32 1.0, %v2752_v23  ;;  %v2778_v59 = vmul.f32 %v2776_v29, %v2750_v55  ;;  %v2743_v23 = vmul.f32 0.5, %v2739_v58 }
0x127b   :  { %5059 = vrcp.f32 %v2755_v8  ;;  %v2782_v9 = vmul.f32 1.442695, %v2779_v54  ;;  %v2748_v8 = vsel %vm2746_vm10, 1.0, %v5127_v44 }
0x127c   :  { %5061 = vrcp.f32 %v2754_v22  ;;  %v2780_v37 = vmul.f32 1.442695, %v2778_v59 }
0x127d   :  { %5063 = vpow2.f32 %v2782_v9 }
0x127e   :  { %5065 = vpow2.f32 %v2780_v37 }
0x1285   :  { %v5060_v53 = vpop.eup %5059 }
0x1286   :  { %v2759_v56 = vmul.f32 1.0614054, %v5060_v53  ;;  %v5062_v60 = vpop.eup %5061 }
0x1287   :  { %v2758_v17 = vmul.f32 1.0614054, %v5062_v60  ;;  %v5064_v26 = vpop.eup %5063 }
0x1288   :  { %v2761_v4 = vadd.f32 -1.4531521, %v2759_v56  ;;  %v5066_v12 = vpop.eup %5065  ;;  %v2794_v56 = vld [vmem:[%s6303_s1 + $0x370] sm:$0xff] }
0x1289   :  { %v2760_v47 = vadd.f32 -1.4531521, %v2758_v17 }
0x128a   :  { %v2763_v51 = vmul.f32 %v5060_v53, %v2761_v4 }
0x128b   :  { %v2762_v61 = vmul.f32 %v5062_v60, %v2760_v47 }
0x128c   :  { %v2765_v10 = vadd.f32 1.4214138, %v2763_v51 }
0x128d   :  { %v2764_v2 = vadd.f32 1.4214138, %v2762_v61 }
0x128e   :  { %v2767_v50 = vmul.f32 %v5060_v53, %v2765_v10 }
0x128f   :  { %v2766_v24 = vmul.f32 %v5062_v60, %v2764_v2 }
0x1290   :  { %v2769_v31 = vadd.f32 -0.28449672, %v2767_v50 }
0x1291   :  { %v2768_v52 = vadd.f32 -0.28449672, %v2766_v24 }
0x1292   :  { %v2771_v13 = vmul.f32 %v5060_v53, %v2769_v31 }
0x1293   :  { %v2770_v38 = vmul.f32 %v5062_v60, %v2768_v52  ;;  %v2997_v52 = vld [vmem:[%s6303_s1 + $0x398] sm:$0xff] }
0x1294   :  { %v2773_v7 = vadd.f32 0.2548296, %v2771_v13 }
0x1295   :  { %v2772_v36 = vadd.f32 0.2548296, %v2770_v38 }
0x1296   :  { %v2775_v14 = vmul.f32 %v5060_v53, %v2773_v7  ;;  %v2742_v53 = vmul.f32 0.5, %v2734_v43  ;;  %v2873_v43 = vpop.permute.xlu1 %2872  ;;  %v2996_v7 = vld [vmem:[%s6303_s1 + $0x390] sm:$0xff] }
0x1297   :  { %v2774_v41 = vmul.f32 %v5062_v60, %v2772_v36 }
0x1298   :  { %v2785_v39 = vmul.f32 %v5064_v26, %v2775_v14  ;;  %v4904_v14 = vpack.c.bf16 %v2997_v52, %v2996_v7 }
0x1299   :  { %v2784_v32 = vmul.f32 %v5066_v12, %v2774_v41 }
0x129a   :  { %v2787_v11 = vsub.f32 1.0, %v2785_v39 }
0x129b   :  { %v2786_v55 = vsub.f32 1.0, %v2784_v32 }
0x129c   :  { %v2789_v30 = vmul.f32 %v2787_v11, %v2749_v18 }
0x129d   :  { %v2788_v22 = vmul.f32 %v2786_v55, %v2748_v8 }
0x129e   :  { %v2791_v25 = vadd.f32 1.0, %v2789_v30 }
0x129f   :  { %v2790_v54 = vadd.f32 1.0, %v2788_v22 }
0x12a0   :  { %v2793_v27 = vmul.f32 %v2791_v25, %v2743_v23 }
0x12a1   :  { %v2792_v48 = vmul.f32 %v2790_v54, %v2742_v53 }
0x12a3   :  { %v4901_v29 = vpack.c.bf16 %v2793_v27, %v2792_v48 }
0x12a5   :  { %4902 = vmatpush3.bf16.msra.mxu1 %v4901_v29 }
0x12a6   :  { %4689 = vmatprep.subr.mxu1 %v5130_v33 }
0x12a8   :  { %4687 = vmatmul.mubr.msk.f32.vlgmr.msra.gmra.mrb[36].mxu1 %vm989_vm14, %v2794_v56 }
0x12a9   :  { %4691 = vmatprep.mubr.msk.f32.mxu1 %vm5129_vm8, %v5130_v33 }
0x137b   :  { %v2864_v42 = vpop.f32.mrb[36].mxu1 }
0x137c   :  { %v2868_v58 = vadd.f32 %v2864_v42, %v6006_v49  ;;  %v4688_v4 = vpop.f32.mrb[37].mxu1  ;;  %v2891_v49 = vld [vmem:[%s6303_s1 + $0x380] sm:$0xff] }
0x137d   :  { %4690 = vmatpush3.msra.mxu1 %v2891_v49 }
0x137e   :  { %v6090_v60 = vadd.f32 %v2873_v43, %v2868_v58  ;;  %4903 = vmatprep.subr.bf16.mxu1 %v5128_v46 }
0x1380   :  { %v2876_v9 = vsel %vm122_vm0, %v6090_v60, 0.0 }
0x1381   :  { %2877 = vadd.xlane.f32.xlu0 %v2876_v9 }
0x140e   :  { %v2878_v59 = vpop.xlane.xlu0 %2877 }
0x140f   :  { %v2879_v51 = vmul.f32 0.125, %v2878_v59 }
0x1411   :  { %v2880_v17 = vsub.f32 %v6090_v60, %v2879_v51 }
0x1413   :  { %v2881_v10 = vmul.f32 %v2880_v17, %v2880_v17 }
0x1415   :  { %v2882_v47 = vsel %vm122_vm0, %v2881_v10, 0.0 }
0x1416   :  { %2883 = vadd.xlane.f32.xlu1 %v2882_v47 }
0x14a3   :  { %v2884_v37 = vpop.xlane.xlu1 %2883 }
0x14a4   :  { %v2885_v50 = vmul.f32 0.125, %v2884_v37 }
0x14a6   :  { %v2886_v61 = vadd.f32 1e-05, %v2885_v50 }
0x14a8   :  { %5067 = vrsqrt.f32 %v2886_v61 }
0x14b2   :  { %v5068_v31 = vpop.eup %5067 }
0x14b3   :  { %v2888_v2 = vmul.f32 %v5068_v31, %v2880_v17  ;;  %v3072_v17 = vld [vmem:[%s6303_s1 + $0x3a0] sm:$0xff] }
0x14b4   :  { %v3076_v10 = vrot.slane %v3072_v17, %v5287_v20  ;;  %v3079_v17 = vld [vmem:[%s6303_s1 + $0x3b0] sm:$0xff] }
0x14b5   :  { %v2889_v13 = vmul.f32 %v2888_v2, %v6044_v15  ;;  %v2892_v15 = vld [vmem:[%s6303_s1 + $0x388] sm:$0xff] }
0x14b7   :  { %v2890_v24 = vadd.f32 %v2889_v13, %v6052_v57  ;;  %v2896_v57 = vrot.slane %v2892_v15, %v5287_v20 }
0x14b9   :  { %4692 = vmatmul.mubr.msk.f32.vlgmr.msra.gmra.mrb[38].mxu1 %vm122_vm0, %v2890_v24 }
0x14ba   :  { %4698 = vmatprep.mubr.msk.f32.mxu1 %vm5129_vm8, %v5130_v33  ;;  %4905 = vmatpush3.bf16.msra.mxu1 %v4904_v14 }
0x14bb   :  { %4701 = vmatprep.subr.mxu1 %v5130_v33 }
0x158c   :  { %v2966_v38 = vpop.f32.mrb[38].mxu1 }
0x158d   :  { %v2967_v26 = vadd.f32 %v2966_v38, %v2896_v57  ;;  %v4693_v39 = vpop.f32.mrb[39].mxu1 }
0x158f   :  { %v2971_v36 = vmul.f32 0.70710677, %v2967_v26  ;;  %v2970_v9 = vmul.f32 0.5, %v2967_v26 }
0x1591   :  { %v2974_v11 = vand.u32 2147483647, %v2971_v36  ;;  %vm2972_vm11 = vcmp.ge.f32.partialorder %v2971_v36, 0.0 }
0x1592   :  { %v2973_v4 = vsel %vm2972_vm11, 1.0, %v5127_v44 }
0x1593   :  { %v2975_v41 = vmul.f32 0.3275911, %v2974_v11  ;;  %v2987_v18 = vsub.f32 0.0, %v2974_v11 }
0x1595   :  { %v2976_v12 = vadd.f32 1.0, %v2975_v41  ;;  %v2988_v32 = vmul.f32 %v2987_v18, %v2974_v11 }
0x1597   :  { %5069 = vrcp.f32 %v2976_v12  ;;  %v2989_v8 = vmul.f32 1.442695, %v2988_v32 }
0x1599   :  { %5071 = vpow2.f32 %v2989_v8 }
0x15a1   :  { %v5070_v30 = vpop.eup %5069 }
0x15a2   :  { %v2978_v25 = vmul.f32 1.0614054, %v5070_v30 }
0x15a3   :  { %v5072_v56 = vpop.eup %5071 }
0x15a4   :  { %v2979_v55 = vadd.f32 -1.4531521, %v2978_v25 }
0x15a6   :  { %v2980_v23 = vmul.f32 %v5070_v30, %v2979_v55 }
0x15a8   :  { %v2981_v22 = vadd.f32 1.4214138, %v2980_v23 }
0x15aa   :  { %v2982_v27 = vmul.f32 %v5070_v30, %v2981_v22 }
0x15ac   :  { %v2983_v53 = vadd.f32 -0.28449672, %v2982_v27 }
0x15ae   :  { %v2984_v54 = vmul.f32 %v5070_v30, %v2983_v53 }
0x15b0   :  { %v2985_v48 = vadd.f32 0.2548296, %v2984_v54 }
0x15b2   :  { %v2986_v29 = vmul.f32 %v5070_v30, %v2985_v48 }
0x15b4   :  { %v2991_v42 = vmul.f32 %v5072_v56, %v2986_v29 }
0x15b6   :  { %v2992_v58 = vsub.f32 1.0, %v2991_v42 }
0x15b8   :  { %v2993_v43 = vmul.f32 %v2992_v58, %v2973_v4 }
0x15ba   :  { %v2994_v59 = vadd.f32 1.0, %v2993_v43 }
0x15bc   :  { %v2995_v51 = vmul.f32 %v2994_v59, %v2970_v9  ;;  %v3078_v59 = vld [vmem:[%s6303_s1 + $0x3a8] sm:$0xff] }
0x15be   :  { %4699 = vmatmul.mubr.msk.f32.vlgmr.msra.gmra.mrb[40].mxu1 %vm989_vm14, %v2995_v51 }
0x15bf   :  { %4702 = vmatpush3.msra.mxu1 %v6059_v40  ;;  %4703 = vmatprep.mubr.msk.f32.mxu1 %vm5129_vm8, %v5130_v33 }
0x15c0   :  { %4706 = vmatprep.subr.mxu1 %v5130_v33 }
0x1691   :  { %v3067_v44 = vpop.f32.mrb[40].mxu1 }
0x1692   :  { %v3071_v47 = vadd.f32 %v3067_v44, %v6090_v60  ;;  %v4700_v49 = vpop.f32.mrb[41].mxu1 }
0x1693   :  { %v2355_v49 = vsel %vm1265_vm2, %v6076_v62, -inf }
0x1694   :  { %v3077_v37 = vadd.f32 %v3076_v10, %v3071_v47 }
0x1696   :  { %v3081_v50 = vsel %vm3080_vm12, %v3077_v37, 0.0  ;;  %v3234_v26 = vsel %vm3233_vm15, %v3077_v37, 0.0 }
0x1697   :  { %3082 = vadd.xlane.f32.xlu0 %v3081_v50 }
0x1724   :  { %v3083_v61 = vpop.xlane.xlu0 %3082 }
0x1725   :  { %v3085_v31 = vsel %vm3084_vm13, %v3083_v61, 0.0 }
0x1726   :  { %v3086_v2 = vrot.slane %v3085_v31, 4 }
0x1728   :  { %v3087_v13 = vadd.f32 %v3086_v2, %v3085_v31 }
0x172a   :  { %v3088_v24 = vrot.slane %v3087_v13, 2 }
0x172c   :  { %v3089_v7 = vadd.f32 %v3088_v24, %v3087_v13 }
0x172e   :  { %v3090_v52 = vrot.slane %v3089_v7, 1 }
0x1730   :  { %v3091_v14 = vadd.f32 %v3090_v52, %v3089_v7 }
0x1732   :  { %v3092_v15 = vmul.f32 0.03125, %v3091_v14 }
0x1734   :  { %v3093_v57 = vsub.f32 %v3077_v37, %v3092_v15 }
0x1736   :  { %v3094_v38 = vmul.f32 %v3093_v57, %v3093_v57 }
0x1738   :  { %v3095_v60 = vsel %vm3080_vm12, %v3094_v38, 0.0 }
0x1739   :  { %3096 = vadd.xlane.f32.xlu0 %v3095_v60 }
0x173d   :  { %3235 = vadd.xlane.f32.xlu0 %v3234_v26 }
0x17c6   :  { %v3097_v39 = vpop.xlane.xlu0 %3096 }
0x17c7   :  { %v3098_v36 = vsel %vm3084_vm13, %v3097_v39, 0.0 }
0x17c8   :  { %v3099_v11 = vrot.slane %v3098_v36, 4 }
0x17ca   :  { %v3100_v41 = vadd.f32 %v3099_v11, %v3098_v36  ;;  %v3236_v12 = vpop.xlane.xlu0 %3235 }
0x17cb   :  { %v3238_v18 = vrot.slane %v3236_v12, 4 }
0x17cc   :  { %v3101_v30 = vrot.slane %v3100_v41, 2 }
0x17cd   :  { %v3240_v32 = vsel %vm3084_vm13, %v3238_v18, 0.0 }
0x17ce   :  { %v3102_v25 = vadd.f32 %v3101_v30, %v3100_v41  ;;  %v3241_v55 = vrot.slane %v3240_v32, 4 }
0x17d0   :  { %v3103_v8 = vrot.slane %v3102_v25, 1  ;;  %v3242_v23 = vadd.f32 %v3241_v55, %v3240_v32 }
0x17d2   :  { %v3104_v22 = vadd.f32 %v3103_v8, %v3102_v25  ;;  %v3243_v27 = vrot.slane %v3242_v23, 2 }
0x17d4   :  { %v3105_v53 = vmul.f32 0.03125, %v3104_v22  ;;  %v3244_v54 = vadd.f32 %v3243_v27, %v3242_v23  ;;  %v3268_v27 = vrot.slane %v3078_v59, 4 }
0x17d6   :  { %v3106_v48 = vadd.f32 1e-05, %v3105_v53  ;;  %v3245_v29 = vrot.slane %v3244_v54, 1 }
0x17d8   :  { %5073 = vrsqrt.f32 %v3106_v48  ;;  %v3246_v56 = vadd.f32 %v3245_v29, %v3244_v54  ;;  %v3272_v48 = vrot.slane %v3079_v17, 4 }
0x17da   :  { %v3247_v42 = vmul.f32 0.03125, %v3246_v56 }
0x17dc   :  { %v3248_v58 = vsub.f32 %v3077_v37, %v3247_v42  ;;  %v2356_v37 = vrot.slane %v2355_v49, 4 }
0x17de   :  { %v3249_v4 = vmul.f32 %v3248_v58, %v3248_v58  ;;  %v2357_v50 = vmax.f32 %v2355_v49, %v2356_v37 }
0x17e0   :  { %v3250_v43 = vsel %vm3233_vm15, %v3249_v4, 0.0  ;;  %v2358_v61 = vrot.slane %v2357_v50, 2 }
0x17e1   :  { %3251 = vadd.xlane.f32.xlu0 %v3250_v43 }
0x17e2   :  { %v5074_v9 = vpop.eup %5073  ;;  %v2359_v31 = vmax.f32 %v2357_v50, %v2358_v61 }
0x17e3   :  { %v3108_v51 = vmul.f32 %v5074_v9, %v3093_v57 }
0x17e4   :  { %v2360_v2 = vrot.slane %v2359_v31, 1 }
0x17e5   :  { %v3109_v10 = vmul.f32 %v3108_v51, %v3078_v59  ;;  %v2503_v59 = vsel %vm1265_vm2, %v6078_v21, -inf }
0x17e6   :  { %v2361_v13 = vmax.f32 %v2359_v31, %v2360_v2 }
0x17e7   :  { %v3110_v44 = vadd.f32 %v3109_v10, %v3079_v17 }
0x17e8   :  { %v2362_v24 = vsub.f32 %v6076_v62, %v2361_v13 }
0x17e9   :  { %v3111_v47 = vsel %vm3080_vm12, %v3110_v44, 0.0 }
0x17ea   :  { %3112 = vadd.xlane.f32.xlu1 %v3111_v47  ;;  %v2363_v7 = vmul.f32 1.442695, %v2362_v24 }
0x17ec   :  { %5075 = vpow2.f32 %v2363_v7 }
0x17f6   :  { %v5076_v12 = vpop.eup %5075 }
0x17f7   :  { %v2365_v25 = vsel %vm1265_vm2, %v5076_v12, 0.0 }
0x17f8   :  { %v2366_v8 = vrot.slane %v2365_v25, 4 }
0x17fa   :  { %v2367_v23 = vadd.f32 %v2366_v8, %v2365_v25  ;;  %v6169_v25 = vld [vmem:[%s6303_s1 + $0x3e8] sm:$0xff] }
0x17fb   :  { %4724 = vmatpush3.msra.mxu0 %v6169_v25 }
0x17fc   :  { %v2368_v22 = vrot.slane %v2367_v23, 2  ;;  %4733 = vmatprep.subr.mxu0 %v5130_v33 }
0x17fe   :  { %v2369_v29 = vadd.f32 %v2368_v22, %v2367_v23 }
0x1800   :  { %v2370_v4 = vrot.slane %v2369_v29, 1 }
0x1802   :  { %v2371_v9 = vadd.f32 %v2370_v4, %v2369_v29 }
0x186e   :  { %v3252_v52 = vpop.xlane.xlu0 %3251 }
0x186f   :  { %v3254_v14 = vrot.slane %v3252_v52, 4 }
0x1871   :  { %v3256_v15 = vsel %vm3084_vm13, %v3254_v14, 0.0 }
0x1872   :  { %v3257_v57 = vrot.slane %v3256_v15, 4 }
0x1874   :  { %v3258_v38 = vadd.f32 %v3257_v57, %v3256_v15 }
0x1876   :  { %v3259_v60 = vrot.slane %v3258_v38, 2 }
0x1877   :  { %v3113_v26 = vpop.xlane.xlu1 %3112 }
0x1878   :  { %v3260_v39 = vadd.f32 %v3259_v60, %v3258_v38  ;;  %v3114_v36 = vmul.f32 0.125, %v3113_v26 }
0x187a   :  { %v3261_v11 = vrot.slane %v3260_v39, 1  ;;  %v3115_v41 = vsub.f32 %v3110_v44, %v3114_v36  ;;  %v2504_v44 = vrot.slane %v2503_v59, 4 }
0x187c   :  { %v3262_v18 = vadd.f32 %v3261_v11, %v3260_v39  ;;  %v3116_v30 = vmul.f32 %v3115_v41, %v3115_v41 }
0x187e   :  { %v3263_v32 = vmul.f32 0.03125, %v3262_v18  ;;  %v3117_v62 = vsel %vm3080_vm12, %v3116_v30, 0.0 }
0x187f   :  { %3118 = vadd.xlane.f32.xlu1 %v3117_v62 }
0x1880   :  { %v3264_v55 = vadd.f32 1e-05, %v3263_v32 }
0x1882   :  { %5077 = vrsqrt.f32 %v3264_v55 }
0x1883   :  { %5079 = vrcp.f32 %v2371_v9 }
0x188c   :  { %v5078_v53 = vpop.eup %5077 }
0x188d   :  { %v3266_v54 = vmul.f32 %v5078_v53, %v3248_v58  ;;  %v5080_v51 = vpop.eup %5079  ;;  %v2505_v58 = vmax.f32 %v2503_v59, %v2504_v44 }
0x188e   :  { %v2373_v10 = vmul.f32 %v5080_v51, %v5076_v12 }
0x188f   :  { %v3270_v56 = vmul.f32 %v3268_v27, %v3266_v54  ;;  %v2506_v17 = vrot.slane %v2505_v58, 2 }
0x1891   :  { %v3274_v42 = vadd.f32 %v3272_v48, %v3270_v56  ;;  %v2507_v47 = vmax.f32 %v2505_v58, %v2506_v17 }
0x1893   :  { %v3275_v43 = vsel %vm3233_vm15, %v3274_v42, 0.0  ;;  %v2508_v49 = vrot.slane %v2507_v47, 1 }
0x1894   :  { %3276 = vadd.xlane.f32.xlu1 %v3275_v43 }
0x1895   :  { %v2509_v37 = vmax.f32 %v2507_v47, %v2508_v49 }
0x1897   :  { %v2510_v50 = vsub.f32 %v6078_v21, %v2509_v37 }
0x1899   :  { %v2511_v61 = vmul.f32 1.442695, %v2510_v50  ;;  %v3400_v50 = vld [vmem:[%s6302_s0 + $0x38] sm:$0xff] }
0x189b   :  { %5081 = vpow2.f32 %v2511_v61 }
0x18a5   :  { %1295 = vperm.xlu1 %4916, %v5869_v5   ;;  %v5082_v5 = vpop.eup %5081 }
0x18a6   :  { %v2513_v52 = vsel %vm1265_vm2, %v5082_v5, 0.0  ;;  %vm3200_vm2 = vcmask 3072  }
0x18a7   :  { %v2514_v15 = vrot.slane %v2513_v52, 4 }
0x18a9   :  { %2376 = vperm.xlu1 %4916, %v2373_v10   ;;  %v2515_v60 = vadd.f32 %v2514_v15, %v2513_v52 }
0x18ab   :  { %v2516_v36 = vrot.slane %v2515_v60, 2 }
0x18ad   :  { %v2517_v12 = vadd.f32 %v2516_v36, %v2515_v60 }
0x18af   :  { %v2518_v18 = vrot.slane %v2517_v12, 1 }
0x18b1   :  { %v2519_v30 = vadd.f32 %v2518_v18, %v2517_v12 }
0x190c   :  { %v3119_v31 = vpop.xlane.xlu1 %3118 }
0x190d   :  { %v3120_v2 = vmul.f32 0.125, %v3119_v31  ;;  %v6203_v31 = vld [vmem:[%s6303_s1 + $0x3f0] sm:$0xff] }
0x190f   :  { %v3121_v13 = vadd.f32 1e-05, %v3120_v2 }
0x1911   :  { %5083 = vrsqrt.f32 %v3121_v13 }
0x191b   :  { %v5084_v24 = vpop.eup %5083 }
0x191c   :  { %v3123_v7 = vmul.f32 %v5084_v24, %v3115_v41 }
0x191e   :  { %v3124_v14 = vmul.f32 %v3123_v7, %v5739_v63 }
0x1920   :  { %v6155_v57 = vadd.f32 %v3124_v14, %v5743_v6 }
0x1921   :  { %v3277_v38 = vpop.xlane.xlu1 %3276 }
0x1922   :  { %5085 = vtanh.f32 %v6155_v57  ;;  %v3278_v21 = vmul.f32 0.125, %v3277_v38 }
0x1923   :  { %5087 = vrcp.f32 %v2519_v30 }
0x1924   :  { %v3279_v26 = vsub.f32 %v3274_v42, %v3278_v21 }
0x1925   :  { %v1296_v8 = vpop.permute.xlu1 %1295 }
0x1926   :  { %v3280_v39 = vmul.f32 %v3279_v26, %v3279_v26 }
0x1928   :  { %v3281_v11 = vsel %vm3233_vm15, %v3280_v39, 0.0 }
0x1929   :  { %3282 = vadd.xlane.f32.xlu0 %v3281_v11  ;;  %v2377_v27 = vpop.permute.xlu1 %2376 }
0x192a   :  { %v2379_v48 = vmul.f32 %v2377_v27, %v6034_v1 }
0x192c   :  { %v5086_v41 = vpop.eup %5085  ;;  %v2380_v43 = vsel %vm122_vm0, %v2379_v48, 0.0 }
0x192d   :  { %4704 = vmatmul.mubr.msk.f32.vlgmr.msra.gmra.mrb[42].mxu1 %vm122_vm0, %v5086_v41  ;;  %v5088_v32 = vpop.eup %5087  ;;  %v2381_v10 = vrot.slane %v2380_v43, 4 }
0x192e   :  { %4707 = vmatpush3.msra.mxu1 %v6059_v40  ;;  %4708 = vmatprep.mubr.msk.f32.mxu1 %vm5129_vm8, %v5130_v33  ;;  %v2521_v62 = vmul.f32 %v5088_v32, %v5082_v5 }
0x192f   :  { %4906 = vmatprep.subr.bf16.mxu1 %v5128_v46  ;;  %v2382_v58 = vadd.f32 %v2381_v10, %v2380_v43 }
0x1931   :  { %v2383_v1 = vrot.slane %v2382_v58, 2 }
0x1933   :  { %v2384_v49 = vadd.f32 %v2383_v1, %v2382_v58 }
0x1935   :  { %v2385_v61 = vrot.slane %v2384_v49, 1 }
0x1937   :  { %v2386_v2 = vadd.f32 %v2385_v61, %v2384_v49 }
0x193f   :  { %1300 = vperm.xlu0 %4915, %v5872_v19   ;;  %v1303_v19 = vmul.f32 %v1296_v8, %v5749_v35 }
0x1941   :  { %v1305_v22 = vsel %vm122_vm0, %v1303_v19, 0.0 }
0x1943   :  { %1496 = vperm.xlu0 %4915, %v5879_v3  }
0x1947   :  { %2524 = vperm.xlu0 %4915, %v2521_v62  }
0x19b6   :  { %v3283_v46 = vpop.xlane.xlu0 %3282 }
0x19b7   :  { %v3284_v40 = vmul.f32 0.125, %v3283_v46 }
0x19b9   :  { %v3285_v55 = vadd.f32 1e-05, %v3284_v40  ;;  %v6219_v40 = vld [vmem:[%s6303_s1 + $0x3f8] sm:$0xff] }
0x19bb   :  { %5089 = vrsqrt.f32 %v3285_v55 }
0x19be   :  { %v1301_v23 = vpop.permute.xlu0 %1300 }
0x19bf   :  { %v1304_v3 = vmul.f32 %v1301_v23, %v5752_v28 }
0x19c1   :  { %v1306_v53 = vsel %vm122_vm0, %v1304_v3, 0.0 }
0x19c2   :  { %v1307_v54 = vadd.f32 %v1306_v53, %v1305_v22 }
0x19c4   :  { %v1308_v29 = vrot.slane %v1307_v54, 4 }
0x19c5   :  { %v5090_v56 = vpop.eup %5089 }
0x19c6   :  { %v3287_v42 = vmul.f32 %v5090_v56, %v3279_v26  ;;  %v1309_v4 = vadd.f32 %v1308_v29, %v1307_v54 }
0x19c8   :  { %v3288_v9 = vmul.f32 %v3287_v42, %v5739_v63  ;;  %v1310_v35 = vrot.slane %v1309_v4, 2  ;;  %v3401_v63 = vld [vmem:[%s6303_s1 + $0x3d0] sm:$0xff] }
0x19ca   :  { %v6181_v51 = vadd.f32 %v3288_v9, %v5743_v6  ;;  %v1311_v28 = vadd.f32 %v1310_v35, %v1309_v4  ;;  %v3402_v6 = vld [vmem:[%s6303_s1 + $0x3d8] sm:$0xff]  ;;  %v1497_v4 = vpop.permute.xlu0 %1496 }
0x19cb   :  { %v4907_v47 = vpack.c.bf16 %v3402_v6, %v3401_v63  ;;  %v1504_v10 = vmul.f32 %v1497_v4, %v5770_v34  ;;  %v3403_v34 = vld [vmem:[%s6303_s1 + $0x3e0] sm:$0xff] }
0x19cc   :  { %v1312_v59 = vrot.slane %v1311_v28, 1  ;;  %5091 = vtanh.f32 %v6181_v51 }
0x19ce   :  { %v1313_v44 = vadd.f32 %v1312_v59, %v1311_v28 }
0x19d0   :  { %4726 = vmatmul.mubr.msk.f32.vlgmr.msra.gmra.mrb[12].mxu0 %vm122_vm0, %v1313_v44 }
0x19d1   :  { %4735 = vmatprep.mubr.msk.f32.mxu0 %vm5129_vm8, %v5130_v33 }
0x19d6   :  { %v5092_v17 = vpop.eup %5091 }
0x19d7   :  { %v3292_v37 = vrot.slane %v5092_v17, 4 }
0x19d9   :  { %4709 = vmatmul.mubr.msk.f32.vlgmr.msra.gmra.mrb[44].mxu1 %vm122_vm0, %v3292_v37 }
0x19da   :  { %4908 = vmatpush3.bf16.msra.mxu1 %v4907_v47  ;;  %4715 = vmatprep.mubr.msk.f32.mxu1 %vm5129_vm8, %v5130_v33  ;;  %v1506_v47 = vsel %vm122_vm0, %v1504_v10, 0.0 }
0x19db   :  { %4718 = vmatprep.subr.mxu1 %v5130_v33 }
0x19dd   :  { %4716 = vmatmul.mubr.msk.f32.vlgmr.msra.gmra.mrb[46].mxu1 %vm989_vm14, %v3400_v50  ;;  %vm4227_vm14 = vcmask 1040384  }
0x19de   :  { %4719 = vmatpush3.msra.mxu1 %v6203_v31  ;;  %4720 = vmatprep.mubr.msk.f32.mxu1 %vm5129_vm8, %v5130_v33 }
0x19df   :  { %4728 = vmatprep.subr.mxu1 %v5130_v33 }
0x19e1   :  { %4721 = vmatmul.mubr.msk.f32.vlgmr.msra.gmra.mrb[48].mxu1 %vm122_vm0, %v2386_v2  ;;  %v3407_v2 = vrot.slane %v3403_v34, %v5287_v20 }
0x19e2   :  { %4730 = vmatprep.mubr.msk.f32.mxu1 %vm5129_vm8, %v5130_v33  ;;  %4729 = vmatpush3.msra.mxu1 %v6219_v40 }
0x19e3   :  { %4738 = vmatprep.subr.mxu1 %v5130_v33 }
0x1a00   :  { %v3196_v13 = vpop.f32.mrb[42].mxu1 }
0x1a01   :  { %v3201_v5 = vsel %vm3200_vm2, %v3196_v13, -inf  ;;  %v4705_v24 = vpop.f32.mrb[43].mxu1 }
0x1a02   :  { %v3202_v7 = vrot.slane %v3201_v5, 4 }
0x1a04   :  { %v3203_v52 = vmax.f32 %v3201_v5, %v3202_v7  ;;  %v6239_v7 = vld [vmem:[%s6303_s1 + $0x408] sm:$0xff] }
0x1a06   :  { %v3204_v14 = vrot.slane %v3203_v52, 2 }
0x1a08   :  { %v3205_v15 = vmax.f32 %v3203_v52, %v3204_v14 }
0x1a0a   :  { %v3206_v38 = vrot.slane %v3205_v15, 1 }
0x1a0c   :  { %v3207_v21 = vmax.f32 %v3205_v15, %v3206_v38 }
0x1a0e   :  { %v3208_v60 = vsub.f32 %v3196_v13, %v3207_v21 }
0x1a10   :  { %v3209_v26 = vmul.f32 1.442695, %v3208_v60 }
0x1a12   :  { %5093 = vpow2.f32 %v3209_v26 }
0x1a1c   :  { %v5094_v39 = vpop.eup %5093 }
0x1a1d   :  { %v3211_v36 = vsel %vm3200_vm2, %v5094_v39, 0.0 }
0x1a1e   :  { %v3212_v11 = vrot.slane %v3211_v36, 4 }
0x1a20   :  { %v3213_v41 = vadd.f32 %v3212_v11, %v3211_v36 }
0x1a22   :  { %v3214_v12 = vrot.slane %v3213_v41, 2 }
0x1a24   :  { %v3215_v18 = vadd.f32 %v3214_v12, %v3213_v41 }
0x1a26   :  { %v3216_v30 = vrot.slane %v3215_v18, 1 }
0x1a28   :  { %v3217_v32 = vadd.f32 %v3216_v30, %v3215_v18  ;;  %v2525_v30 = vpop.permute.xlu0 %2524 }
0x1a2a   :  { %5095 = vrcp.f32 %v3217_v32  ;;  %v2527_v32 = vmul.f32 %v2525_v30, %v6037_v0 }
0x1a34   :  { %v5096_v62 = vpop.eup %5095 }
0x1a35   :  { %v3219_v46 = vmul.f32 %v5096_v62, %v5094_v39 }
0x1a37   :  { %3222 = vperm.xlu1 %4916, %v3219_v46   ;;  %v3390_v46 = vrot.slane %v6181_v51, 4 }
0x1a3b   :  { %1501 = vperm.xlu1 %4916, %v5882_v16  }
0x1aa3   :  { %v3630_v55 = vpop.f32.mrb[12].mxu0 }
0x1aa4   :  { %v4727_v8 = vpop.f32.mrb[13].mxu0 }
0x1aac   :  { %v3361_v19 = vpop.f32.mrb[44].mxu1 }
0x1aad   :  { %v3365_v23 = vsel %vm3200_vm2, %v3361_v19, -inf  ;;  %v4710_v3 = vpop.f32.mrb[45].mxu1 }
0x1aae   :  { %v3366_v22 = vrot.slane %v3365_v23, 4 }
0x1ab0   :  { %v3367_v27 = vmax.f32 %v3365_v23, %v3366_v22  ;;  %v3477_v53 = vpop.f32.mrb[46].mxu1 }
0x1ab1   :  { %v4717_v54 = vpop.f32.mrb[47].mxu1  ;;  %v6241_v52 = vadd.f32 %v3477_v53, %v3407_v2 }
0x1ab2   :  { %v3368_v16 = vrot.slane %v3367_v27, 2 }
0x1ab4   :  { %v3369_v48 = vmax.f32 %v3367_v27, %v3368_v16  ;;  %v3557_v29 = vpop.f32.mrb[48].mxu1 }
0x1ab5   :  { %v6224_v56 = vadd.f32 %v3630_v55, %v3557_v29  ;;  %v4722_v42 = vpop.f32.mrb[49].mxu1  ;;  %v2528_v55 = vsel %vm122_vm0, %v2527_v32, 0.0 }
0x1ab6   :  { %v3370_v43 = vrot.slane %v3369_v48, 1  ;;  %v3223_v9 = vpop.permute.xlu1 %3222 }
0x1ab7   :  { %v3225_v35 = vmul.f32 %v3223_v9, %v6155_v57 }
0x1ab8   :  { %v3371_v28 = vmax.f32 %v3369_v48, %v3370_v43  ;;  %v3484_v48 = vld [vmem:[%s6303_s1 + $0x400] sm:$0xff] }
0x1ab9   :  { %v3226_v59 = vsel %vm3080_vm12, %v3225_v35, 0.0 }
0x1aba   :  { %v3372_v44 = vsub.f32 %v3361_v19, %v3371_v28  ;;  %v3227_v58 = vrot.slane %v3226_v59, 4  ;;  %v1502_v1 = vpop.permute.xlu1 %1501  ;;  %v2529_v19 = vrot.slane %v2528_v55, 4 }
0x1abb   :  { %v1505_v63 = vmul.f32 %v1502_v1, %v5777_v45 }
0x1abc   :  { %v3373_v6 = vmul.f32 1.442695, %v3372_v44  ;;  %v3228_v17 = vadd.f32 %v3227_v58, %v3226_v59  ;;  %v2530_v3 = vadd.f32 %v2529_v19, %v2528_v55 }
0x1abd   :  { %v1507_v49 = vsel %vm122_vm0, %v1505_v63, 0.0 }
0x1abe   :  { %5097 = vpow2.f32 %v3373_v6  ;;  %v3229_v37 = vrot.slane %v3228_v17, 2  ;;  %v1508_v50 = vadd.f32 %v1507_v49, %v1506_v47  ;;  %v2531_v27 = vrot.slane %v2530_v3, 2 }
0x1ac0   :  { %v3230_v57 = vadd.f32 %v3229_v37, %v3228_v17  ;;  %v1509_v61 = vrot.slane %v1508_v50, 4  ;;  %v2532_v54 = vadd.f32 %v2531_v27, %v2530_v3 }
0x1ac2   :  { %v3231_v13 = vrot.slane %v3230_v57, 1  ;;  %v1510_v5 = vadd.f32 %v1509_v61, %v1508_v50  ;;  %v2533_v42 = vrot.slane %v2532_v54, 1 }
0x1ac4   :  { %v3232_v45 = vadd.f32 %v3231_v13, %v3230_v57  ;;  %v1511_v24 = vrot.slane %v1510_v5, 2  ;;  %v2534_v28 = vadd.f32 %v2533_v42, %v2532_v54  ;;  %v3487_v13 = vld [vmem:[%s6303_s1 + $0x418] sm:$0xff] }
0x1ac6   :  { %v1512_v14 = vadd.f32 %v1511_v24, %v1510_v5  ;;  %4731 = vmatmul.mubr.msk.f32.vlgmr.msra.gmra.mrb[50].mxu1 %vm122_vm0, %v3232_v45 }
0x1ac7   :  { %4739 = vmatpush3.msra.mxu1 %v6239_v7  ;;  %4740 = vmatprep.mubr.msk.f32.mxu1 %vm5129_vm8, %v5130_v33 }
0x1ac8   :  { %v5098_v20 = vpop.eup %5097  ;;  %v1513_v15 = vrot.slane %v1512_v14, 1  ;;  %4748 = vmatprep.subr.mxu1 %v5130_v33 }
0x1ac9   :  { %v3375_v38 = vsel %vm3200_vm2, %v5098_v20, 0.0 }
0x1aca   :  { %v3376_v21 = vrot.slane %v3375_v38, 4  ;;  %4741 = vmatmul.mubr.msk.f32.vlgmr.msra.gmra.mrb[52].mxu1 %vm122_vm0, %v6241_v52  ;;  %v1514_v26 = vadd.f32 %v1513_v15, %v1512_v14 }
0x1acb   :  { %4749 = vmatpush3.msra.mxu1 %v6169_v25  ;;  %4750 = vmatprep.mubr.msk.f32.mxu1 %vm5129_vm8, %v5130_v33  ;;  %v3486_v25 = vld [vmem:[%s6303_s1 + $0x410] sm:$0xff] }
0x1acc   :  { %v3377_v60 = vadd.f32 %v3376_v21, %v3375_v38  ;;  %4758 = vmatprep.subr.mxu1 %v5130_v33  ;;  %4734 = vmatpush3.msra.mxu0 %v3486_v25 }
0x1acd   :  { %4743 = vmatprep.subr.mxu0 %v5130_v33 }
0x1ace   :  { %v3378_v39 = vrot.slane %v3377_v60, 2  ;;  %4751 = vmatmul.mubr.msk.f32.vlgmr.msra.gmra.mrb[54].mxu1 %vm122_vm0, %v1514_v26 }
0x1acf   :  { %4760 = vmatprep.mubr.msk.f32.mxu1 %vm5129_vm8, %v5130_v33  ;;  %4759 = vmatpush3.msra.mxu1 %v3486_v25 }
0x1ad0   :  { %v3379_v36 = vadd.f32 %v3378_v39, %v3377_v60 }
0x1ad2   :  { %v3380_v11 = vrot.slane %v3379_v36, 1 }
0x1ad4   :  { %v3381_v41 = vadd.f32 %v3380_v11, %v3379_v36 }
0x1ad6   :  { %5099 = vrcp.f32 %v3381_v41 }
0x1ae0   :  { %v5100_v12 = vpop.eup %5099 }
0x1ae1   :  { %v3383_v18 = vmul.f32 %v5100_v12, %v5098_v20 }
0x1ae3   :  { %3386 = vperm.xlu1 %4916, %v3383_v18  }
0x1b62   :  { %v3387_v62 = vpop.permute.xlu1 %3386 }
0x1b63   :  { %v3392_v8 = vmul.f32 %v3390_v46, %v3387_v62 }
0x1b65   :  { %v3393_v23 = vsel %vm3080_vm12, %v3392_v8, 0.0 }
0x1b66   :  { %v3394_v22 = vrot.slane %v3393_v23, 4 }
0x1b68   :  { %v3395_v53 = vadd.f32 %v3394_v22, %v3393_v23 }
0x1b6a   :  { %v3396_v16 = vrot.slane %v3395_v53, 2 }
0x1b6c   :  { %v3397_v4 = vadd.f32 %v3396_v16, %v3395_v53 }
0x1b6e   :  { %v3398_v10 = vrot.slane %v3397_v4, 1 }
0x1b70   :  { %v3399_v44 = vadd.f32 %v3398_v10, %v3397_v4 }
0x1b99   :  { %v3703_v0 = vpop.f32.mrb[50].mxu1 }
0x1b9a   :  { %v3707_v29 = vadd.f32 %v3703_v0, %v6224_v56  ;;  %v4732_v51 = vpop.f32.mrb[51].mxu1 }
0x1b9c   :  { %v3708_v43 = vadd.f32 %v3707_v29, %v3484_v48 }
0x1b9d   :  { %v3851_v9 = vpop.f32.mrb[52].mxu1 }
0x1b9e   :  { %4736 = vmatmul.mubr.msk.f32.vlgmr.msra.gmra.mrb[14].mxu0 %vm122_vm0, %v3708_v43  ;;  %v4742_v35 = vpop.f32.mrb[53].mxu1 }
0x1b9f   :  { %4744 = vmatpush3.msra.mxu0 %v6203_v31  ;;  %4745 = vmatprep.mubr.msk.f32.mxu0 %vm5129_vm8, %v5130_v33  ;;  %v4150_v31 = vrot.slane %v6241_v52, 1 }
0x1ba0   :  { %4753 = vmatprep.subr.mxu0 %v5130_v33 }
0x1ba1   :  { %v3998_v59 = vpop.f32.mrb[54].mxu1 }
0x1ba2   :  { %4746 = vmatmul.mubr.msk.f32.vlgmr.msra.gmra.mrb[16].mxu0 %vm122_vm0, %v2534_v28  ;;  %v4752_v56 = vpop.f32.mrb[55].mxu1 }
0x1ba3   :  { %4754 = vmatpush3.msra.mxu0 %v6219_v40  ;;  %4755 = vmatprep.mubr.msk.f32.mxu0 %vm5129_vm8, %v5130_v33 }
0x1ba4   :  { %4763 = vmatprep.subr.mxu0 %v5130_v33 }
0x1ba6   :  { %4756 = vmatmul.mubr.msk.f32.vlgmr.msra.gmra.mrb[18].mxu0 %vm122_vm0, %v3399_v44 }
0x1ba7   :  { %4764 = vmatpush3.msra.mxu0 %v6239_v7  ;;  %4765 = vmatprep.mubr.msk.f32.mxu0 %vm5129_vm8, %v5130_v33 }
0x1baa   :  { %4766 = vmatmul.mubr.msk.f32.vlgmr.msra.gmra.mrb[20].mxu0 %vm122_vm0, %v4150_v31 }
0x1c71   :  { %v3778_v58 = vpop.f32.mrb[14].mxu0 }
0x1c72   :  { %v3852_v1 = vadd.f32 %v3851_v9, %v3778_v58  ;;  %v4737_v40 = vpop.f32.mrb[15].mxu0 }
0x1c74   :  { %v3855_v45 = vadd.f32 %v3852_v1, %v3487_v13 }
0x1c75   :  { %v3925_v63 = vpop.f32.mrb[16].mxu0 }
0x1c76   :  { %v3999_v6 = vadd.f32 %v3998_v59, %v3925_v63  ;;  %v4747_v17 = vpop.f32.mrb[17].mxu0 }
0x1c79   :  { %v4071_v47 = vpop.f32.mrb[18].mxu0 }
0x1c7a   :  { %v4075_v49 = vadd.f32 %v4071_v47, %v3999_v6  ;;  %v4757_v37 = vpop.f32.mrb[19].mxu0 }
0x1c7c   :  { %v4076_v50 = vadd.f32 %v4075_v49, %v3484_v48 }
0x1c7d   :  { %v4219_v34 = vpop.f32.mrb[20].mxu0 }
0x1c7e   :  { %4761 = vmatmul.mubr.msk.f32.vlgmr.msra.gmra.mrb[56].mxu1 %vm122_vm0, %v4076_v50  ;;  %v4767_v57 = vpop.f32.mrb[21].mxu0 }
0x1d51   :  { %v4146_v61 = vpop.f32.mrb[56].mxu1 }
0x1d52   :  { %v4220_v33 = vadd.f32 %v4219_v34, %v4146_v61  ;;  %v4762_v2 = vpop.f32.mrb[57].mxu1 }
0x1d54   :  { %v4223_v5 = vadd.f32 %v4220_v33, %v3487_v13 }
0x1d56   :  { %v4225_v24 = vrot.slane %v4223_v5, 7 }
0x1d58   :  { %v4228_v7 = vsel %vm4227_vm14, %v3855_v45, %v4225_v24 }
0x1d59   :  { %4230 = vst.msk [vmem:[#allocation2] sm:$0x3] %vm4229_vm3, %v4228_v7 }
0x1d5a   :  { %5113 = shalt.err (!%p5110_p4)
}
0x1d5b   :  { %s5114_s1 = scalar_lea.hbm %s6304_s2, 32 }
0x1d5c   :  { %p5115_p5 = scmp.ne.s32.totalorder %s6304_s2, %s5114_s1  ;;  %p5118_p6 = scmp.lt.u32.totalorder %s5114_s1, %s6304_s2 }
0x1d5e   :  { %p5120_p7 = pnand %p5118_p6, %p5115_p5 }
0x1d60   :  { %5123 = shalt.err (!%p5120_p7)
}
0x1d61   :  { %4240 = dma.vmem_to_hbm [thread:$0]  %s4238_s11, 32, %s6304_s2, [#allocation3]  }
0x1d62   :  { %5124 = dma.done.wait [#allocation3], 32  }
0x1d63   :  { %5125 = vsyncadd [#allocation3], 4294967264 }
0x1d64   :  { %4244 = vsyncpa [#allocation3], 1 }

</bundles_post_ra>
